<compile_context>
chip_gen: v7x
topology: tpu7x:2x2x1
jax: 0.10.0
libtpu: 0.0.40
codegen_flags: <defaults>
</compile_context>

<pallas_src>
import functools
import math

import jax
import jax.numpy as jnp
from jax.experimental import pallas as pl
from jax.experimental.pallas import tpu as pltpu


# ----------------------------------------------------------------------------
# Small helpers
# ----------------------------------------------------------------------------
def _round_up(x, m):
    return (x + m - 1) // m * m


def _largest_tile(dim_padded, tile_max):
    """Largest multiple of 128 that divides dim_padded and is <= tile_max."""
    for c in range(min(tile_max, dim_padded), 127, -128):
        if dim_padded % c == 0:
            return c
    return 128


def _pad_dims_for_weight(k, n, waste_frac=0.02):
    """Choose zero-padded (kp, np) for a (k, n) matmul weight.

    Both dims are padded to multiples of 128 (MXU / lane alignment).  A dim is
    padded further to a multiple of 512 / 1024 only when the extra weight
    bytes are below `waste_frac` of the weight, so the kernel can use large
    K/N tiles (short grids) without bloating huge weights.
    """
    def pick(d, other):
        base = _round_up(d, 128)
        for align in (1024, 512):
            p = _round_up(d, align)
            if p == base:
                return base
            if (p - d) * other <= waste_frac * d * other:
                return p
        return base
    return pick(k, n), pick(n, k)


def _pad2(a, row_pad, col_pad):
    if row_pad or col_pad:
        a = jnp.pad(a, ((0, row_pad), (0, col_pad)))
    return a


# ----------------------------------------------------------------------------
# Fused tiled matmul (+ optional 4-way max-pool) + bias + activation kernel
# ----------------------------------------------------------------------------
def _fused_matmul_kernel(*refs, n_lhs, act):
    """refs = (x_0..x_{n_lhs-1}, w, b, out, acc_0..acc_{n_lhs-1})."""
    x_refs = refs[:n_lhs]
    w_ref, b_ref, o_ref = refs[n_lhs], refs[n_lhs + 1], refs[n_lhs + 2]
    acc_refs = refs[n_lhs + 3:]
    k = pl.program_id(2)

    @pl.when(k == 0)
    def _init():
        for a in acc_refs:
            a[...] = jnp.zeros_like(a)

    for x_ref, a in zip(x_refs, acc_refs):
        a[...] += jnp.dot(x_ref[...], w_ref[...],
                          preferred_element_type=jnp.float32)

    @pl.when(k == pl.num_programs(2) - 1)
    def _epilogue():
        acc = acc_refs[0][...]
        for a in acc_refs[1:]:          # 4-way max == fused 2x2 max-pool
            acc = jnp.maximum(acc, a[...])
        acc = acc + b_ref[...]          # (1, tn) bias broadcasts over rows
        if act == "relu":
            acc = jnp.maximum(acc, 0.0)
        elif act == "sigmoid":
            # numerically stable sigmoid; reciprocal routed to the EUP slot.
            e = jnp.exp(-jnp.abs(acc))
            s = pl.reciprocal(1.0 + e, approx=True)
            acc = jnp.where(acc >= 0.0, s, 1.0 - s)
        o_ref[...] = acc.astype(o_ref.dtype)


def fused_matmul(lhs_list, prep, act="none", out_dtype=jnp.bfloat16,
                 tm_max=512, tk_max=2048, tn_max=1024):
    """Computes act(max_i(lhs_i @ w) + b) for i in range(len(lhs_list)).

    `prep` holds an already bf16-cast, zero-padded weight (kp, np) plus the
    *unpadded* f32 bias (its static length is the true output width).
    len(lhs_list) == 1 -> plain fused matmul+bias+act.
    len(lhs_list) == 4 -> the epilogue max implements a 2x2 max-pool.
    """
    w, b = prep["w"], prep["b"]
    n_lhs = len(lhs_list)
    m, k = lhs_list[0].shape
    kp, np_ = w.shape
    n = b.shape[0]
    assert k <= kp and n <= np_

    tm = min(tm_max, _round_up(m, 16))      # bf16 sublane tile = 16
    mp = _round_up(m, tm)
    tk = _largest_tile(kp, tk_max if n_lhs == 1 else 1024)
    tn = _largest_tile(np_, tn_max)

    # Keep the per-step working set comfortably inside the scoped VMEM limit.
    out_bytes = jnp.dtype(out_dtype).itemsize

    def _vmem(tk_, tn_):
        return (2 * n_lhs * tm * tk_ * 2     # lhs blocks, double-buffered
                + 2 * tk_ * tn_ * 2          # weight block
                + 2 * tn_ * 4                # bias block
                + 2 * tm * tn_ * out_bytes   # output block
                + n_lhs * tm * tn_ * 4)      # f32 accumulators (scratch)

    while _vmem(tk, tn) > 14 * 1024 * 1024 and max(tk, tn) > 128:
        if tk >= tn:
            tk = _largest_tile(kp, tk - 128)
        else:
            tn = _largest_tile(np_, tn - 128)

    lhs = [_pad2(x.astype(jnp.bfloat16), mp - m, kp - k) for x in lhs_list]
    bp = jnp.pad(b, (0, np_ - n)).reshape(1, np_)

    grid = (mp // tm, np_ // tn, kp // tk)
    in_specs = [pl.BlockSpec((tm, tk), lambda i, j, kk: (i, kk))
                for _ in range(n_lhs)]
    in_specs += [pl.BlockSpec((tk, tn), lambda i, j, kk: (kk, j)),
                 pl.BlockSpec((1, tn), lambda i, j, kk: (0, j))]
    out_spec = pl.BlockSpec((tm, tn), lambda i, j, kk: (i, j))
    scratch = [pltpu.VMEM((tm, tn), jnp.float32) for _ in range(n_lhs)]

    cost = pl.CostEstimate(
        flops=2 * n_lhs * mp * kp * np_,
        transcendentals=mp * np_ if act == "sigmoid" else 0,
        bytes_accessed=(n_lhs * mp * kp * 2 * (np_ // tn)
                        + kp * np_ * 2 * (mp // tm)
                        + mp * np_ * out_bytes),
    )

    out = pl.pallas_call(
        functools.partial(_fused_matmul_kernel, n_lhs=n_lhs, act=act),
        out_shape=jax.ShapeDtypeStruct((mp, np_), out_dtype),
        grid_spec=pltpu.PrefetchScalarGridSpec(
            num_scalar_prefetch=0,
            grid=grid,
            in_specs=in_specs,
            out_specs=out_spec,
            scratch_shapes=scratch),
        compiler_params=pltpu.CompilerParams(
            dimension_semantics=("parallel", "parallel", "arbitrary"),
            vmem_limit_bytes=32 * 1024 * 1024),
        cost_estimate=cost,
    )(*lhs, w, bp)
    return out[:m, :n]


# ----------------------------------------------------------------------------
# Layer wrappers (JAX glue around the fused kernel)
# ----------------------------------------------------------------------------
def conv3x3_relu_pool(x, prep):
    """3x3 conv (pad=1) + ReLU + 2x2/stride-2 max-pool, fused.

    x: NHWC (N, H, W, Cin).  Returns bf16 NHWC (N, H/2, W/2, Cout).
    The four pool-quadrant im2col row sets are built directly (no full-res
    patch tensor) and reduced with max in the kernel epilogue, so the
    un-pooled conv output never hits HBM.
    """
    n, h, wd, cin = x.shape
    cout = prep["b"].shape[0]
    xp = jnp.pad(x.astype(jnp.bfloat16), ((0, 0), (1, 1), (1, 1), (0, 0)))
    quads = []
    for dy in (0, 1):
        for dx in (0, 1):
            # output pixel (2i+dy, 2j+dx); tap (ki,kj) reads padded row dy+ki+2i
            taps = [xp[:, dy + ki:dy + ki + h:2, dx + kj:dx + kj + wd:2, :]
                    for ki in range(3) for kj in range(3)]
            quads.append(jnp.concatenate(taps, axis=-1).reshape(-1, 9 * cin))
    y = fused_matmul(quads, prep, act="relu", out_dtype=jnp.bfloat16)
    return y.reshape(n, h // 2, wd // 2, cout)


def tconv2x2_rows(x2d, prep, act, out_dtype=jnp.bfloat16):
    """ConvTranspose2d(kernel=2, stride=2) as a per-pixel matmul.

    x2d: (M, Cin) rows in some pixel order.  Returns (4*M, Cout) with rows
    ordered (pixel, di*2+dj) - the spatial interleave is deferred to the caller.
    """
    cout = prep["b"].shape[0] // 4
    y = fused_matmul([x2d], prep, act=act, out_dtype=out_dtype)  # (M, 4*Cout)
    return y.reshape(-1, cout)                                   # (4M, Cout)


def conv_autoencoder_forward(prep, x_nchw):
    """Forward pass matching ConvAutoencoder.forward.  Input/output: NCHW."""
    x = jnp.transpose(x_nchw, (0, 2, 3, 1))                      # NCHW -> NHWC

    x = conv3x3_relu_pool(x, prep["conv1"])
    x = conv3x3_relu_pool(x, prep["conv2"])
    x = conv3x3_relu_pool(x, prep["conv3"])

    n, h8, w8, c = x.shape
    # nn.Flatten flattens NCHW as (N, C*H*W): replicate that ordering.
    flat = jnp.transpose(x, (0, 3, 1, 2)).reshape(n, c * h8 * w8)
    z = fused_matmul([flat], prep["dense"], act="relu")
    y = fused_matmul([z], prep["dense2"], act="relu")

    # x.view(-1, 128, H/8, W/8) in NCHW, then rows ordered (n, i, j).
    y = y.reshape(n, c, h8, w8)
    y = jnp.transpose(y, (0, 2, 3, 1)).reshape(-1, c)

    # Decoder: sub-pixel planes stay packed in the row order; one relayout at
    # the end instead of a pixel-shuffle transpose per stage.
    y = tconv2x2_rows(y, prep["tconv1"], "relu")
    y = tconv2x2_rows(y, prep["tconv2"], "relu")
    y = tconv2x2_rows(y, prep["tconv3"], "sigmoid", out_dtype=jnp.float32)

    # rows: (n, i, j, d1, d2, d3) with d = di*2 + dj, channels = 3
    y = y.reshape(n, h8, w8, 2, 2, 2, 2, 2, 2, 3)
    #            n  i   j  di1 dj1 di2 dj2 di3 dj3 c
    y = jnp.transpose(y, (0, 1, 3, 5, 7, 2, 4, 6, 8, 9))
    y = y.reshape(n, 8 * h8, 8 * w8, 3)                # h = 8i+4di1+2di2+di3
    return jnp.transpose(y, (0, 3, 1, 2))              # NHWC -> NCHW


# ----------------------------------------------------------------------------
# One-time weight preparation (outside jit): matmul layout, bf16 cast, padding
# ----------------------------------------------------------------------------
def prepare_params(params):
    def prep(w2d, b1d):
        k, n = w2d.shape
        kp, np_ = _pad_dims_for_weight(k, n)
        wq = jnp.pad(w2d.astype(jnp.bfloat16), ((0, kp - k), (0, np_ - n)))
        return {"w": wq, "b": b1d.astype(jnp.float32)}

    def conv_w(w):    # (Cout, Cin, 3, 3) -> (9*Cin, Cout), patch order (kh,kw,cin)
        cout, cin = w.shape[0], w.shape[1]
        return jnp.transpose(w, (2, 3, 1, 0)).reshape(9 * cin, cout)

    def tconv_w(w):   # (Cin, Cout, 2, 2) -> (Cin, 4*Cout), column order (di,dj,cout)
        cin, cout = w.shape[0], w.shape[1]
        return jnp.transpose(w, (0, 2, 3, 1)).reshape(cin, 4 * cout)

    return {
        "conv1": prep(conv_w(params["conv1_w"]), params["conv1_b"]),
        "conv2": prep(conv_w(params["conv2_w"]), params["conv2_b"]),
        "conv3": prep(conv_w(params["conv3_w"]), params["conv3_b"]),
        "dense": prep(params["dense_w"], params["dense_b"]),
        "dense2": prep(params["dense2_w"], params["dense2_b"]),
        "tconv1": prep(tconv_w(params["tconv1_w"]), jnp.tile(params["tconv1_b"], 4)),
        "tconv2": prep(tconv_w(params["tconv2_w"]), jnp.tile(params["tconv2_b"], 4)),
        "tconv3": prep(tconv_w(params["tconv3_w"]), jnp.tile(params["tconv3_b"], 4)),
    }


# ----------------------------------------------------------------------------
# Deterministic parameter init (PyTorch-style U(-1/sqrt(fan_in), 1/sqrt(fan_in)))
# ----------------------------------------------------------------------------
def init_params(key, h8, w8):
    c = 128
    d_in = c * h8 * w8      # original module: 65*35*128
    d_lat = h8 * w8         # original module: 65*35

    def u(k, shape, fan_in):
        bound = 1.0 / math.sqrt(fan_in)
        return jax.random.uniform(k, shape, jnp.float32, -bound, bound)

    ks = jax.random.split(key, 16)
    return {
        "conv1_w": u(ks[0], (32, 3, 3, 3), 3 * 9),
        "conv1_b": u(ks[1], (32,), 3 * 9),
        "conv2_w": u(ks[2], (64, 32, 3, 3), 32 * 9),
        "conv2_b": u(ks[3], (64,), 32 * 9),
        "conv3_w": u(ks[4], (128, 64, 3, 3), 64 * 9),
        "conv3_b": u(ks[5], (128,), 64 * 9),
        "dense_w": u(ks[6], (d_in, d_lat), d_in),
        "dense_b": u(ks[7], (d_lat,), d_in),
        "dense2_w": u(ks[8], (d_lat, d_in), d_lat),
        "dense2_b": u(ks[9], (d_in,), d_lat),
        "tconv1_w": u(ks[10], (128, 64, 2, 2), 128 * 4),
        "tconv1_b": u(ks[11], (64,), 128 * 4),
        "tconv2_w": u(ks[12], (64, 32, 2, 2), 64 * 4),
        "tconv2_b": u(ks[13], (32,), 64 * 4),
        "tconv3_w": u(ks[14], (32, 3, 2, 2), 32 * 4),
        "tconv3_b": u(ks[15], (3,), 32 * 4),
    }


# ----------------------------------------------------------------------------
# Pure-JAX reference (bf16 operands / f32 accumulation, to match MXU numerics)
# ----------------------------------------------------------------------------
def reference_forward(params, x, h8, w8):
    bf16, f32 = jnp.bfloat16, jnp.float32

    def conv(x, w, b):
        y = jax.lax.conv_general_dilated(
            x.astype(bf16), w.astype(bf16), (1, 1), "SAME",
            dimension_numbers=("NCHW", "OIHW", "NCHW"),
            preferred_element_type=f32)
        return jax.nn.relu(y + b[None, :, None, None])

    def pool(x):
        return jax.lax.reduce_window(
            x, -jnp.inf, jax.lax.max, (1, 1, 2, 2), (1, 1, 2, 2), "VALID")

    def dense(x, w, b):
        return jnp.dot(x.astype(bf16), w.astype(bf16),
                       preferred_element_type=f32) + b

    def tconv(x, w, b):
        t = jnp.einsum("ncij,cokl->noikjl", x.astype(bf16), w.astype(bf16),
                       preferred_element_type=f32)
        n, co, hh, _, ww, _ = t.shape
        return t.reshape(n, co, 2 * hh, 2 * ww) + b[None, :, None, None]

    x = pool(conv(x, params["conv1_w"], params["conv1_b"]))
    x = pool(conv(x, params["conv2_w"], params["conv2_b"]))
    x = pool(conv(x, params["conv3_w"], params["conv3_b"]))
    n = x.shape[0]
    flat = x.reshape(n, -1)
    z = jax.nn.relu(dense(flat, params["dense_w"], params["dense_b"]))
    y = jax.nn.relu(dense(z, params["dense2_w"], params["dense2_b"]))
    y = y.reshape(n, 128, h8, w8)
    y = jax.nn.relu(tconv(y, params["tconv1_w"], params["tconv1_b"]))
    y = jax.nn.relu(tconv(y, params["tconv2_w"], params["tconv2_b"]))
    y = jax.nn.sigmoid(tconv(y, params["tconv3_w"], params["tconv3_b"]))
    return y


# ----------------------------------------------------------------------------
if __name__ == "__main__":
    key = jax.random.PRNGKey(0)
    kx, kpar = jax.random.split(key)

    # Small shapes consistent with the module (original: N x 3 x 280 x 520).
    N, H, W = 2, 16, 16
    x = jax.random.uniform(kx, (N, 3, H, W), jnp.float32)
    params = init_params(kpar, H // 8, W // 8)
    prep = prepare_params(params)          # one-time, outside jit

    fwd = jax.jit(conv_autoencoder_forward)
    out = jax.block_until_ready(fwd(prep, x))

    assert out.shape == (N, 3, H, W), out.shape
    assert bool(jnp.all(jnp.isfinite(out)))

    ref = reference_forward(params, x, H // 8, W // 8)
    if not bool(jnp.allclose(out, ref, atol=5e-3, rtol=5e-3)):
        raise AssertionError(
            f"Pallas output mismatch, max abs err = "
            f"{float(jnp.max(jnp.abs(out - ref)))}"
        )

    print("KERNEL_OK")
</pallas_src>

<mosaic_0001>
module attributes {stable_mosaic.version = 11 : i64} {
  func.func @_fused_matmul_kernel(%arg0: i32, %arg1: i32, %arg2: i32, %arg3: memref<128x128xbf16, #tpu.memory_space<vmem>>, %arg4: memref<128x128xbf16, #tpu.memory_space<vmem>>, %arg5: memref<128x128xbf16, #tpu.memory_space<vmem>>, %arg6: memref<128x128xbf16, #tpu.memory_space<vmem>>, %arg7: memref<128x128xbf16, #tpu.memory_space<vmem>>, %arg8: memref<1x128xf32, #tpu.memory_space<vmem>>, %arg9: memref<128x128xbf16, #tpu.memory_space<vmem>>, %arg10: memref<128x128xf32, #tpu.memory_space<vmem>>, %arg11: memref<128x128xf32, #tpu.memory_space<vmem>>, %arg12: memref<128x128xf32, #tpu.memory_space<vmem>>, %arg13: memref<128x128xf32, #tpu.memory_space<vmem>>) attributes {dimension_semantics = [#tpu.dimension_semantics<parallel>, #tpu.dimension_semantics<parallel>, #tpu.dimension_semantics<arbitrary>], iteration_bounds = array<i64: 1, 1, 1>, scalar_prefetch = 0 : i64, scratch_operands = 4 : i64, tpu.core_type = #tpu.core_type<tc>, window_params = [{transform_indices = @transform_0, window_bounds = array<i64: 128, 128>}, {transform_indices = @transform_1, window_bounds = array<i64: 128, 128>}, {transform_indices = @transform_2, window_bounds = array<i64: 128, 128>}, {transform_indices = @transform_3, window_bounds = array<i64: 128, 128>}, {transform_indices = @transform_4, window_bounds = array<i64: 128, 128>}, {transform_indices = @transform_5, window_bounds = array<i64: 1, 128>}, {transform_indices = @transform_6, window_bounds = array<i64: 128, 128>}]} {
    %c0_i32 = arith.constant 0 : i32
    %0 = arith.cmpi eq, %arg2, %c0_i32 : i32
    %1 = arith.extui %0 : i1 to i32
    %c0_i32_0 = arith.constant 0 : i32
    %2 = arith.cmpi ne, %1, %c0_i32_0 : i32
    scf.if %2 {
      %cst_37 = arith.constant 0.000000e+00 : f32
      %30 = vector.broadcast %cst_37 : f32 to vector<128x128xf32>
      %c0_38 = arith.constant 0 : index
      %c0_39 = arith.constant 0 : index
      %31 = vector.load %arg10[%c0_38, %c0_39] : memref<128x128xf32, #tpu.memory_space<vmem>>, vector<128x128xf32>
      tpu.vector_store %arg10[%c0_38, %c0_39], %30 {strides = array<i32>} : memref<128x128xf32, #tpu.memory_space<vmem>>, vector<128x128xf32>,
      %cst_40 = arith.constant 0.000000e+00 : f32
      %32 = vector.broadcast %cst_40 : f32 to vector<128x128xf32>
      %c0_41 = arith.constant 0 : index
      %c0_42 = arith.constant 0 : index
      %33 = vector.load %arg11[%c0_41, %c0_42] : memref<128x128xf32, #tpu.memory_space<vmem>>, vector<128x128xf32>
      tpu.vector_store %arg11[%c0_41, %c0_42], %32 {strides = array<i32>} : memref<128x128xf32, #tpu.memory_space<vmem>>, vector<128x128xf32>,
      %cst_43 = arith.constant 0.000000e+00 : f32
      %34 = vector.broadcast %cst_43 : f32 to vector<128x128xf32>
      %c0_44 = arith.constant 0 : index
      %c0_45 = arith.constant 0 : index
      %35 = vector.load %arg12[%c0_44, %c0_45] : memref<128x128xf32, #tpu.memory_space<vmem>>, vector<128x128xf32>
      tpu.vector_store %arg12[%c0_44, %c0_45], %34 {strides = array<i32>} : memref<128x128xf32, #tpu.memory_space<vmem>>, vector<128x128xf32>,
      %cst_46 = arith.constant 0.000000e+00 : f32
      %36 = vector.broadcast %cst_46 : f32 to vector<128x128xf32>
      %c0_47 = arith.constant 0 : index
      %c0_48 = arith.constant 0 : index
      %37 = vector.load %arg13[%c0_47, %c0_48] : memref<128x128xf32, #tpu.memory_space<vmem>>, vector<128x128xf32>
      tpu.vector_store %arg13[%c0_47, %c0_48], %36 {strides = array<i32>} : memref<128x128xf32, #tpu.memory_space<vmem>>, vector<128x128xf32>,
    } else {
    }
    %c0 = arith.constant 0 : index
    %c0_1 = arith.constant 0 : index
    %3 = vector.load %arg10[%c0, %c0_1] : memref<128x128xf32, #tpu.memory_space<vmem>>, vector<128x128xf32>
    %c0_2 = arith.constant 0 : index
    %c0_3 = arith.constant 0 : index
    %4 = vector.load %arg3[%c0_2, %c0_3] : memref<128x128xbf16, #tpu.memory_space<vmem>>, vector<128x128xbf16>
    %c0_4 = arith.constant 0 : index
    %c0_5 = arith.constant 0 : index
    %5 = vector.load %arg7[%c0_4, %c0_5] : memref<128x128xbf16, #tpu.memory_space<vmem>>, vector<128x128xbf16>
    %cst = arith.constant dense<0.000000e+00> : vector<128x128xf32>
    %6 = tpu.matmul %4, %5, %cst {dimension_numbers = #tpu.dot_dimension_numbers<[1], [0], [0], [1], [0, 0, 1, 1], [], []>} : vector<128x128xbf16>, vector<128x128xbf16>, vector<128x128xf32> -> vector<128x128xf32>
    %7 = arith.addf %3, %6 : vector<128x128xf32>
    %c0_6 = arith.constant 0 : index
    %c0_7 = arith.constant 0 : index
    %8 = vector.load %arg10[%c0_6, %c0_7] : memref<128x128xf32, #tpu.memory_space<vmem>>, vector<128x128xf32>
    tpu.vector_store %arg10[%c0_6, %c0_7], %7 {strides = array<i32>} : memref<128x128xf32, #tpu.memory_space<vmem>>, vector<128x128xf32>,
    %c0_8 = arith.constant 0 : index
    %c0_9 = arith.constant 0 : index
    %9 = vector.load %arg11[%c0_8, %c0_9] : memref<128x128xf32, #tpu.memory_space<vmem>>, vector<128x128xf32>
    %c0_10 = arith.constant 0 : index
    %c0_11 = arith.constant 0 : index
    %10 = vector.load %arg4[%c0_10, %c0_11] : memref<128x128xbf16, #tpu.memory_space<vmem>>, vector<128x128xbf16>
    %c0_12 = arith.constant 0 : index
    %c0_13 = arith.constant 0 : index
    %11 = vector.load %arg7[%c0_12, %c0_13] : memref<128x128xbf16, #tpu.memory_space<vmem>>, vector<128x128xbf16>
    %cst_14 = arith.constant dense<0.000000e+00> : vector<128x128xf32>
    %12 = tpu.matmul %10, %11, %cst_14 {dimension_numbers = #tpu.dot_dimension_numbers<[1], [0], [0], [1], [0, 0, 1, 1], [], []>} : vector<128x128xbf16>, vector<128x128xbf16>, vector<128x128xf32> -> vector<128x128xf32>
    %13 = arith.addf %9, %12 : vector<128x128xf32>
    %c0_15 = arith.constant 0 : index
    %c0_16 = arith.constant 0 : index
    %14 = vector.load %arg11[%c0_15, %c0_16] : memref<128x128xf32, #tpu.memory_space<vmem>>, vector<128x128xf32>
    tpu.vector_store %arg11[%c0_15, %c0_16], %13 {strides = array<i32>} : memref<128x128xf32, #tpu.memory_space<vmem>>, vector<128x128xf32>,
    %c0_17 = arith.constant 0 : index
    %c0_18 = arith.constant 0 : index
    %15 = vector.load %arg12[%c0_17, %c0_18] : memref<128x128xf32, #tpu.memory_space<vmem>>, vector<128x128xf32>
    %c0_19 = arith.constant 0 : index
    %c0_20 = arith.constant 0 : index
    %16 = vector.load %arg5[%c0_19, %c0_20] : memref<128x128xbf16, #tpu.memory_space<vmem>>, vector<128x128xbf16>
    %c0_21 = arith.constant 0 : index
    %c0_22 = arith.constant 0 : index
    %17 = vector.load %arg7[%c0_21, %c0_22] : memref<128x128xbf16, #tpu.memory_space<vmem>>, vector<128x128xbf16>
    %cst_23 = arith.constant dense<0.000000e+00> : vector<128x128xf32>
    %18 = tpu.matmul %16, %17, %cst_23 {dimension_numbers = #tpu.dot_dimension_numbers<[1], [0], [0], [1], [0, 0, 1, 1], [], []>} : vector<128x128xbf16>, vector<128x128xbf16>, vector<128x128xf32> -> vector<128x128xf32>
    %19 = arith.addf %15, %18 : vector<128x128xf32>
    %c0_24 = arith.constant 0 : index
    %c0_25 = arith.constant 0 : index
    %20 = vector.load %arg12[%c0_24, %c0_25] : memref<128x128xf32, #tpu.memory_space<vmem>>, vector<128x128xf32>
    tpu.vector_store %arg12[%c0_24, %c0_25], %19 {strides = array<i32>} : memref<128x128xf32, #tpu.memory_space<vmem>>, vector<128x128xf32>,
    %c0_26 = arith.constant 0 : index
    %c0_27 = arith.constant 0 : index
    %21 = vector.load %arg13[%c0_26, %c0_27] : memref<128x128xf32, #tpu.memory_space<vmem>>, vector<128x128xf32>
    %c0_28 = arith.constant 0 : index
    %c0_29 = arith.constant 0 : index
    %22 = vector.load %arg6[%c0_28, %c0_29] : memref<128x128xbf16, #tpu.memory_space<vmem>>, vector<128x128xbf16>
    %c0_30 = arith.constant 0 : index
    %c0_31 = arith.constant 0 : index
    %23 = vector.load %arg7[%c0_30, %c0_31] : memref<128x128xbf16, #tpu.memory_space<vmem>>, vector<128x128xbf16>
    %cst_32 = arith.constant dense<0.000000e+00> : vector<128x128xf32>
    %24 = tpu.matmul %22, %23, %cst_32 {dimension_numbers = #tpu.dot_dimension_numbers<[1], [0], [0], [1], [0, 0, 1, 1], [], []>} : vector<128x128xbf16>, vector<128x128xbf16>, vector<128x128xf32> -> vector<128x128xf32>
    %25 = arith.addf %21, %24 : vector<128x128xf32>
    %c0_33 = arith.constant 0 : index
    %c0_34 = arith.constant 0 : index
    %26 = vector.load %arg13[%c0_33, %c0_34] : memref<128x128xf32, #tpu.memory_space<vmem>>, vector<128x128xf32>
    tpu.vector_store %arg13[%c0_33, %c0_34], %25 {strides = array<i32>} : memref<128x128xf32, #tpu.memory_space<vmem>>, vector<128x128xf32>,
    %c0_i32_35 = arith.constant 0 : i32
    %27 = arith.cmpi eq, %arg2, %c0_i32_35 : i32
    %28 = arith.extui %27 : i1 to i32
    %c0_i32_36 = arith.constant 0 : i32
    %29 = arith.cmpi ne, %28, %c0_i32_36 : i32
    scf.if %29 {
      %c0_37 = arith.constant 0 : index
      %c0_38 = arith.constant 0 : index
      %30 = vector.load %arg10[%c0_37, %c0_38] : memref<128x128xf32, #tpu.memory_space<vmem>>, vector<128x128xf32>
      %c0_39 = arith.constant 0 : index
      %c0_40 = arith.constant 0 : index
      %31 = vector.load %arg11[%c0_39, %c0_40] : memref<128x128xf32, #tpu.memory_space<vmem>>, vector<128x128xf32>
      %32 = arith.maximumf %30, %31 : vector<128x128xf32>
      %c0_41 = arith.constant 0 : index
      %c0_42 = arith.constant 0 : index
      %33 = vector.load %arg12[%c0_41, %c0_42] : memref<128x128xf32, #tpu.memory_space<vmem>>, vector<128x128xf32>
      %34 = arith.maximumf %32, %33 : vector<128x128xf32>
      %c0_43 = arith.constant 0 : index
      %c0_44 = arith.constant 0 : index
      %35 = vector.load %arg13[%c0_43, %c0_44] : memref<128x128xf32, #tpu.memory_space<vmem>>, vector<128x128xf32>
      %36 = arith.maximumf %34, %35 : vector<128x128xf32>
      %c0_45 = arith.constant 0 : index
      %c0_46 = arith.constant 0 : index
      %37 = vector.load %arg8[%c0_45, %c0_46] : memref<1x128xf32, #tpu.memory_space<vmem>>, vector<1x128xf32>
      %38 = vector.broadcast %37 : vector<1x128xf32> to vector<128x128xf32>
      %39 = arith.addf %36, %38 : vector<128x128xf32>
      %cst_47 = arith.constant 0.000000e+00 : f32
      %40 = vector.broadcast %cst_47 : f32 to vector<128x128xf32>
      %41 = arith.maximumf %39, %40 : vector<128x128xf32>
      %42 = arith.truncf %41 : vector<128x128xf32> to vector<128x128xbf16>
      %c0_48 = arith.constant 0 : index
      %c0_49 = arith.constant 0 : index
      %43 = vector.load %arg9[%c0_48, %c0_49] : memref<128x128xbf16, #tpu.memory_space<vmem>>, vector<128x128xbf16>
      tpu.vector_store %arg9[%c0_48, %c0_49], %42 {strides = array<i32>} : memref<128x128xbf16, #tpu.memory_space<vmem>>, vector<128x128xbf16>,
    } else {
    }
    return
  }
  func.func @transform_0(%arg0: i32, %arg1: i32, %arg2: i32) -> (i32, i32) {
    %c0_i32 = arith.constant 0 : i32
    return %arg0, %arg2 : i32, i32
  }
  func.func @transform_1(%arg0: i32, %arg1: i32, %arg2: i32) -> (i32, i32) {
    %c0_i32 = arith.constant 0 : i32
    return %arg0, %arg2 : i32, i32
  }
  func.func @transform_2(%arg0: i32, %arg1: i32, %arg2: i32) -> (i32, i32) {
    %c0_i32 = arith.constant 0 : i32
    return %arg0, %arg2 : i32, i32
  }
  func.func @transform_3(%arg0: i32, %arg1: i32, %arg2: i32) -> (i32, i32) {
    %c0_i32 = arith.constant 0 : i32
    return %arg0, %arg2 : i32, i32
  }
  func.func @transform_4(%arg0: i32, %arg1: i32, %arg2: i32) -> (i32, i32) {
    %c0_i32 = arith.constant 0 : i32
    return %arg2, %arg1 : i32, i32
  }
  func.func @transform_5(%arg0: i32, %arg1: i32, %arg2: i32) -> (i32, i32) {
    %c0_i32 = arith.constant 0 : i32
    %c0_i32_0 = arith.constant 0 : i32
    return %c0_i32, %arg1 : i32, i32
  }
  func.func @transform_6(%arg0: i32, %arg1: i32, %arg2: i32) -> (i32, i32) {
    %c0_i32 = arith.constant 0 : i32
    return %arg0, %arg1 : i32, i32
  }
}

module attributes {stable_mosaic.version = 11 : i64} {
  func.func @_fused_matmul_kernel(%arg0: i32, %arg1: i32, %arg2: i32, %arg3: memref<32x384xbf16, #tpu.memory_space<vmem>>, %arg4: memref<32x384xbf16, #tpu.memory_space<vmem>>, %arg5: memref<32x384xbf16, #tpu.memory_space<vmem>>, %arg6: memref<32x384xbf16, #tpu.memory_space<vmem>>, %arg7: memref<384x128xbf16, #tpu.memory_space<vmem>>, %arg8: memref<1x128xf32, #tpu.memory_space<vmem>>, %arg9: memref<32x128xbf16, #tpu.memory_space<vmem>>, %arg10: memref<32x128xf32, #tpu.memory_space<vmem>>, %arg11: memref<32x128xf32, #tpu.memory_space<vmem>>, %arg12: memref<32x128xf32, #tpu.memory_space<vmem>>, %arg13: memref<32x128xf32, #tpu.memory_space<vmem>>) attributes {dimension_semantics = [#tpu.dimension_semantics<parallel>, #tpu.dimension_semantics<parallel>, #tpu.dimension_semantics<arbitrary>], iteration_bounds = array<i64: 1, 1, 1>, scalar_prefetch = 0 : i64, scratch_operands = 4 : i64, tpu.core_type = #tpu.core_type<tc>, window_params = [{transform_indices = @transform_0, window_bounds = array<i64: 32, 384>}, {transform_indices = @transform_1, window_bounds = array<i64: 32, 384>}, {transform_indices = @transform_2, window_bounds = array<i64: 32, 384>}, {transform_indices = @transform_3, window_bounds = array<i64: 32, 384>}, {transform_indices = @transform_4, window_bounds = array<i64: 384, 128>}, {transform_indices = @transform_5, window_bounds = array<i64: 1, 128>}, {transform_indices = @transform_6, window_bounds = array<i64: 32, 128>}]} {
    %c0_i32 = arith.constant 0 : i32
    %0 = arith.cmpi eq, %arg2, %c0_i32 : i32
    %1 = arith.extui %0 : i1 to i32
    %c0_i32_0 = arith.constant 0 : i32
    %2 = arith.cmpi ne, %1, %c0_i32_0 : i32
    scf.if %2 {
      %cst_37 = arith.constant 0.000000e+00 : f32
      %30 = vector.broadcast %cst_37 : f32 to vector<32x128xf32>
      %c0_38 = arith.constant 0 : index
      %c0_39 = arith.constant 0 : index
      %31 = vector.load %arg10[%c0_38, %c0_39] : memref<32x128xf32, #tpu.memory_space<vmem>>, vector<32x128xf32>
      tpu.vector_store %arg10[%c0_38, %c0_39], %30 {strides = array<i32>} : memref<32x128xf32, #tpu.memory_space<vmem>>, vector<32x128xf32>,
      %cst_40 = arith.constant 0.000000e+00 : f32
      %32 = vector.broadcast %cst_40 : f32 to vector<32x128xf32>
      %c0_41 = arith.constant 0 : index
      %c0_42 = arith.constant 0 : index
      %33 = vector.load %arg11[%c0_41, %c0_42] : memref<32x128xf32, #tpu.memory_space<vmem>>, vector<32x128xf32>
      tpu.vector_store %arg11[%c0_41, %c0_42], %32 {strides = array<i32>} : memref<32x128xf32, #tpu.memory_space<vmem>>, vector<32x128xf32>,
      %cst_43 = arith.constant 0.000000e+00 : f32
      %34 = vector.broadcast %cst_43 : f32 to vector<32x128xf32>
      %c0_44 = arith.constant 0 : index
      %c0_45 = arith.constant 0 : index
      %35 = vector.load %arg12[%c0_44, %c0_45] : memref<32x128xf32, #tpu.memory_space<vmem>>, vector<32x128xf32>
      tpu.vector_store %arg12[%c0_44, %c0_45], %34 {strides = array<i32>} : memref<32x128xf32, #tpu.memory_space<vmem>>, vector<32x128xf32>,
      %cst_46 = arith.constant 0.000000e+00 : f32
      %36 = vector.broadcast %cst_46 : f32 to vector<32x128xf32>
      %c0_47 = arith.constant 0 : index
      %c0_48 = arith.constant 0 : index
      %37 = vector.load %arg13[%c0_47, %c0_48] : memref<32x128xf32, #tpu.memory_space<vmem>>, vector<32x128xf32>
      tpu.vector_store %arg13[%c0_47, %c0_48], %36 {strides = array<i32>} : memref<32x128xf32, #tpu.memory_space<vmem>>, vector<32x128xf32>,
    } else {
    }
    %c0 = arith.constant 0 : index
    %c0_1 = arith.constant 0 : index
    %3 = vector.load %arg10[%c0, %c0_1] : memref<32x128xf32, #tpu.memory_space<vmem>>, vector<32x128xf32>
    %c0_2 = arith.constant 0 : index
    %c0_3 = arith.constant 0 : index
    %4 = vector.load %arg3[%c0_2, %c0_3] : memref<32x384xbf16, #tpu.memory_space<vmem>>, vector<32x384xbf16>
    %c0_4 = arith.constant 0 : index
    %c0_5 = arith.constant 0 : index
    %5 = vector.load %arg7[%c0_4, %c0_5] : memref<384x128xbf16, #tpu.memory_space<vmem>>, vector<384x128xbf16>
    %cst = arith.constant dense<0.000000e+00> : vector<32x128xf32>
    %6 = tpu.matmul %4, %5, %cst {dimension_numbers = #tpu.dot_dimension_numbers<[1], [0], [0], [1], [0, 0, 1, 1], [], []>} : vector<32x384xbf16>, vector<384x128xbf16>, vector<32x128xf32> -> vector<32x128xf32>
    %7 = arith.addf %3, %6 : vector<32x128xf32>
    %c0_6 = arith.constant 0 : index
    %c0_7 = arith.constant 0 : index
    %8 = vector.load %arg10[%c0_6, %c0_7] : memref<32x128xf32, #tpu.memory_space<vmem>>, vector<32x128xf32>
    tpu.vector_store %arg10[%c0_6, %c0_7], %7 {strides = array<i32>} : memref<32x128xf32, #tpu.memory_space<vmem>>, vector<32x128xf32>,
    %c0_8 = arith.constant 0 : index
    %c0_9 = arith.constant 0 : index
    %9 = vector.load %arg11[%c0_8, %c0_9] : memref<32x128xf32, #tpu.memory_space<vmem>>, vector<32x128xf32>
    %c0_10 = arith.constant 0 : index
    %c0_11 = arith.constant 0 : index
    %10 = vector.load %arg4[%c0_10, %c0_11] : memref<32x384xbf16, #tpu.memory_space<vmem>>, vector<32x384xbf16>
    %c0_12 = arith.constant 0 : index
    %c0_13 = arith.constant 0 : index
    %11 = vector.load %arg7[%c0_12, %c0_13] : memref<384x128xbf16, #tpu.memory_space<vmem>>, vector<384x128xbf16>
    %cst_14 = arith.constant dense<0.000000e+00> : vector<32x128xf32>
    %12 = tpu.matmul %10, %11, %cst_14 {dimension_numbers = #tpu.dot_dimension_numbers<[1], [0], [0], [1], [0, 0, 1, 1], [], []>} : vector<32x384xbf16>, vector<384x128xbf16>, vector<32x128xf32> -> vector<32x128xf32>
    %13 = arith.addf %9, %12 : vector<32x128xf32>
    %c0_15 = arith.constant 0 : index
    %c0_16 = arith.constant 0 : index
    %14 = vector.load %arg11[%c0_15, %c0_16] : memref<32x128xf32, #tpu.memory_space<vmem>>, vector<32x128xf32>
    tpu.vector_store %arg11[%c0_15, %c0_16], %13 {strides = array<i32>} : memref<32x128xf32, #tpu.memory_space<vmem>>, vector<32x128xf32>,
    %c0_17 = arith.constant 0 : index
    %c0_18 = arith.constant 0 : index
    %15 = vector.load %arg12[%c0_17, %c0_18] : memref<32x128xf32, #tpu.memory_space<vmem>>, vector<32x128xf32>
    %c0_19 = arith.constant 0 : index
    %c0_20 = arith.constant 0 : index
    %16 = vector.load %arg5[%c0_19, %c0_20] : memref<32x384xbf16, #tpu.memory_space<vmem>>, vector<32x384xbf16>
    %c0_21 = arith.constant 0 : index
    %c0_22 = arith.constant 0 : index
    %17 = vector.load %arg7[%c0_21, %c0_22] : memref<384x128xbf16, #tpu.memory_space<vmem>>, vector<384x128xbf16>
    %cst_23 = arith.constant dense<0.000000e+00> : vector<32x128xf32>
    %18 = tpu.matmul %16, %17, %cst_23 {dimension_numbers = #tpu.dot_dimension_numbers<[1], [0], [0], [1], [0, 0, 1, 1], [], []>} : vector<32x384xbf16>, vector<384x128xbf16>, vector<32x128xf32> -> vector<32x128xf32>
    %19 = arith.addf %15, %18 : vector<32x128xf32>
    %c0_24 = arith.constant 0 : index
    %c0_25 = arith.constant 0 : index
    %20 = vector.load %arg12[%c0_24, %c0_25] : memref<32x128xf32, #tpu.memory_space<vmem>>, vector<32x128xf32>
    tpu.vector_store %arg12[%c0_24, %c0_25], %19 {strides = array<i32>} : memref<32x128xf32, #tpu.memory_space<vmem>>, vector<32x128xf32>,
    %c0_26 = arith.constant 0 : index
    %c0_27 = arith.constant 0 : index
    %21 = vector.load %arg13[%c0_26, %c0_27] : memref<32x128xf32, #tpu.memory_space<vmem>>, vector<32x128xf32>
    %c0_28 = arith.constant 0 : index
    %c0_29 = arith.constant 0 : index
    %22 = vector.load %arg6[%c0_28, %c0_29] : memref<32x384xbf16, #tpu.memory_space<vmem>>, vector<32x384xbf16>
    %c0_30 = arith.constant 0 : index
    %c0_31 = arith.constant 0 : index
    %23 = vector.load %arg7[%c0_30, %c0_31] : memref<384x128xbf16, #tpu.memory_space<vmem>>, vector<384x128xbf16>
    %cst_32 = arith.constant dense<0.000000e+00> : vector<32x128xf32>
    %24 = tpu.matmul %22, %23, %cst_32 {dimension_numbers = #tpu.dot_dimension_numbers<[1], [0], [0], [1], [0, 0, 1, 1], [], []>} : vector<32x384xbf16>, vector<384x128xbf16>, vector<32x128xf32> -> vector<32x128xf32>
    %25 = arith.addf %21, %24 : vector<32x128xf32>
    %c0_33 = arith.constant 0 : index
    %c0_34 = arith.constant 0 : index
    %26 = vector.load %arg13[%c0_33, %c0_34] : memref<32x128xf32, #tpu.memory_space<vmem>>, vector<32x128xf32>
    tpu.vector_store %arg13[%c0_33, %c0_34], %25 {strides = array<i32>} : memref<32x128xf32, #tpu.memory_space<vmem>>, vector<32x128xf32>,
    %c0_i32_35 = arith.constant 0 : i32
    %27 = arith.cmpi eq, %arg2, %c0_i32_35 : i32
    %28 = arith.extui %27 : i1 to i32
    %c0_i32_36 = arith.constant 0 : i32
    %29 = arith.cmpi ne, %28, %c0_i32_36 : i32
    scf.if %29 {
      %c0_37 = arith.constant 0 : index
      %c0_38 = arith.constant 0 : index
      %30 = vector.load %arg10[%c0_37, %c0_38] : memref<32x128xf32, #tpu.memory_space<vmem>>, vector<32x128xf32>
      %c0_39 = arith.constant 0 : index
      %c0_40 = arith.constant 0 : index
      %31 = vector.load %arg11[%c0_39, %c0_40] : memref<32x128xf32, #tpu.memory_space<vmem>>, vector<32x128xf32>
      %32 = arith.maximumf %30, %31 : vector<32x128xf32>
      %c0_41 = arith.constant 0 : index
      %c0_42 = arith.constant 0 : index
      %33 = vector.load %arg12[%c0_41, %c0_42] : memref<32x128xf32, #tpu.memory_space<vmem>>, vector<32x128xf32>
      %34 = arith.maximumf %32, %33 : vector<32x128xf32>
      %c0_43 = arith.constant 0 : index
      %c0_44 = arith.constant 0 : index
      %35 = vector.load %arg13[%c0_43, %c0_44] : memref<32x128xf32, #tpu.memory_space<vmem>>, vector<32x128xf32>
      %36 = arith.maximumf %34, %35 : vector<32x128xf32>
      %c0_45 = arith.constant 0 : index
      %c0_46 = arith.constant 0 : index
      %37 = vector.load %arg8[%c0_45, %c0_46] : memref<1x128xf32, #tpu.memory_space<vmem>>, vector<1x128xf32>
      %38 = vector.broadcast %37 : vector<1x128xf32> to vector<32x128xf32>
      %39 = arith.addf %36, %38 : vector<32x128xf32>
      %cst_47 = arith.constant 0.000000e+00 : f32
      %40 = vector.broadcast %cst_47 : f32 to vector<32x128xf32>
      %41 = arith.maximumf %39, %40 : vector<32x128xf32>
      %42 = arith.truncf %41 : vector<32x128xf32> to vector<32x128xbf16>
      %c0_48 = arith.constant 0 : index
      %c0_49 = arith.constant 0 : index
      %43 = vector.load %arg9[%c0_48, %c0_49] : memref<32x128xbf16, #tpu.memory_space<vmem>>, vector<32x128xbf16>
      tpu.vector_store %arg9[%c0_48, %c0_49], %42 {strides = array<i32>} : memref<32x128xbf16, #tpu.memory_space<vmem>>, vector<32x128xbf16>,
    } else {
    }
    return
  }
  func.func @transform_0(%arg0: i32, %arg1: i32, %arg2: i32) -> (i32, i32) {
    %c0_i32 = arith.constant 0 : i32
    return %arg0, %arg2 : i32, i32
  }
  func.func @transform_1(%arg0: i32, %arg1: i32, %arg2: i32) -> (i32, i32) {
    %c0_i32 = arith.constant 0 : i32
    return %arg0, %arg2 : i32, i32
  }
  func.func @transform_2(%arg0: i32, %arg1: i32, %arg2: i32) -> (i32, i32) {
    %c0_i32 = arith.constant 0 : i32
    return %arg0, %arg2 : i32, i32
  }
  func.func @transform_3(%arg0: i32, %arg1: i32, %arg2: i32) -> (i32, i32) {
    %c0_i32 = arith.constant 0 : i32
    return %arg0, %arg2 : i32, i32
  }
  func.func @transform_4(%arg0: i32, %arg1: i32, %arg2: i32) -> (i32, i32) {
    %c0_i32 = arith.constant 0 : i32
    return %arg2, %arg1 : i32, i32
  }
  func.func @transform_5(%arg0: i32, %arg1: i32, %arg2: i32) -> (i32, i32) {
    %c0_i32 = arith.constant 0 : i32
    %c0_i32_0 = arith.constant 0 : i32
    return %c0_i32, %arg1 : i32, i32
  }
  func.func @transform_6(%arg0: i32, %arg1: i32, %arg2: i32) -> (i32, i32) {
    %c0_i32 = arith.constant 0 : i32
    return %arg0, %arg1 : i32, i32
  }
}

module attributes {stable_mosaic.version = 11 : i64} {
  func.func @_fused_matmul_kernel(%arg0: i32, %arg1: i32, %arg2: i32, %arg3: memref<16x640xbf16, #tpu.memory_space<vmem>>, %arg4: memref<16x640xbf16, #tpu.memory_space<vmem>>, %arg5: memref<16x640xbf16, #tpu.memory_space<vmem>>, %arg6: memref<16x640xbf16, #tpu.memory_space<vmem>>, %arg7: memref<640x128xbf16, #tpu.memory_space<vmem>>, %arg8: memref<1x128xf32, #tpu.memory_space<vmem>>, %arg9: memref<16x128xbf16, #tpu.memory_space<vmem>>, %arg10: memref<16x128xf32, #tpu.memory_space<vmem>>, %arg11: memref<16x128xf32, #tpu.memory_space<vmem>>, %arg12: memref<16x128xf32, #tpu.memory_space<vmem>>, %arg13: memref<16x128xf32, #tpu.memory_space<vmem>>) attributes {dimension_semantics = [#tpu.dimension_semantics<parallel>, #tpu.dimension_semantics<parallel>, #tpu.dimension_semantics<arbitrary>], iteration_bounds = array<i64: 1, 1, 1>, scalar_prefetch = 0 : i64, scratch_operands = 4 : i64, tpu.core_type = #tpu.core_type<tc>, window_params = [{transform_indices = @transform_0, window_bounds = array<i64: 16, 640>}, {transform_indices = @transform_1, window_bounds = array<i64: 16, 640>}, {transform_indices = @transform_2, window_bounds = array<i64: 16, 640>}, {transform_indices = @transform_3, window_bounds = array<i64: 16, 640>}, {transform_indices = @transform_4, window_bounds = array<i64: 640, 128>}, {transform_indices = @transform_5, window_bounds = array<i64: 1, 128>}, {transform_indices = @transform_6, window_bounds = array<i64: 16, 128>}]} {
    %c0_i32 = arith.constant 0 : i32
    %0 = arith.cmpi eq, %arg2, %c0_i32 : i32
    %1 = arith.extui %0 : i1 to i32
    %c0_i32_0 = arith.constant 0 : i32
    %2 = arith.cmpi ne, %1, %c0_i32_0 : i32
    scf.if %2 {
      %cst_37 = arith.constant 0.000000e+00 : f32
      %30 = vector.broadcast %cst_37 : f32 to vector<16x128xf32>
      %c0_38 = arith.constant 0 : index
      %c0_39 = arith.constant 0 : index
      %31 = vector.load %arg10[%c0_38, %c0_39] : memref<16x128xf32, #tpu.memory_space<vmem>>, vector<16x128xf32>
      tpu.vector_store %arg10[%c0_38, %c0_39], %30 {strides = array<i32>} : memref<16x128xf32, #tpu.memory_space<vmem>>, vector<16x128xf32>,
      %cst_40 = arith.constant 0.000000e+00 : f32
      %32 = vector.broadcast %cst_40 : f32 to vector<16x128xf32>
      %c0_41 = arith.constant 0 : index
      %c0_42 = arith.constant 0 : index
      %33 = vector.load %arg11[%c0_41, %c0_42] : memref<16x128xf32, #tpu.memory_space<vmem>>, vector<16x128xf32>
      tpu.vector_store %arg11[%c0_41, %c0_42], %32 {strides = array<i32>} : memref<16x128xf32, #tpu.memory_space<vmem>>, vector<16x128xf32>,
      %cst_43 = arith.constant 0.000000e+00 : f32
      %34 = vector.broadcast %cst_43 : f32 to vector<16x128xf32>
      %c0_44 = arith.constant 0 : index
      %c0_45 = arith.constant 0 : index
      %35 = vector.load %arg12[%c0_44, %c0_45] : memref<16x128xf32, #tpu.memory_space<vmem>>, vector<16x128xf32>
      tpu.vector_store %arg12[%c0_44, %c0_45], %34 {strides = array<i32>} : memref<16x128xf32, #tpu.memory_space<vmem>>, vector<16x128xf32>,
      %cst_46 = arith.constant 0.000000e+00 : f32
      %36 = vector.broadcast %cst_46 : f32 to vector<16x128xf32>
      %c0_47 = arith.constant 0 : index
      %c0_48 = arith.constant 0 : index
      %37 = vector.load %arg13[%c0_47, %c0_48] : memref<16x128xf32, #tpu.memory_space<vmem>>, vector<16x128xf32>
      tpu.vector_store %arg13[%c0_47, %c0_48], %36 {strides = array<i32>} : memref<16x128xf32, #tpu.memory_space<vmem>>, vector<16x128xf32>,
    } else {
    }
    %c0 = arith.constant 0 : index
    %c0_1 = arith.constant 0 : index
    %3 = vector.load %arg10[%c0, %c0_1] : memref<16x128xf32, #tpu.memory_space<vmem>>, vector<16x128xf32>
    %c0_2 = arith.constant 0 : index
    %c0_3 = arith.constant 0 : index
    %4 = vector.load %arg3[%c0_2, %c0_3] : memref<16x640xbf16, #tpu.memory_space<vmem>>, vector<16x640xbf16>
    %c0_4 = arith.constant 0 : index
    %c0_5 = arith.constant 0 : index
    %5 = vector.load %arg7[%c0_4, %c0_5] : memref<640x128xbf16, #tpu.memory_space<vmem>>, vector<640x128xbf16>
    %cst = arith.constant dense<0.000000e+00> : vector<16x128xf32>
    %6 = tpu.matmul %4, %5, %cst {dimension_numbers = #tpu.dot_dimension_numbers<[1], [0], [0], [1], [0, 0, 1, 1], [], []>} : vector<16x640xbf16>, vector<640x128xbf16>, vector<16x128xf32> -> vector<16x128xf32>
    %7 = arith.addf %3, %6 : vector<16x128xf32>
    %c0_6 = arith.constant 0 : index
    %c0_7 = arith.constant 0 : index
    %8 = vector.load %arg10[%c0_6, %c0_7] : memref<16x128xf32, #tpu.memory_space<vmem>>, vector<16x128xf32>
    tpu.vector_store %arg10[%c0_6, %c0_7], %7 {strides = array<i32>} : memref<16x128xf32, #tpu.memory_space<vmem>>, vector<16x128xf32>,
    %c0_8 = arith.constant 0 : index
    %c0_9 = arith.constant 0 : index
    %9 = vector.load %arg11[%c0_8, %c0_9] : memref<16x128xf32, #tpu.memory_space<vmem>>, vector<16x128xf32>
    %c0_10 = arith.constant 0 : index
    %c0_11 = arith.constant 0 : index
    %10 = vector.load %arg4[%c0_10, %c0_11] : memref<16x640xbf16, #tpu.memory_space<vmem>>, vector<16x640xbf16>
    %c0_12 = arith.constant 0 : index
    %c0_13 = arith.constant 0 : index
    %11 = vector.load %arg7[%c0_12, %c0_13] : memref<640x128xbf16, #tpu.memory_space<vmem>>, vector<640x128xbf16>
    %cst_14 = arith.constant dense<0.000000e+00> : vector<16x128xf32>
    %12 = tpu.matmul %10, %11, %cst_14 {dimension_numbers = #tpu.dot_dimension_numbers<[1], [0], [0], [1], [0, 0, 1, 1], [], []>} : vector<16x640xbf16>, vector<640x128xbf16>, vector<16x128xf32> -> vector<16x128xf32>
    %13 = arith.addf %9, %12 : vector<16x128xf32>
    %c0_15 = arith.constant 0 : index
    %c0_16 = arith.constant 0 : index
    %14 = vector.load %arg11[%c0_15, %c0_16] : memref<16x128xf32, #tpu.memory_space<vmem>>, vector<16x128xf32>
    tpu.vector_store %arg11[%c0_15, %c0_16], %13 {strides = array<i32>} : memref<16x128xf32, #tpu.memory_space<vmem>>, vector<16x128xf32>,
    %c0_17 = arith.constant 0 : index
    %c0_18 = arith.constant 0 : index
    %15 = vector.load %arg12[%c0_17, %c0_18] : memref<16x128xf32, #tpu.memory_space<vmem>>, vector<16x128xf32>
    %c0_19 = arith.constant 0 : index
    %c0_20 = arith.constant 0 : index
    %16 = vector.load %arg5[%c0_19, %c0_20] : memref<16x640xbf16, #tpu.memory_space<vmem>>, vector<16x640xbf16>
    %c0_21 = arith.constant 0 : index
    %c0_22 = arith.constant 0 : index
    %17 = vector.load %arg7[%c0_21, %c0_22] : memref<640x128xbf16, #tpu.memory_space<vmem>>, vector<640x128xbf16>
    %cst_23 = arith.constant dense<0.000000e+00> : vector<16x128xf32>
    %18 = tpu.matmul %16, %17, %cst_23 {dimension_numbers = #tpu.dot_dimension_numbers<[1], [0], [0], [1], [0, 0, 1, 1], [], []>} : vector<16x640xbf16>, vector<640x128xbf16>, vector<16x128xf32> -> vector<16x128xf32>
    %19 = arith.addf %15, %18 : vector<16x128xf32>
    %c0_24 = arith.constant 0 : index
    %c0_25 = arith.constant 0 : index
    %20 = vector.load %arg12[%c0_24, %c0_25] : memref<16x128xf32, #tpu.memory_space<vmem>>, vector<16x128xf32>
    tpu.vector_store %arg12[%c0_24, %c0_25], %19 {strides = array<i32>} : memref<16x128xf32, #tpu.memory_space<vmem>>, vector<16x128xf32>,
    %c0_26 = arith.constant 0 : index
    %c0_27 = arith.constant 0 : index
    %21 = vector.load %arg13[%c0_26, %c0_27] : memref<16x128xf32, #tpu.memory_space<vmem>>, vector<16x128xf32>
    %c0_28 = arith.constant 0 : index
    %c0_29 = arith.constant 0 : index
    %22 = vector.load %arg6[%c0_28, %c0_29] : memref<16x640xbf16, #tpu.memory_space<vmem>>, vector<16x640xbf16>
    %c0_30 = arith.constant 0 : index
    %c0_31 = arith.constant 0 : index
    %23 = vector.load %arg7[%c0_30, %c0_31] : memref<640x128xbf16, #tpu.memory_space<vmem>>, vector<640x128xbf16>
    %cst_32 = arith.constant dense<0.000000e+00> : vector<16x128xf32>
    %24 = tpu.matmul %22, %23, %cst_32 {dimension_numbers = #tpu.dot_dimension_numbers<[1], [0], [0], [1], [0, 0, 1, 1], [], []>} : vector<16x640xbf16>, vector<640x128xbf16>, vector<16x128xf32> -> vector<16x128xf32>
    %25 = arith.addf %21, %24 : vector<16x128xf32>
    %c0_33 = arith.constant 0 : index
    %c0_34 = arith.constant 0 : index
    %26 = vector.load %arg13[%c0_33, %c0_34] : memref<16x128xf32, #tpu.memory_space<vmem>>, vector<16x128xf32>
    tpu.vector_store %arg13[%c0_33, %c0_34], %25 {strides = array<i32>} : memref<16x128xf32, #tpu.memory_space<vmem>>, vector<16x128xf32>,
    %c0_i32_35 = arith.constant 0 : i32
    %27 = arith.cmpi eq, %arg2, %c0_i32_35 : i32
    %28 = arith.extui %27 : i1 to i32
    %c0_i32_36 = arith.constant 0 : i32
    %29 = arith.cmpi ne, %28, %c0_i32_36 : i32
    scf.if %29 {
      %c0_37 = arith.constant 0 : index
      %c0_38 = arith.constant 0 : index
      %30 = vector.load %arg10[%c0_37, %c0_38] : memref<16x128xf32, #tpu.memory_space<vmem>>, vector<16x128xf32>
      %c0_39 = arith.constant 0 : index
      %c0_40 = arith.constant 0 : index
      %31 = vector.load %arg11[%c0_39, %c0_40] : memref<16x128xf32, #tpu.memory_space<vmem>>, vector<16x128xf32>
      %32 = arith.maximumf %30, %31 : vector<16x128xf32>
      %c0_41 = arith.constant 0 : index
      %c0_42 = arith.constant 0 : index
      %33 = vector.load %arg12[%c0_41, %c0_42] : memref<16x128xf32, #tpu.memory_space<vmem>>, vector<16x128xf32>
      %34 = arith.maximumf %32, %33 : vector<16x128xf32>
      %c0_43 = arith.constant 0 : index
      %c0_44 = arith.constant 0 : index
      %35 = vector.load %arg13[%c0_43, %c0_44] : memref<16x128xf32, #tpu.memory_space<vmem>>, vector<16x128xf32>
      %36 = arith.maximumf %34, %35 : vector<16x128xf32>
      %c0_45 = arith.constant 0 : index
      %c0_46 = arith.constant 0 : index
      %37 = vector.load %arg8[%c0_45, %c0_46] : memref<1x128xf32, #tpu.memory_space<vmem>>, vector<1x128xf32>
      %38 = vector.broadcast %37 : vector<1x128xf32> to vector<16x128xf32>
      %39 = arith.addf %36, %38 : vector<16x128xf32>
      %cst_47 = arith.constant 0.000000e+00 : f32
      %40 = vector.broadcast %cst_47 : f32 to vector<16x128xf32>
      %41 = arith.maximumf %39, %40 : vector<16x128xf32>
      %42 = arith.truncf %41 : vector<16x128xf32> to vector<16x128xbf16>
      %c0_48 = arith.constant 0 : index
      %c0_49 = arith.constant 0 : index
      %43 = vector.load %arg9[%c0_48, %c0_49] : memref<16x128xbf16, #tpu.memory_space<vmem>>, vector<16x128xbf16>
      tpu.vector_store %arg9[%c0_48, %c0_49], %42 {strides = array<i32>} : memref<16x128xbf16, #tpu.memory_space<vmem>>, vector<16x128xbf16>,
    } else {
    }
    return
  }
  func.func @transform_0(%arg0: i32, %arg1: i32, %arg2: i32) -> (i32, i32) {
    %c0_i32 = arith.constant 0 : i32
    return %arg0, %arg2 : i32, i32
  }
  func.func @transform_1(%arg0: i32, %arg1: i32, %arg2: i32) -> (i32, i32) {
    %c0_i32 = arith.constant 0 : i32
    return %arg0, %arg2 : i32, i32
  }
  func.func @transform_2(%arg0: i32, %arg1: i32, %arg2: i32) -> (i32, i32) {
    %c0_i32 = arith.constant 0 : i32
    return %arg0, %arg2 : i32, i32
  }
  func.func @transform_3(%arg0: i32, %arg1: i32, %arg2: i32) -> (i32, i32) {
    %c0_i32 = arith.constant 0 : i32
    return %arg0, %arg2 : i32, i32
  }
  func.func @transform_4(%arg0: i32, %arg1: i32, %arg2: i32) -> (i32, i32) {
    %c0_i32 = arith.constant 0 : i32
    return %arg2, %arg1 : i32, i32
  }
  func.func @transform_5(%arg0: i32, %arg1: i32, %arg2: i32) -> (i32, i32) {
    %c0_i32 = arith.constant 0 : i32
    %c0_i32_0 = arith.constant 0 : i32
    return %c0_i32, %arg1 : i32, i32
  }
  func.func @transform_6(%arg0: i32, %arg1: i32, %arg2: i32) -> (i32, i32) {
    %c0_i32 = arith.constant 0 : i32
    return %arg0, %arg1 : i32, i32
  }
}

module attributes {stable_mosaic.version = 11 : i64} {
  func.func @_fused_matmul_kernel(%arg0: i32, %arg1: i32, %arg2: i32, %arg3: memref<16x512xbf16, #tpu.memory_space<vmem>>, %arg4: memref<512x128xbf16, #tpu.memory_space<vmem>>, %arg5: memref<1x128xf32, #tpu.memory_space<vmem>>, %arg6: memref<16x128xbf16, #tpu.memory_space<vmem>>, %arg7: memref<16x128xf32, #tpu.memory_space<vmem>>) attributes {dimension_semantics = [#tpu.dimension_semantics<parallel>, #tpu.dimension_semantics<parallel>, #tpu.dimension_semantics<arbitrary>], iteration_bounds = array<i64: 1, 1, 1>, scalar_prefetch = 0 : i64, scratch_operands = 1 : i64, tpu.core_type = #tpu.core_type<tc>, window_params = [{transform_indices = @transform_0, window_bounds = array<i64: 16, 512>}, {transform_indices = @transform_1, window_bounds = array<i64: 512, 128>}, {transform_indices = @transform_2, window_bounds = array<i64: 1, 128>}, {transform_indices = @transform_3, window_bounds = array<i64: 16, 128>}]} {
    %c0_i32 = arith.constant 0 : i32
    %0 = arith.cmpi eq, %arg2, %c0_i32 : i32
    %1 = arith.extui %0 : i1 to i32
    %c0_i32_0 = arith.constant 0 : i32
    %2 = arith.cmpi ne, %1, %c0_i32_0 : i32
    scf.if %2 {
      %cst_10 = arith.constant 0.000000e+00 : f32
      %12 = vector.broadcast %cst_10 : f32 to vector<16x128xf32>
      %c0_11 = arith.constant 0 : index
      %c0_12 = arith.constant 0 : index
      %13 = vector.load %arg7[%c0_11, %c0_12] : memref<16x128xf32, #tpu.memory_space<vmem>>, vector<16x128xf32>
      tpu.vector_store %arg7[%c0_11, %c0_12], %12 {strides = array<i32>} : memref<16x128xf32, #tpu.memory_space<vmem>>, vector<16x128xf32>,
    } else {
    }
    %c0 = arith.constant 0 : index
    %c0_1 = arith.constant 0 : index
    %3 = vector.load %arg7[%c0, %c0_1] : memref<16x128xf32, #tpu.memory_space<vmem>>, vector<16x128xf32>
    %c0_2 = arith.constant 0 : index
    %c0_3 = arith.constant 0 : index
    %4 = vector.load %arg3[%c0_2, %c0_3] : memref<16x512xbf16, #tpu.memory_space<vmem>>, vector<16x512xbf16>
    %c0_4 = arith.constant 0 : index
    %c0_5 = arith.constant 0 : index
    %5 = vector.load %arg4[%c0_4, %c0_5] : memref<512x128xbf16, #tpu.memory_space<vmem>>, vector<512x128xbf16>
    %cst = arith.constant dense<0.000000e+00> : vector<16x128xf32>
    %6 = tpu.matmul %4, %5, %cst {dimension_numbers = #tpu.dot_dimension_numbers<[1], [0], [0], [1], [0, 0, 1, 1], [], []>} : vector<16x512xbf16>, vector<512x128xbf16>, vector<16x128xf32> -> vector<16x128xf32>
    %7 = arith.addf %3, %6 : vector<16x128xf32>
    %c0_6 = arith.constant 0 : index
    %c0_7 = arith.constant 0 : index
    %8 = vector.load %arg7[%c0_6, %c0_7] : memref<16x128xf32, #tpu.memory_space<vmem>>, vector<16x128xf32>
    tpu.vector_store %arg7[%c0_6, %c0_7], %7 {strides = array<i32>} : memref<16x128xf32, #tpu.memory_space<vmem>>, vector<16x128xf32>,
    %c0_i32_8 = arith.constant 0 : i32
    %9 = arith.cmpi eq, %arg2, %c0_i32_8 : i32
    %10 = arith.extui %9 : i1 to i32
    %c0_i32_9 = arith.constant 0 : i32
    %11 = arith.cmpi ne, %10, %c0_i32_9 : i32
    scf.if %11 {
      %c0_10 = arith.constant 0 : index
      %c0_11 = arith.constant 0 : index
      %12 = vector.load %arg7[%c0_10, %c0_11] : memref<16x128xf32, #tpu.memory_space<vmem>>, vector<16x128xf32>
      %c0_12 = arith.constant 0 : index
      %c0_13 = arith.constant 0 : index
      %13 = vector.load %arg5[%c0_12, %c0_13] : memref<1x128xf32, #tpu.memory_space<vmem>>, vector<1x128xf32>
      %14 = vector.broadcast %13 : vector<1x128xf32> to vector<16x128xf32>
      %15 = arith.addf %12, %14 : vector<16x128xf32>
      %cst_14 = arith.constant 0.000000e+00 : f32
      %16 = vector.broadcast %cst_14 : f32 to vector<16x128xf32>
      %17 = arith.maximumf %15, %16 : vector<16x128xf32>
      %18 = arith.truncf %17 : vector<16x128xf32> to vector<16x128xbf16>
      %c0_15 = arith.constant 0 : index
      %c0_16 = arith.constant 0 : index
      %19 = vector.load %arg6[%c0_15, %c0_16] : memref<16x128xbf16, #tpu.memory_space<vmem>>, vector<16x128xbf16>
      tpu.vector_store %arg6[%c0_15, %c0_16], %18 {strides = array<i32>} : memref<16x128xbf16, #tpu.memory_space<vmem>>, vector<16x128xbf16>,
    } else {
    }
    return
  }
  func.func @transform_0(%arg0: i32, %arg1: i32, %arg2: i32) -> (i32, i32) {
    %c0_i32 = arith.constant 0 : i32
    return %arg0, %arg2 : i32, i32
  }
  func.func @transform_1(%arg0: i32, %arg1: i32, %arg2: i32) -> (i32, i32) {
    %c0_i32 = arith.constant 0 : i32
    return %arg2, %arg1 : i32, i32
  }
  func.func @transform_2(%arg0: i32, %arg1: i32, %arg2: i32) -> (i32, i32) {
    %c0_i32 = arith.constant 0 : i32
    %c0_i32_0 = arith.constant 0 : i32
    return %c0_i32, %arg1 : i32, i32
  }
  func.func @transform_3(%arg0: i32, %arg1: i32, %arg2: i32) -> (i32, i32) {
    %c0_i32 = arith.constant 0 : i32
    return %arg0, %arg1 : i32, i32
  }
}

module attributes {stable_mosaic.version = 11 : i64} {
  func.func @_fused_matmul_kernel(%arg0: i32, %arg1: i32, %arg2: i32, %arg3: memref<16x128xbf16, #tpu.memory_space<vmem>>, %arg4: memref<128x512xbf16, #tpu.memory_space<vmem>>, %arg5: memref<1x512xf32, #tpu.memory_space<vmem>>, %arg6: memref<16x512xbf16, #tpu.memory_space<vmem>>, %arg7: memref<16x512xf32, #tpu.memory_space<vmem>>) attributes {dimension_semantics = [#tpu.dimension_semantics<parallel>, #tpu.dimension_semantics<parallel>, #tpu.dimension_semantics<arbitrary>], iteration_bounds = array<i64: 1, 1, 1>, scalar_prefetch = 0 : i64, scratch_operands = 1 : i64, tpu.core_type = #tpu.core_type<tc>, window_params = [{transform_indices = @transform_0, window_bounds = array<i64: 16, 128>}, {transform_indices = @transform_1, window_bounds = array<i64: 128, 512>}, {transform_indices = @transform_2, window_bounds = array<i64: 1, 512>}, {transform_indices = @transform_3, window_bounds = array<i64: 16, 512>}]} {
    %c0_i32 = arith.constant 0 : i32
    %0 = arith.cmpi eq, %arg2, %c0_i32 : i32
    %1 = arith.extui %0 : i1 to i32
    %c0_i32_0 = arith.constant 0 : i32
    %2 = arith.cmpi ne, %1, %c0_i32_0 : i32
    scf.if %2 {
      %cst_10 = arith.constant 0.000000e+00 : f32
      %12 = vector.broadcast %cst_10 : f32 to vector<16x512xf32>
      %c0_11 = arith.constant 0 : index
      %c0_12 = arith.constant 0 : index
      %13 = vector.load %arg7[%c0_11, %c0_12] : memref<16x512xf32, #tpu.memory_space<vmem>>, vector<16x512xf32>
      tpu.vector_store %arg7[%c0_11, %c0_12], %12 {strides = array<i32>} : memref<16x512xf32, #tpu.memory_space<vmem>>, vector<16x512xf32>,
    } else {
    }
    %c0 = arith.constant 0 : index
    %c0_1 = arith.constant 0 : index
    %3 = vector.load %arg7[%c0, %c0_1] : memref<16x512xf32, #tpu.memory_space<vmem>>, vector<16x512xf32>
    %c0_2 = arith.constant 0 : index
    %c0_3 = arith.constant 0 : index
    %4 = vector.load %arg3[%c0_2, %c0_3] : memref<16x128xbf16, #tpu.memory_space<vmem>>, vector<16x128xbf16>
    %c0_4 = arith.constant 0 : index
    %c0_5 = arith.constant 0 : index
    %5 = vector.load %arg4[%c0_4, %c0_5] : memref<128x512xbf16, #tpu.memory_space<vmem>>, vector<128x512xbf16>
    %cst = arith.constant dense<0.000000e+00> : vector<16x512xf32>
    %6 = tpu.matmul %4, %5, %cst {dimension_numbers = #tpu.dot_dimension_numbers<[1], [0], [0], [1], [0, 0, 1, 1], [], []>} : vector<16x128xbf16>, vector<128x512xbf16>, vector<16x512xf32> -> vector<16x512xf32>
    %7 = arith.addf %3, %6 : vector<16x512xf32>
    %c0_6 = arith.constant 0 : index
    %c0_7 = arith.constant 0 : index
    %8 = vector.load %arg7[%c0_6, %c0_7] : memref<16x512xf32, #tpu.memory_space<vmem>>, vector<16x512xf32>
    tpu.vector_store %arg7[%c0_6, %c0_7], %7 {strides = array<i32>} : memref<16x512xf32, #tpu.memory_space<vmem>>, vector<16x512xf32>,
    %c0_i32_8 = arith.constant 0 : i32
    %9 = arith.cmpi eq, %arg2, %c0_i32_8 : i32
    %10 = arith.extui %9 : i1 to i32
    %c0_i32_9 = arith.constant 0 : i32
    %11 = arith.cmpi ne, %10, %c0_i32_9 : i32
    scf.if %11 {
      %c0_10 = arith.constant 0 : index
      %c0_11 = arith.constant 0 : index
      %12 = vector.load %arg7[%c0_10, %c0_11] : memref<16x512xf32, #tpu.memory_space<vmem>>, vector<16x512xf32>
      %c0_12 = arith.constant 0 : index
      %c0_13 = arith.constant 0 : index
      %13 = vector.load %arg5[%c0_12, %c0_13] : memref<1x512xf32, #tpu.memory_space<vmem>>, vector<1x512xf32>
      %14 = vector.broadcast %13 : vector<1x512xf32> to vector<16x512xf32>
      %15 = arith.addf %12, %14 : vector<16x512xf32>
      %cst_14 = arith.constant 0.000000e+00 : f32
      %16 = vector.broadcast %cst_14 : f32 to vector<16x512xf32>
      %17 = arith.maximumf %15, %16 : vector<16x512xf32>
      %18 = arith.truncf %17 : vector<16x512xf32> to vector<16x512xbf16>
      %c0_15 = arith.constant 0 : index
      %c0_16 = arith.constant 0 : index
      %19 = vector.load %arg6[%c0_15, %c0_16] : memref<16x512xbf16, #tpu.memory_space<vmem>>, vector<16x512xbf16>
      tpu.vector_store %arg6[%c0_15, %c0_16], %18 {strides = array<i32>} : memref<16x512xbf16, #tpu.memory_space<vmem>>, vector<16x512xbf16>,
    } else {
    }
    return
  }
  func.func @transform_0(%arg0: i32, %arg1: i32, %arg2: i32) -> (i32, i32) {
    %c0_i32 = arith.constant 0 : i32
    return %arg0, %arg2 : i32, i32
  }
  func.func @transform_1(%arg0: i32, %arg1: i32, %arg2: i32) -> (i32, i32) {
    %c0_i32 = arith.constant 0 : i32
    return %arg2, %arg1 : i32, i32
  }
  func.func @transform_2(%arg0: i32, %arg1: i32, %arg2: i32) -> (i32, i32) {
    %c0_i32 = arith.constant 0 : i32
    %c0_i32_0 = arith.constant 0 : i32
    return %c0_i32, %arg1 : i32, i32
  }
  func.func @transform_3(%arg0: i32, %arg1: i32, %arg2: i32) -> (i32, i32) {
    %c0_i32 = arith.constant 0 : i32
    return %arg0, %arg1 : i32, i32
  }
}

module attributes {stable_mosaic.version = 11 : i64} {
  func.func @_fused_matmul_kernel(%arg0: i32, %arg1: i32, %arg2: i32, %arg3: memref<16x128xbf16, #tpu.memory_space<vmem>>, %arg4: memref<128x256xbf16, #tpu.memory_space<vmem>>, %arg5: memref<1x256xf32, #tpu.memory_space<vmem>>, %arg6: memref<16x256xbf16, #tpu.memory_space<vmem>>, %arg7: memref<16x256xf32, #tpu.memory_space<vmem>>) attributes {dimension_semantics = [#tpu.dimension_semantics<parallel>, #tpu.dimension_semantics<parallel>, #tpu.dimension_semantics<arbitrary>], iteration_bounds = array<i64: 1, 1, 1>, scalar_prefetch = 0 : i64, scratch_operands = 1 : i64, tpu.core_type = #tpu.core_type<tc>, window_params = [{transform_indices = @transform_0, window_bounds = array<i64: 16, 128>}, {transform_indices = @transform_1, window_bounds = array<i64: 128, 256>}, {transform_indices = @transform_2, window_bounds = array<i64: 1, 256>}, {transform_indices = @transform_3, window_bounds = array<i64: 16, 256>}]} {
    %c0_i32 = arith.constant 0 : i32
    %0 = arith.cmpi eq, %arg2, %c0_i32 : i32
    %1 = arith.extui %0 : i1 to i32
    %c0_i32_0 = arith.constant 0 : i32
    %2 = arith.cmpi ne, %1, %c0_i32_0 : i32
    scf.if %2 {
      %cst_10 = arith.constant 0.000000e+00 : f32
      %12 = vector.broadcast %cst_10 : f32 to vector<16x256xf32>
      %c0_11 = arith.constant 0 : index
      %c0_12 = arith.constant 0 : index
      %13 = vector.load %arg7[%c0_11, %c0_12] : memref<16x256xf32, #tpu.memory_space<vmem>>, vector<16x256xf32>
      tpu.vector_store %arg7[%c0_11, %c0_12], %12 {strides = array<i32>} : memref<16x256xf32, #tpu.memory_space<vmem>>, vector<16x256xf32>,
    } else {
    }
    %c0 = arith.constant 0 : index
    %c0_1 = arith.constant 0 : index
    %3 = vector.load %arg7[%c0, %c0_1] : memref<16x256xf32, #tpu.memory_space<vmem>>, vector<16x256xf32>
    %c0_2 = arith.constant 0 : index
    %c0_3 = arith.constant 0 : index
    %4 = vector.load %arg3[%c0_2, %c0_3] : memref<16x128xbf16, #tpu.memory_space<vmem>>, vector<16x128xbf16>
    %c0_4 = arith.constant 0 : index
    %c0_5 = arith.constant 0 : index
    %5 = vector.load %arg4[%c0_4, %c0_5] : memref<128x256xbf16, #tpu.memory_space<vmem>>, vector<128x256xbf16>
    %cst = arith.constant dense<0.000000e+00> : vector<16x256xf32>
    %6 = tpu.matmul %4, %5, %cst {dimension_numbers = #tpu.dot_dimension_numbers<[1], [0], [0], [1], [0, 0, 1, 1], [], []>} : vector<16x128xbf16>, vector<128x256xbf16>, vector<16x256xf32> -> vector<16x256xf32>
    %7 = arith.addf %3, %6 : vector<16x256xf32>
    %c0_6 = arith.constant 0 : index
    %c0_7 = arith.constant 0 : index
    %8 = vector.load %arg7[%c0_6, %c0_7] : memref<16x256xf32, #tpu.memory_space<vmem>>, vector<16x256xf32>
    tpu.vector_store %arg7[%c0_6, %c0_7], %7 {strides = array<i32>} : memref<16x256xf32, #tpu.memory_space<vmem>>, vector<16x256xf32>,
    %c0_i32_8 = arith.constant 0 : i32
    %9 = arith.cmpi eq, %arg2, %c0_i32_8 : i32
    %10 = arith.extui %9 : i1 to i32
    %c0_i32_9 = arith.constant 0 : i32
    %11 = arith.cmpi ne, %10, %c0_i32_9 : i32
    scf.if %11 {
      %c0_10 = arith.constant 0 : index
      %c0_11 = arith.constant 0 : index
      %12 = vector.load %arg7[%c0_10, %c0_11] : memref<16x256xf32, #tpu.memory_space<vmem>>, vector<16x256xf32>
      %c0_12 = arith.constant 0 : index
      %c0_13 = arith.constant 0 : index
      %13 = vector.load %arg5[%c0_12, %c0_13] : memref<1x256xf32, #tpu.memory_space<vmem>>, vector<1x256xf32>
      %14 = vector.broadcast %13 : vector<1x256xf32> to vector<16x256xf32>
      %15 = arith.addf %12, %14 : vector<16x256xf32>
      %cst_14 = arith.constant 0.000000e+00 : f32
      %16 = vector.broadcast %cst_14 : f32 to vector<16x256xf32>
      %17 = arith.maximumf %15, %16 : vector<16x256xf32>
      %18 = arith.truncf %17 : vector<16x256xf32> to vector<16x256xbf16>
      %c0_15 = arith.constant 0 : index
      %c0_16 = arith.constant 0 : index
      %19 = vector.load %arg6[%c0_15, %c0_16] : memref<16x256xbf16, #tpu.memory_space<vmem>>, vector<16x256xbf16>
      tpu.vector_store %arg6[%c0_15, %c0_16], %18 {strides = array<i32>} : memref<16x256xbf16, #tpu.memory_space<vmem>>, vector<16x256xbf16>,
    } else {
    }
    return
  }
  func.func @transform_0(%arg0: i32, %arg1: i32, %arg2: i32) -> (i32, i32) {
    %c0_i32 = arith.constant 0 : i32
    return %arg0, %arg2 : i32, i32
  }
  func.func @transform_1(%arg0: i32, %arg1: i32, %arg2: i32) -> (i32, i32) {
    %c0_i32 = arith.constant 0 : i32
    return %arg2, %arg1 : i32, i32
  }
  func.func @transform_2(%arg0: i32, %arg1: i32, %arg2: i32) -> (i32, i32) {
    %c0_i32 = arith.constant 0 : i32
    %c0_i32_0 = arith.constant 0 : i32
    return %c0_i32, %arg1 : i32, i32
  }
  func.func @transform_3(%arg0: i32, %arg1: i32, %arg2: i32) -> (i32, i32) {
    %c0_i32 = arith.constant 0 : i32
    return %arg0, %arg1 : i32, i32
  }
}

module attributes {stable_mosaic.version = 11 : i64} {
  func.func @_fused_matmul_kernel(%arg0: i32, %arg1: i32, %arg2: i32, %arg3: memref<32x128xbf16, #tpu.memory_space<vmem>>, %arg4: memref<128x128xbf16, #tpu.memory_space<vmem>>, %arg5: memref<1x128xf32, #tpu.memory_space<vmem>>, %arg6: memref<32x128xbf16, #tpu.memory_space<vmem>>, %arg7: memref<32x128xf32, #tpu.memory_space<vmem>>) attributes {dimension_semantics = [#tpu.dimension_semantics<parallel>, #tpu.dimension_semantics<parallel>, #tpu.dimension_semantics<arbitrary>], iteration_bounds = array<i64: 1, 1, 1>, scalar_prefetch = 0 : i64, scratch_operands = 1 : i64, tpu.core_type = #tpu.core_type<tc>, window_params = [{transform_indices = @transform_0, window_bounds = array<i64: 32, 128>}, {transform_indices = @transform_1, window_bounds = array<i64: 128, 128>}, {transform_indices = @transform_2, window_bounds = array<i64: 1, 128>}, {transform_indices = @transform_3, window_bounds = array<i64: 32, 128>}]} {
    %c0_i32 = arith.constant 0 : i32
    %0 = arith.cmpi eq, %arg2, %c0_i32 : i32
    %1 = arith.extui %0 : i1 to i32
    %c0_i32_0 = arith.constant 0 : i32
    %2 = arith.cmpi ne, %1, %c0_i32_0 : i32
    scf.if %2 {
      %cst_10 = arith.constant 0.000000e+00 : f32
      %12 = vector.broadcast %cst_10 : f32 to vector<32x128xf32>
      %c0_11 = arith.constant 0 : index
      %c0_12 = arith.constant 0 : index
      %13 = vector.load %arg7[%c0_11, %c0_12] : memref<32x128xf32, #tpu.memory_space<vmem>>, vector<32x128xf32>
      tpu.vector_store %arg7[%c0_11, %c0_12], %12 {strides = array<i32>} : memref<32x128xf32, #tpu.memory_space<vmem>>, vector<32x128xf32>,
    } else {
    }
    %c0 = arith.constant 0 : index
    %c0_1 = arith.constant 0 : index
    %3 = vector.load %arg7[%c0, %c0_1] : memref<32x128xf32, #tpu.memory_space<vmem>>, vector<32x128xf32>
    %c0_2 = arith.constant 0 : index
    %c0_3 = arith.constant 0 : index
    %4 = vector.load %arg3[%c0_2, %c0_3] : memref<32x128xbf16, #tpu.memory_space<vmem>>, vector<32x128xbf16>
    %c0_4 = arith.constant 0 : index
    %c0_5 = arith.constant 0 : index
    %5 = vector.load %arg4[%c0_4, %c0_5] : memref<128x128xbf16, #tpu.memory_space<vmem>>, vector<128x128xbf16>
    %cst = arith.constant dense<0.000000e+00> : vector<32x128xf32>
    %6 = tpu.matmul %4, %5, %cst {dimension_numbers = #tpu.dot_dimension_numbers<[1], [0], [0], [1], [0, 0, 1, 1], [], []>} : vector<32x128xbf16>, vector<128x128xbf16>, vector<32x128xf32> -> vector<32x128xf32>
    %7 = arith.addf %3, %6 : vector<32x128xf32>
    %c0_6 = arith.constant 0 : index
    %c0_7 = arith.constant 0 : index
    %8 = vector.load %arg7[%c0_6, %c0_7] : memref<32x128xf32, #tpu.memory_space<vmem>>, vector<32x128xf32>
    tpu.vector_store %arg7[%c0_6, %c0_7], %7 {strides = array<i32>} : memref<32x128xf32, #tpu.memory_space<vmem>>, vector<32x128xf32>,
    %c0_i32_8 = arith.constant 0 : i32
    %9 = arith.cmpi eq, %arg2, %c0_i32_8 : i32
    %10 = arith.extui %9 : i1 to i32
    %c0_i32_9 = arith.constant 0 : i32
    %11 = arith.cmpi ne, %10, %c0_i32_9 : i32
    scf.if %11 {
      %c0_10 = arith.constant 0 : index
      %c0_11 = arith.constant 0 : index
      %12 = vector.load %arg7[%c0_10, %c0_11] : memref<32x128xf32, #tpu.memory_space<vmem>>, vector<32x128xf32>
      %c0_12 = arith.constant 0 : index
      %c0_13 = arith.constant 0 : index
      %13 = vector.load %arg5[%c0_12, %c0_13] : memref<1x128xf32, #tpu.memory_space<vmem>>, vector<1x128xf32>
      %14 = vector.broadcast %13 : vector<1x128xf32> to vector<32x128xf32>
      %15 = arith.addf %12, %14 : vector<32x128xf32>
      %cst_14 = arith.constant 0.000000e+00 : f32
      %16 = vector.broadcast %cst_14 : f32 to vector<32x128xf32>
      %17 = arith.maximumf %15, %16 : vector<32x128xf32>
      %18 = arith.truncf %17 : vector<32x128xf32> to vector<32x128xbf16>
      %c0_15 = arith.constant 0 : index
      %c0_16 = arith.constant 0 : index
      %19 = vector.load %arg6[%c0_15, %c0_16] : memref<32x128xbf16, #tpu.memory_space<vmem>>, vector<32x128xbf16>
      tpu.vector_store %arg6[%c0_15, %c0_16], %18 {strides = array<i32>} : memref<32x128xbf16, #tpu.memory_space<vmem>>, vector<32x128xbf16>,
    } else {
    }
    return
  }
  func.func @transform_0(%arg0: i32, %arg1: i32, %arg2: i32) -> (i32, i32) {
    %c0_i32 = arith.constant 0 : i32
    return %arg0, %arg2 : i32, i32
  }
  func.func @transform_1(%arg0: i32, %arg1: i32, %arg2: i32) -> (i32, i32) {
    %c0_i32 = arith.constant 0 : i32
    return %arg2, %arg1 : i32, i32
  }
  func.func @transform_2(%arg0: i32, %arg1: i32, %arg2: i32) -> (i32, i32) {
    %c0_i32 = arith.constant 0 : i32
    %c0_i32_0 = arith.constant 0 : i32
    return %c0_i32, %arg1 : i32, i32
  }
  func.func @transform_3(%arg0: i32, %arg1: i32, %arg2: i32) -> (i32, i32) {
    %c0_i32 = arith.constant 0 : i32
    return %arg0, %arg1 : i32, i32
  }
}

module attributes {stable_mosaic.version = 11 : i64} {
  func.func @_fused_matmul_kernel(%arg0: i32, %arg1: i32, %arg2: i32, %arg3: memref<128x128xbf16, #tpu.memory_space<vmem>>, %arg4: memref<128x128xbf16, #tpu.memory_space<vmem>>, %arg5: memref<1x128xf32, #tpu.memory_space<vmem>>, %arg6: memref<128x128xf32, #tpu.memory_space<vmem>>, %arg7: memref<128x128xf32, #tpu.memory_space<vmem>>) attributes {dimension_semantics = [#tpu.dimension_semantics<parallel>, #tpu.dimension_semantics<parallel>, #tpu.dimension_semantics<arbitrary>], iteration_bounds = array<i64: 1, 1, 1>, scalar_prefetch = 0 : i64, scratch_operands = 1 : i64, tpu.core_type = #tpu.core_type<tc>, window_params = [{transform_indices = @transform_0, window_bounds = array<i64: 128, 128>}, {transform_indices = @transform_1, window_bounds = array<i64: 128, 128>}, {transform_indices = @transform_2, window_bounds = array<i64: 1, 128>}, {transform_indices = @transform_3, window_bounds = array<i64: 128, 128>}]} {
    %c0_i32 = arith.constant 0 : i32
    %0 = arith.cmpi eq, %arg2, %c0_i32 : i32
    %1 = arith.extui %0 : i1 to i32
    %c0_i32_0 = arith.constant 0 : i32
    %2 = arith.cmpi ne, %1, %c0_i32_0 : i32
    scf.if %2 {
      %cst_10 = arith.constant 0.000000e+00 : f32
      %12 = vector.broadcast %cst_10 : f32 to vector<128x128xf32>
      %c0_11 = arith.constant 0 : index
      %c0_12 = arith.constant 0 : index
      %13 = vector.load %arg7[%c0_11, %c0_12] : memref<128x128xf32, #tpu.memory_space<vmem>>, vector<128x128xf32>
      tpu.vector_store %arg7[%c0_11, %c0_12], %12 {strides = array<i32>} : memref<128x128xf32, #tpu.memory_space<vmem>>, vector<128x128xf32>,
    } else {
    }
    %c0 = arith.constant 0 : index
    %c0_1 = arith.constant 0 : index
    %3 = vector.load %arg7[%c0, %c0_1] : memref<128x128xf32, #tpu.memory_space<vmem>>, vector<128x128xf32>
    %c0_2 = arith.constant 0 : index
    %c0_3 = arith.constant 0 : index
    %4 = vector.load %arg3[%c0_2, %c0_3] : memref<128x128xbf16, #tpu.memory_space<vmem>>, vector<128x128xbf16>
    %c0_4 = arith.constant 0 : index
    %c0_5 = arith.constant 0 : index
    %5 = vector.load %arg4[%c0_4, %c0_5] : memref<128x128xbf16, #tpu.memory_space<vmem>>, vector<128x128xbf16>
    %cst = arith.constant dense<0.000000e+00> : vector<128x128xf32>
    %6 = tpu.matmul %4, %5, %cst {dimension_numbers = #tpu.dot_dimension_numbers<[1], [0], [0], [1], [0, 0, 1, 1], [], []>} : vector<128x128xbf16>, vector<128x128xbf16>, vector<128x128xf32> -> vector<128x128xf32>
    %7 = arith.addf %3, %6 : vector<128x128xf32>
    %c0_6 = arith.constant 0 : index
    %c0_7 = arith.constant 0 : index
    %8 = vector.load %arg7[%c0_6, %c0_7] : memref<128x128xf32, #tpu.memory_space<vmem>>, vector<128x128xf32>
    tpu.vector_store %arg7[%c0_6, %c0_7], %7 {strides = array<i32>} : memref<128x128xf32, #tpu.memory_space<vmem>>, vector<128x128xf32>,
    %c0_i32_8 = arith.constant 0 : i32
    %9 = arith.cmpi eq, %arg2, %c0_i32_8 : i32
    %10 = arith.extui %9 : i1 to i32
    %c0_i32_9 = arith.constant 0 : i32
    %11 = arith.cmpi ne, %10, %c0_i32_9 : i32
    scf.if %11 {
      %c0_10 = arith.constant 0 : index
      %c0_11 = arith.constant 0 : index
      %12 = vector.load %arg7[%c0_10, %c0_11] : memref<128x128xf32, #tpu.memory_space<vmem>>, vector<128x128xf32>
      %c0_12 = arith.constant 0 : index
      %c0_13 = arith.constant 0 : index
      %13 = vector.load %arg5[%c0_12, %c0_13] : memref<1x128xf32, #tpu.memory_space<vmem>>, vector<1x128xf32>
      %14 = vector.broadcast %13 : vector<1x128xf32> to vector<128x128xf32>
      %15 = arith.addf %12, %14 : vector<128x128xf32>
      %16 = math.absf %15 : vector<128x128xf32>
      %cst_14 = arith.constant 0.000000e+00 : f32
      %17 = vector.broadcast %cst_14 : f32 to vector<128x128xf32>
      %18 = arith.subf %17, %16 : vector<128x128xf32>
      %19 = math.exp %18 : vector<128x128xf32>
      %cst_15 = arith.constant 1.000000e+00 : f32
      %20 = vector.broadcast %cst_15 : f32 to vector<128x128xf32>
      %21 = arith.addf %20, %19 : vector<128x128xf32>
      %22 = tpu.reciprocal %21 {approx = true} : vector<128x128xf32> -> vector<128x128xf32>
      %cst_16 = arith.constant 0.000000e+00 : f32
      %23 = vector.broadcast %cst_16 : f32 to vector<128x128xf32>
      %24 = arith.cmpf oge, %15, %23 : vector<128x128xf32>
      %cst_17 = arith.constant 1.000000e+00 : f32
      %25 = vector.broadcast %cst_17 : f32 to vector<128x128xf32>
      %26 = arith.subf %25, %22 : vector<128x128xf32>
      %27 = arith.select %24, %22, %26 : vector<128x128xi1>, vector<128x128xf32>
      %c0_18 = arith.constant 0 : index
      %c0_19 = arith.constant 0 : index
      %28 = vector.load %arg6[%c0_18, %c0_19] : memref<128x128xf32, #tpu.memory_space<vmem>>, vector<128x128xf32>
      tpu.vector_store %arg6[%c0_18, %c0_19], %27 {strides = array<i32>} : memref<128x128xf32, #tpu.memory_space<vmem>>, vector<128x128xf32>,
    } else {
    }
    return
  }
  func.func @transform_0(%arg0: i32, %arg1: i32, %arg2: i32) -> (i32, i32) {
    %c0_i32 = arith.constant 0 : i32
    return %arg0, %arg2 : i32, i32
  }
  func.func @transform_1(%arg0: i32, %arg1: i32, %arg2: i32) -> (i32, i32) {
    %c0_i32 = arith.constant 0 : i32
    return %arg2, %arg1 : i32, i32
  }
  func.func @transform_2(%arg0: i32, %arg1: i32, %arg2: i32) -> (i32, i32) {
    %c0_i32 = arith.constant 0 : i32
    %c0_i32_0 = arith.constant 0 : i32
    return %c0_i32, %arg1 : i32, i32
  }
  func.func @transform_3(%arg0: i32, %arg1: i32, %arg2: i32) -> (i32, i32) {
    %c0_i32 = arith.constant 0 : i32
    return %arg0, %arg1 : i32, i32
  }
}

</mosaic_0001>

<bundles_post_ra>
// kernel: conv_autoencoder_forward.8
= control target key start
LH: loop header
LB: loop body
LE: loop exit
PB: predicated region body
PF: predicated region fallthrough
CT: control target
= control target key end

     0   :  { %s2190_s4 = inlined_call_operand.vmem [shape: bf16[128,128], index: 4, kind: input, shape index: {}]   ;;  %s2191_s0 = inlined_call_operand.vmem [shape: bf16[128,128], index: 0, kind: input, shape index: {}]   ;;  %s2192_s1 = inlined_call_operand.vmem [shape: bf16[128,128], index: 1, kind: input, shape index: {}]   ;;  %s2193_s2 = inlined_call_operand.vmem [shape: bf16[128,128], index: 2, kind: input, shape index: {}]   ;;  %s2194_s3 = inlined_call_operand.vmem [shape: bf16[128,128], index: 3, kind: input, shape index: {}]   ;;  %s2195_s5 = inlined_call_operand.vmem [shape: f32[1,128], index: 5, kind: input, shape index: {}]   ;;  %s2196_s6 = inlined_call_operand.vmem [shape: bf16[128,128], index: 6, kind: output, shape index: {}]  }
   0x1   :  { %v1758_v0 = vld [vmem:[%s2190_s4] sm:$0xff]   ;;  %v1760_v2 = vld [vmem:[%s2190_s4 + $0x8] sm:$0xff]   ;;  %v1762_v4 = vld [vmem:[%s2190_s4 + $0x10] sm:$0xff]  }
   0x2   :  { %v1759_v1 = vld [vmem:[%s2190_s4] sm:$0xff]   ;;  %1630 = vmatprep.subr.bf16.mxu0 %v1758_v0  ;;  %v1761_v3 = vld [vmem:[%s2190_s4 + $0x8] sm:$0xff]   ;;  %v1763_v5 = vld [vmem:[%s2190_s4 + $0x10] sm:$0xff]  }
   0x3   :  { %1662 = vmatprep.subr.bf16.mxu1 %v1759_v1  ;;  %1631 = vmatpush3.bf16.msra.mxu0 %v1758_v0  ;;  %v1764_v6 = vld [vmem:[%s2190_s4 + $0x18] sm:$0xff]   ;;  %v1766_v8 = vld [vmem:[%s2190_s4 + $0x20] sm:$0xff]   ;;  %v1768_v10 = vld [vmem:[%s2190_s4 + $0x28] sm:$0xff]  }
   0x4   :  { %1663 = vmatpush3.bf16.msra.mxu1 %v1759_v1  ;;  %1632 = vmatprep.subr.bf16.mxu0 %v1760_v2  ;;  %v1765_v7 = vld [vmem:[%s2190_s4 + $0x18] sm:$0xff]   ;;  %v1767_v9 = vld [vmem:[%s2190_s4 + $0x20] sm:$0xff]   ;;  %v1769_v11 = vld [vmem:[%s2190_s4 + $0x28] sm:$0xff]  }
   0x5   :  { %1664 = vmatprep.subr.bf16.mxu1 %v1761_v3  ;;  %v1774_v12 = vld [vmem:[%s2191_s0] sm:$0xff]   ;;  %v1770_v14 = vld [vmem:[%s2190_s4 + $0x30] sm:$0xff]   ;;  %v1772_v16 = vld [vmem:[%s2190_s4 + $0x38] sm:$0xff]  }
   0x6   :  { %v1775_v13 = vld [vmem:[%s2192_s1] sm:$0xff]   ;;  %1646 = vmatprep.mubr.bf16.mxu0 %v1774_v12  ;;  %v1771_v15 = vld [vmem:[%s2190_s4 + $0x30] sm:$0xff]   ;;  %v1773_v17 = vld [vmem:[%s2190_s4 + $0x38] sm:$0xff]  }
   0x7   :  { %1633 = vmatpush3.bf16.msra.mxu0 %v1760_v2  ;;  %1678 = vmatprep.mubr.bf16.mxu1 %v1775_v13  ;;  %v1776_v18 = vld [vmem:[%s2191_s0 + $0x8] sm:$0xff]   ;;  %v1778_v19 = vld [vmem:[%s2190_s4] sm:$0xff]   ;;  %v1782_v24 = vld [vmem:[%s2191_s0 + $0x10] sm:$0xff]  }
   0x8   :  { %1665 = vmatpush3.bf16.msra.mxu1 %v1761_v3  ;;  %1634 = vmatprep.subr.bf16.mxu0 %v1762_v4  ;;  %v1779_v20 = vld [vmem:[%s2190_s4] sm:$0xff]   ;;  %v1777_v21 = vld [vmem:[%s2192_s1 + $0x8] sm:$0xff]   ;;  %v1783_v25 = vld [vmem:[%s2192_s1 + $0x10] sm:$0xff]  }
   0x9   :  { %1666 = vmatprep.subr.bf16.mxu1 %v1763_v5  ;;  %v1780_v22 = vld [vmem:[%s2190_s4 + $0x8] sm:$0xff]   ;;  %v1784_v26 = vld [vmem:[%s2191_s0 + $0x18] sm:$0xff]   ;;  %v1786_v27 = vld [vmem:[%s2190_s4 + $0x10] sm:$0xff]  }
   0xa   :  { %v1781_v23 = vld [vmem:[%s2190_s4 + $0x8] sm:$0xff]   ;;  %v1787_v28 = vld [vmem:[%s2190_s4 + $0x10] sm:$0xff]   ;;  %v1785_v29 = vld [vmem:[%s2192_s1 + $0x18] sm:$0xff]  }
   0xb   :  { %1635 = vmatpush3.bf16.msra.mxu0 %v1762_v4  ;;  %v1788_v30 = vld [vmem:[%s2190_s4 + $0x18] sm:$0xff]   ;;  %v1790_v32 = vld [vmem:[%s2191_s0 + $0x20] sm:$0xff]   ;;  %v1792_v34 = vld [vmem:[%s2191_s0 + $0x28] sm:$0xff]  }
   0xc   :  { %1667 = vmatpush3.bf16.msra.mxu1 %v1763_v5  ;;  %1636 = vmatprep.subr.bf16.mxu0 %v1764_v6  ;;  %v1789_v31 = vld [vmem:[%s2190_s4 + $0x18] sm:$0xff]   ;;  %v1791_v33 = vld [vmem:[%s2192_s1 + $0x20] sm:$0xff]   ;;  %v1793_v37 = vld [vmem:[%s2192_s1 + $0x28] sm:$0xff]  }
   0xd   :  { %1668 = vmatprep.subr.bf16.mxu1 %v1765_v7  ;;  %v1794_v35 = vld [vmem:[%s2190_s4 + $0x20] sm:$0xff]   ;;  %v1796_v38 = vld [vmem:[%s2190_s4 + $0x28] sm:$0xff]   ;;  %v1798_v40 = vld [vmem:[%s2191_s0 + $0x30] sm:$0xff]  }
   0xe   :  { %v1795_v36 = vld [vmem:[%s2190_s4 + $0x20] sm:$0xff]   ;;  %v1797_v39 = vld [vmem:[%s2190_s4 + $0x28] sm:$0xff]   ;;  %v1799_v41 = vld [vmem:[%s2192_s1 + $0x30] sm:$0xff]  }
   0xf   :  { %1637 = vmatpush3.bf16.msra.mxu0 %v1764_v6  ;;  %v1800_v42 = vld [vmem:[%s2191_s0 + $0x38] sm:$0xff]   ;;  %v1802_v43 = vld [vmem:[%s2190_s4 + $0x30] sm:$0xff]   ;;  %v1806_v48 = vld [vmem:[%s2193_s2] sm:$0xff]  }
  0x10   :  { %1669 = vmatpush3.bf16.msra.mxu1 %v1765_v7  ;;  %1638 = vmatprep.subr.bf16.mxu0 %v1766_v8  ;;  %v1803_v44 = vld [vmem:[%s2190_s4 + $0x30] sm:$0xff]   ;;  %v1801_v45 = vld [vmem:[%s2192_s1 + $0x38] sm:$0xff]   ;;  %v1807_v49 = vld [vmem:[%s2194_s3] sm:$0xff]  }
  0x11   :  { %1670 = vmatprep.subr.bf16.mxu1 %v1767_v9  ;;  %v1804_v46 = vld [vmem:[%s2190_s4 + $0x38] sm:$0xff]   ;;  %v1808_v50 = vld [vmem:[%s2193_s2 + $0x8] sm:$0xff]   ;;  %v1810_v52 = vld [vmem:[%s2193_s2 + $0x10] sm:$0xff]  }
  0x12   :  { %v1805_v47 = vld [vmem:[%s2190_s4 + $0x38] sm:$0xff]   ;;  %v1809_v51 = vld [vmem:[%s2194_s3 + $0x8] sm:$0xff]   ;;  %v1811_v53 = vld [vmem:[%s2194_s3 + $0x10] sm:$0xff]  }
  0x13   :  { %1639 = vmatpush3.bf16.msra.mxu0 %v1766_v8  ;;  %v1812_v54 = vld [vmem:[%s2193_s2 + $0x18] sm:$0xff]   ;;  %v1814_v56 = vld [vmem:[%s2193_s2 + $0x20] sm:$0xff]   ;;  %v1816_v58 = vld [vmem:[%s2193_s2 + $0x28] sm:$0xff]  }
  0x14   :  { %1671 = vmatpush3.bf16.msra.mxu1 %v1767_v9  ;;  %1640 = vmatprep.subr.bf16.mxu0 %v1768_v10  ;;  %v1813_v55 = vld [vmem:[%s2194_s3 + $0x18] sm:$0xff]   ;;  %v1815_v57 = vld [vmem:[%s2194_s3 + $0x20] sm:$0xff]   ;;  %v1817_v59 = vld [vmem:[%s2194_s3 + $0x28] sm:$0xff]  }
  0x15   :  { %1672 = vmatprep.subr.bf16.mxu1 %v1769_v11  ;;  %v1818_v60 = vld [vmem:[%s2193_s2 + $0x30] sm:$0xff]   ;;  %v1820_v62 = vld [vmem:[%s2193_s2 + $0x38] sm:$0xff]  }
  0x16   :  { %v1819_v61 = vld [vmem:[%s2194_s3 + $0x30] sm:$0xff]   ;;  %v1821_v63 = vld [vmem:[%s2194_s3 + $0x38] sm:$0xff]  }
  0x17   :  { %1641 = vmatpush3.bf16.msra.mxu0 %v1768_v10 }
  0x18   :  { %1673 = vmatpush3.bf16.msra.mxu1 %v1769_v11  ;;  %1642 = vmatprep.subr.bf16.mxu0 %v1770_v14 }
  0x19   :  { %1674 = vmatprep.subr.bf16.mxu1 %v1771_v15 }
  0x1b   :  { %1643 = vmatpush3.bf16.msra.mxu0 %v1770_v14 }
  0x1c   :  { %1675 = vmatpush3.bf16.msra.mxu1 %v1771_v15  ;;  %1644 = vmatprep.subr.bf16.mxu0 %v1772_v16 }
  0x1d   :  { %1676 = vmatprep.subr.bf16.mxu1 %v1773_v17 }
  0x1f   :  { %1645 = vmatpush3.bf16.msra.mxu0 %v1772_v16 }
  0x20   :  { %1677 = vmatpush3.bf16.msra.mxu1 %v1773_v17  ;;  %1694 = vmatprep.subr.bf16.mxu0 %v1778_v19 }
  0x21   :  { %1726 = vmatprep.subr.bf16.mxu1 %v1779_v20 }
  0x22   :  { %1647 = vmatmul.mubr.bf16.vlgmr.msra.gmra.mrb[0].mxu0 %v1776_v18 }
  0x23   :  { %1679 = vmatmul.mubr.bf16.vlgmr.msra.gmra.mrb[0].mxu1 %v1777_v21  ;;  %1695 = vmatpush3.bf16.msra.mxu0 %v1778_v19 }
  0x24   :  { %1727 = vmatpush3.bf16.msra.mxu1 %v1779_v20  ;;  %1696 = vmatprep.subr.bf16.mxu0 %v1780_v22 }
  0x25   :  { %1728 = vmatprep.subr.bf16.mxu1 %v1781_v23  ;;  %1650 = vmatprep.mubr.bf16.mxu0 %v1782_v24 }
  0x26   :  { %1682 = vmatprep.mubr.bf16.mxu1 %v1783_v25 }
  0x27   :  { %1697 = vmatpush3.bf16.msra.mxu0 %v1780_v22 }
  0x28   :  { %1729 = vmatpush3.bf16.msra.mxu1 %v1781_v23  ;;  %1698 = vmatprep.subr.bf16.mxu0 %v1786_v27 }
  0x29   :  { %1730 = vmatprep.subr.bf16.mxu1 %v1787_v28 }
  0x2a   :  { %1651 = vmatmul.mubr.bf16.gmra.mrb[4].mxu0 %v1784_v26 }
  0x2b   :  { %1683 = vmatmul.mubr.bf16.gmra.mrb[4].mxu1 %v1785_v29  ;;  %1699 = vmatpush3.bf16.msra.mxu0 %v1786_v27 }
  0x2c   :  { %1731 = vmatpush3.bf16.msra.mxu1 %v1787_v28  ;;  %1700 = vmatprep.subr.bf16.mxu0 %v1788_v30 }
  0x2d   :  { %1732 = vmatprep.subr.bf16.mxu1 %v1789_v31  ;;  %1654 = vmatprep.mubr.bf16.mxu0 %v1790_v32 }
  0x2e   :  { %1686 = vmatprep.mubr.bf16.mxu1 %v1791_v33 }
  0x2f   :  { %1701 = vmatpush3.bf16.msra.mxu0 %v1788_v30 }
  0x30   :  { %1733 = vmatpush3.bf16.msra.mxu1 %v1789_v31  ;;  %1702 = vmatprep.subr.bf16.mxu0 %v1794_v35 }
  0x31   :  { %1734 = vmatprep.subr.bf16.mxu1 %v1795_v36 }
  0x32   :  { %1655 = vmatmul.mubr.bf16.gmra.mrb[8].mxu0 %v1792_v34 }
  0x33   :  { %1687 = vmatmul.mubr.bf16.gmra.mrb[8].mxu1 %v1793_v37  ;;  %1703 = vmatpush3.bf16.msra.mxu0 %v1794_v35 }
  0x34   :  { %1735 = vmatpush3.bf16.msra.mxu1 %v1795_v36  ;;  %1704 = vmatprep.subr.bf16.mxu0 %v1796_v38 }
  0x35   :  { %1736 = vmatprep.subr.bf16.mxu1 %v1797_v39  ;;  %1658 = vmatprep.mubr.bf16.mxu0 %v1798_v40 }
  0x36   :  { %1690 = vmatprep.mubr.bf16.mxu1 %v1799_v41 }
  0x37   :  { %1705 = vmatpush3.bf16.msra.mxu0 %v1796_v38 }
  0x38   :  { %1737 = vmatpush3.bf16.msra.mxu1 %v1797_v39  ;;  %1706 = vmatprep.subr.bf16.mxu0 %v1802_v43 }
  0x39   :  { %1738 = vmatprep.subr.bf16.mxu1 %v1803_v44 }
  0x3a   :  { %1659 = vmatmul.mubr.bf16.gmra.mrb[12].mxu0 %v1800_v42 }
  0x3b   :  { %1691 = vmatmul.mubr.bf16.gmra.mrb[12].mxu1 %v1801_v45  ;;  %1707 = vmatpush3.bf16.msra.mxu0 %v1802_v43 }
  0x3c   :  { %1739 = vmatpush3.bf16.msra.mxu1 %v1803_v44  ;;  %1708 = vmatprep.subr.bf16.mxu0 %v1804_v46 }
  0x3d   :  { %1740 = vmatprep.subr.bf16.mxu1 %v1805_v47  ;;  %1710 = vmatprep.mubr.bf16.mxu0 %v1806_v48 }
  0x3e   :  { %1742 = vmatprep.mubr.bf16.mxu1 %v1807_v49 }
  0x3f   :  { %1709 = vmatpush3.bf16.msra.mxu0 %v1804_v46 }
  0x40   :  { %1741 = vmatpush3.bf16.msra.mxu1 %v1805_v47 }
  0x42   :  { %1711 = vmatmul.mubr.bf16.vlgmr.msra.gmra.mrb[16].mxu0 %v1808_v50 }
  0x43   :  { %1743 = vmatmul.mubr.bf16.vlgmr.msra.gmra.mrb[16].mxu1 %v1809_v51  ;;  %1714 = vmatprep.mubr.bf16.mxu0 %v1810_v52  ;;  %v2118_v52 = vld [vmem:[%s2195_s5] ss:$0 sm:$0xff] }
  0x44   :  { %1746 = vmatprep.mubr.bf16.mxu1 %v1811_v53 }
  0x4a   :  { %1715 = vmatmul.mubr.bf16.gmra.mrb[20].mxu0 %v1812_v54 }
  0x4b   :  { %1747 = vmatmul.mubr.bf16.gmra.mrb[20].mxu1 %v1813_v55  ;;  %1718 = vmatprep.mubr.bf16.mxu0 %v1814_v56 }
  0x4c   :  { %1750 = vmatprep.mubr.bf16.mxu1 %v1815_v57 }
  0x52   :  { %1719 = vmatmul.mubr.bf16.gmra.mrb[24].mxu0 %v1816_v58 }
  0x53   :  { %1751 = vmatmul.mubr.bf16.gmra.mrb[24].mxu1 %v1817_v59  ;;  %1722 = vmatprep.mubr.bf16.mxu0 %v1818_v60 }
  0x54   :  { %1754 = vmatprep.mubr.bf16.mxu1 %v1819_v61 }
  0x5a   :  { %1723 = vmatmul.mubr.bf16.gmra.mrb[28].mxu0 %v1820_v62 }
  0x5b   :  { %1755 = vmatmul.mubr.bf16.gmra.mrb[28].mxu1 %v1821_v63 }
  0xf5   :  { %v1648_v0 = vpop.f32.mrb[0].mxu0 }
  0xf6   :  { %v1680_v1 = vpop.f32.mrb[0].mxu1  ;;  %v270_v2 = vpop.f32.mrb[1].mxu0 }
  0xf7   :  { %v1221_v3 = vmax.f32 %v1648_v0, %v1680_v1  ;;  %v543_v4 = vpop.f32.mrb[1].mxu1  ;;  %v1649_v5 = vpop.f32.mrb[2].mxu0 }
  0xf8   :  { %v1219_v6 = vmax.f32 %v270_v2, %v543_v4  ;;  %v1681_v7 = vpop.f32.mrb[2].mxu1  ;;  %v273_v8 = vpop.f32.mrb[3].mxu0 }
  0xf9   :  { %v1222_v9 = vmax.f32 %v1649_v5, %v1681_v7  ;;  %v546_v10 = vpop.f32.mrb[3].mxu1 }
  0xfa   :  { %v1220_v11 = vmax.f32 %v273_v8, %v546_v10 }
  0xfd   :  { %v1652_v12 = vpop.f32.mrb[4].mxu0 }
  0xfe   :  { %v1684_v13 = vpop.f32.mrb[4].mxu1  ;;  %v2049_v14 = vpop.f32.mrb[5].mxu0 }
  0xff   :  { %v1225_v15 = vmax.f32 %v1652_v12, %v1684_v13  ;;  %v2051_v16 = vpop.f32.mrb[5].mxu1  ;;  %v2053_v17 = vpop.f32.mrb[6].mxu0 }
 0x100   :  { %v1223_v18 = vmax.f32 %v2049_v14, %v2051_v16  ;;  %v2057_v19 = vpop.f32.mrb[6].mxu1  ;;  %v2059_v20 = vpop.f32.mrb[7].mxu0 }
 0x101   :  { %v1226_v21 = vmax.f32 %v2053_v17, %v2057_v19  ;;  %v2063_v22 = vpop.f32.mrb[7].mxu1 }
 0x102   :  { %v1224_v23 = vmax.f32 %v2059_v20, %v2063_v22 }
 0x105   :  { %v2067_v24 = vpop.f32.mrb[8].mxu0 }
 0x106   :  { %v2069_v25 = vpop.f32.mrb[8].mxu1  ;;  %v2071_v26 = vpop.f32.mrb[9].mxu0 }
 0x107   :  { %v1229_v27 = vmax.f32 %v2067_v24, %v2069_v25  ;;  %v2075_v28 = vpop.f32.mrb[9].mxu1  ;;  %v2077_v29 = vpop.f32.mrb[10].mxu0 }
 0x108   :  { %v1227_v30 = vmax.f32 %v2071_v26, %v2075_v28  ;;  %v2081_v31 = vpop.f32.mrb[10].mxu1  ;;  %v2083_v32 = vpop.f32.mrb[11].mxu0 }
 0x109   :  { %v1230_v33 = vmax.f32 %v2077_v29, %v2081_v31  ;;  %v2087_v34 = vpop.f32.mrb[11].mxu1 }
 0x10a   :  { %v1228_v35 = vmax.f32 %v2083_v32, %v2087_v34 }
 0x10d   :  { %v2091_v36 = vpop.f32.mrb[12].mxu0 }
 0x10e   :  { %v2093_v37 = vpop.f32.mrb[12].mxu1  ;;  %v2095_v38 = vpop.f32.mrb[13].mxu0 }
 0x10f   :  { %v1233_v39 = vmax.f32 %v2091_v36, %v2093_v37  ;;  %v2099_v40 = vpop.f32.mrb[13].mxu1  ;;  %v2101_v41 = vpop.f32.mrb[14].mxu0 }
 0x110   :  { %v1231_v42 = vmax.f32 %v2095_v38, %v2099_v40  ;;  %v2105_v43 = vpop.f32.mrb[14].mxu1  ;;  %v2107_v44 = vpop.f32.mrb[15].mxu0 }
 0x111   :  { %v1234_v45 = vmax.f32 %v2101_v41, %v2105_v43  ;;  %v2111_v46 = vpop.f32.mrb[15].mxu1 }
 0x112   :  { %v1232_v47 = vmax.f32 %v2107_v44, %v2111_v46 }
 0x115   :  { %v1712_v48 = vpop.f32.mrb[16].mxu0 }
 0x116   :  { %v1253_v49 = vmax.f32 %v1221_v3, %v1712_v48  ;;  %v1744_v50 = vpop.f32.mrb[16].mxu1  ;;  %v816_v51 = vpop.f32.mrb[17].mxu0 }
 0x117   :  { %v1251_v53 = vmax.f32 %v1219_v6, %v816_v51  ;;  %v1089_v54 = vpop.f32.mrb[17].mxu1  ;;  %v1713_v55 = vpop.f32.mrb[18].mxu0 }
 0x118   :  { %v1285_v56 = vmax.f32 %v1253_v49, %v1744_v50  ;;  %v1254_v57 = vmax.f32 %v1222_v9, %v1713_v55  ;;  %v1745_v58 = vpop.f32.mrb[18].mxu1  ;;  %v819_v59 = vpop.f32.mrb[19].mxu0 }
 0x119   :  { %v1283_v60 = vmax.f32 %v1251_v53, %v1089_v54  ;;  %v1252_v61 = vmax.f32 %v1220_v11, %v819_v59  ;;  %v1092_v62 = vpop.f32.mrb[19].mxu1 }
 0x11a   :  { %v1308_v63 = vadd.f32 %v2118_v52, %v1285_v56  ;;  %v1286_v0 = vmax.f32 %v1254_v57, %v1745_v58 }
 0x11b   :  { %v1306_v1 = vadd.f32 %v2118_v52, %v1283_v60  ;;  %v1284_v2 = vmax.f32 %v1252_v61, %v1092_v62 }
 0x11c   :  { %v1309_v3 = vadd.f32 %v2118_v52, %v1286_v0  ;;  %v1324_v6 = vmax.f32 %v1308_v63, 0.0 }
 0x11d   :  { %v1307_v4 = vadd.f32 %v2118_v52, %v1284_v2  ;;  %v1716_v5 = vpop.f32.mrb[20].mxu0  ;;  %v1322_v12 = vmax.f32 %v1306_v1, 0.0 }
 0x11e   :  { %v1325_v7 = vmax.f32 %v1309_v3, 0.0  ;;  %v1257_v8 = vmax.f32 %v1225_v15, %v1716_v5  ;;  %v1748_v9 = vpop.f32.mrb[20].mxu1  ;;  %v832_v10 = vpop.f32.mrb[21].mxu0 }
 0x11f   :  { %v1323_v13 = vmax.f32 %v1307_v4, 0.0  ;;  %v1255_v11 = vmax.f32 %v1223_v18, %v832_v10  ;;  %v1105_v14 = vpop.f32.mrb[21].mxu1  ;;  %v1717_v16 = vpop.f32.mrb[22].mxu0 }
 0x120   :  { %v1527_v48 = vpack.c.bf16 %v1325_v7, %v1324_v6  ;;  %v1289_v49 = vmax.f32 %v1257_v8, %v1748_v9  ;;  %v1258_v50 = vmax.f32 %v1226_v21, %v1717_v16  ;;  %v1749_v51 = vpop.f32.mrb[22].mxu1  ;;  %v835_v53 = vpop.f32.mrb[23].mxu0 }
 0x121   :  { %v1522_v54 = vpack.c.bf16 %v1323_v13, %v1322_v12  ;;  %v1287_v55 = vmax.f32 %v1255_v11, %v1105_v14  ;;  %v1256_v15 = vmax.f32 %v1224_v23, %v835_v53  ;;  %v1108_v56 = vpop.f32.mrb[23].mxu1 }
 0x122   :  { %1559 = vst [vmem:[%s2196_s6 + $0x8] sm:$0xff] %v1527_v48   ;;  %v1312_v18 = vadd.f32 %v2118_v52, %v1289_v49  ;;  %v1290_v57 = vmax.f32 %v1258_v50, %v1749_v51 }
 0x123   :  { %1523 = vst [vmem:[%s2196_s6] sm:$0xff] %v1522_v54   ;;  %v1310_v17 = vadd.f32 %v2118_v52, %v1287_v55  ;;  %v1288_v19 = vmax.f32 %v1256_v15, %v1108_v56 }
 0x124   :  { %v1313_v21 = vadd.f32 %v2118_v52, %v1290_v57  ;;  %v1328_v23 = vmax.f32 %v1312_v18, 0.0 }
 0x125   :  { %v1311_v20 = vadd.f32 %v2118_v52, %v1288_v19  ;;  %v1720_v22 = vpop.f32.mrb[24].mxu0  ;;  %v1326_v62 = vmax.f32 %v1310_v17, 0.0 }
 0x126   :  { %v1329_v58 = vmax.f32 %v1313_v21, 0.0  ;;  %v1261_v59 = vmax.f32 %v1229_v27, %v1720_v22  ;;  %v1752_v60 = vpop.f32.mrb[24].mxu1  ;;  %v848_v61 = vpop.f32.mrb[25].mxu0 }
 0x127   :  { %v1327_v63 = vmax.f32 %v1311_v20, 0.0  ;;  %v1259_v0 = vmax.f32 %v1227_v30, %v848_v61  ;;  %v1121_v1 = vpop.f32.mrb[25].mxu1  ;;  %v1721_v2 = vpop.f32.mrb[26].mxu0 }
 0x128   :  { %v1537_v3 = vpack.c.bf16 %v1329_v58, %v1328_v23  ;;  %v1293_v4 = vmax.f32 %v1261_v59, %v1752_v60  ;;  %v1262_v5 = vmax.f32 %v1230_v33, %v1721_v2  ;;  %v1753_v6 = vpop.f32.mrb[26].mxu1  ;;  %v851_v7 = vpop.f32.mrb[27].mxu0 }
 0x129   :  { %v1532_v24 = vpack.c.bf16 %v1327_v63, %v1326_v62  ;;  %v1291_v25 = vmax.f32 %v1259_v0, %v1121_v1  ;;  %v1260_v27 = vmax.f32 %v1228_v35, %v851_v7  ;;  %v1124_v8 = vpop.f32.mrb[27].mxu1 }
 0x12a   :  { %1561 = vst [vmem:[%s2196_s6 + $0x18] sm:$0xff] %v1537_v3   ;;  %v1316_v26 = vadd.f32 %v2118_v52, %v1293_v4  ;;  %v1294_v28 = vmax.f32 %v1262_v5, %v1753_v6 }
 0x12b   :  { %1560 = vst [vmem:[%s2196_s6 + $0x10] sm:$0xff] %v1532_v24   ;;  %v1314_v29 = vadd.f32 %v2118_v52, %v1291_v25  ;;  %v1292_v30 = vmax.f32 %v1260_v27, %v1124_v8 }
 0x12c   :  { %v1317_v31 = vadd.f32 %v2118_v52, %v1294_v28  ;;  %v1332_v34 = vmax.f32 %v1316_v26, 0.0 }
 0x12d   :  { %v1315_v32 = vadd.f32 %v2118_v52, %v1292_v30  ;;  %v1724_v33 = vpop.f32.mrb[28].mxu0  ;;  %v1330_v13 = vmax.f32 %v1314_v29, 0.0 }
 0x12e   :  { %v1333_v35 = vmax.f32 %v1317_v31, 0.0  ;;  %v1265_v9 = vmax.f32 %v1233_v39, %v1724_v33  ;;  %v1756_v10 = vpop.f32.mrb[28].mxu1  ;;  %v864_v12 = vpop.f32.mrb[29].mxu0 }
 0x12f   :  { %v1331_v11 = vmax.f32 %v1315_v32, 0.0  ;;  %v1263_v14 = vmax.f32 %v1231_v42, %v864_v12  ;;  %v1137_v16 = vpop.f32.mrb[29].mxu1  ;;  %v1725_v48 = vpop.f32.mrb[30].mxu0 }
 0x130   :  { %v1547_v49 = vpack.c.bf16 %v1333_v35, %v1332_v34  ;;  %v1297_v50 = vmax.f32 %v1265_v9, %v1756_v10  ;;  %v1266_v51 = vmax.f32 %v1234_v45, %v1725_v48  ;;  %v1757_v53 = vpop.f32.mrb[30].mxu1  ;;  %v867_v54 = vpop.f32.mrb[31].mxu0 }
 0x131   :  { %v1542_v36 = vpack.c.bf16 %v1331_v11, %v1330_v13  ;;  %v1295_v37 = vmax.f32 %v1263_v14, %v1137_v16  ;;  %v1264_v39 = vmax.f32 %v1232_v47, %v867_v54  ;;  %v1140_v55 = vpop.f32.mrb[31].mxu1 }
 0x132   :  { %1563 = vst [vmem:[%s2196_s6 + $0x28] sm:$0xff] %v1547_v49   ;;  %v1320_v38 = vadd.f32 %v2118_v52, %v1297_v50  ;;  %v1298_v40 = vmax.f32 %v1266_v51, %v1757_v53 }
 0x133   :  { %1562 = vst [vmem:[%s2196_s6 + $0x20] sm:$0xff] %v1542_v36   ;;  %v1318_v41 = vadd.f32 %v2118_v52, %v1295_v37  ;;  %v1296_v42 = vmax.f32 %v1264_v39, %v1140_v55 }
 0x134   :  { %v1321_v43 = vadd.f32 %v2118_v52, %v1298_v40  ;;  %v1336_v45 = vmax.f32 %v1320_v38, 0.0 }
 0x135   :  { %v1319_v44 = vadd.f32 %v2118_v52, %v1296_v42  ;;  %v1334_v47 = vmax.f32 %v1318_v41, 0.0 }
 0x136   :  { %v1337_v46 = vmax.f32 %v1321_v43, 0.0 }
 0x137   :  { %v1335_v15 = vmax.f32 %v1319_v44, 0.0 }
 0x138   :  { %v1557_v56 = vpack.c.bf16 %v1337_v46, %v1336_v45 }
 0x139   :  { %v1552_v18 = vpack.c.bf16 %v1335_v15, %v1334_v47 }
 0x13a   :  { %1565 = vst [vmem:[%s2196_s6 + $0x38] sm:$0xff] %v1557_v56  }
 0x13b   :  { %1564 = vst [vmem:[%s2196_s6 + $0x30] sm:$0xff] %v1552_v18  }

// kernel: conv_autoencoder_forward.9
= control target key start
LH: loop header
LB: loop body
LE: loop exit
PB: predicated region body
PF: predicated region fallthrough
CT: control target
= control target key end

     0   :  { %s2386_s4 = inlined_call_operand.vmem [shape: bf16[384,128], index: 4, kind: input, shape index: {}]   ;;  %s2387_s0 = inlined_call_operand.vmem [shape: bf16[32,384], index: 0, kind: input, shape index: {}]   ;;  %s2388_s1 = inlined_call_operand.vmem [shape: bf16[32,384], index: 1, kind: input, shape index: {}]   ;;  %s2389_s2 = inlined_call_operand.vmem [shape: bf16[32,384], index: 2, kind: input, shape index: {}]   ;;  %s2390_s3 = inlined_call_operand.vmem [shape: bf16[32,384], index: 3, kind: input, shape index: {}]   ;;  %s2391_s5 = inlined_call_operand.vmem [shape: f32[1,128], index: 5, kind: input, shape index: {}]   ;;  %s2392_s6 = inlined_call_operand.vmem [shape: bf16[32,128], index: 6, kind: output, shape index: {}]  }
   0x1   :  { %v1854_v0 = vld [vmem:[%s2386_s4 + $0x40] sm:$0xff]   ;;  %v1857_v3 = vld [vmem:[%s2386_s4 + $0x48] sm:$0xff]   ;;  %v1860_v6 = vld [vmem:[%s2386_s4 + $0x50] sm:$0xff]  }
   0x2   :  { %v1855_v1 = vld [vmem:[%s2386_s4] sm:$0xff]   ;;  %1622 = vmatprep.subr.bf16.mxu0 %v1854_v0  ;;  %v1858_v4 = vld [vmem:[%s2386_s4 + $0x8] sm:$0xff]   ;;  %v1861_v7 = vld [vmem:[%s2386_s4 + $0x10] sm:$0xff]  }
   0x3   :  { %v1856_v2 = vld [vmem:[%s2386_s4 + $0x80] sm:$0xff]   ;;  %1623 = vmatpush3.bf16.msra.mxu0 %v1855_v1  ;;  %v1859_v5 = vld [vmem:[%s2386_s4 + $0x88] sm:$0xff]   ;;  %v1862_v8 = vld [vmem:[%s2386_s4 + $0x90] sm:$0xff]  }
   0x4   :  { %1774 = vmatprep.subr.bf16.mxu1 %v1856_v2  ;;  %1624 = vmatprep.subr.bf16.mxu0 %v1857_v3  ;;  %v1863_v9 = vld [vmem:[%s2386_s4 + $0x58] sm:$0xff]   ;;  %v1866_v12 = vld [vmem:[%s2386_s4 + $0x60] sm:$0xff]   ;;  %v1869_v15 = vld [vmem:[%s2386_s4 + $0x68] sm:$0xff]  }
   0x5   :  { %1775 = vmatpush3.bf16.msra.mxu1 %v1856_v2  ;;  %v1864_v10 = vld [vmem:[%s2386_s4 + $0x18] sm:$0xff]   ;;  %v1868_v13 = vld [vmem:[%s2386_s4 + $0xa0] sm:$0xff]   ;;  %v1871_v16 = vld [vmem:[%s2386_s4 + $0xa8] sm:$0xff]  }
   0x6   :  { %1776 = vmatprep.subr.bf16.mxu1 %v1859_v5  ;;  %v1865_v11 = vld [vmem:[%s2386_s4 + $0x98] sm:$0xff]   ;;  %v1867_v14 = vld [vmem:[%s2386_s4 + $0x20] sm:$0xff]   ;;  %v1870_v17 = vld [vmem:[%s2386_s4 + $0x28] sm:$0xff]  }
   0x7   :  { %1625 = vmatpush3.bf16.msra.mxu0 %v1858_v4  ;;  %v1872_v18 = vld [vmem:[%s2386_s4 + $0x70] sm:$0xff]   ;;  %v1875_v21 = vld [vmem:[%s2386_s4 + $0x78] sm:$0xff]   ;;  %v1878_v26 = vld [vmem:[%s2387_s0] ss:$12 sps:$4 sm:$0xff]  }
   0x8   :  { %1626 = vmatprep.subr.bf16.mxu0 %v1860_v6  ;;  %v1874_v19 = vld [vmem:[%s2386_s4 + $0xb0] sm:$0xff]   ;;  %v1876_v22 = vld [vmem:[%s2386_s4 + $0x38] sm:$0xff]   ;;  %v1881_v27 = vld [vmem:[%s2386_s4 + $0x40] sm:$0xff]  }
   0x9   :  { %1777 = vmatpush3.bf16.msra.mxu1 %v1859_v5  ;;  %v1873_v20 = vld [vmem:[%s2386_s4 + $0x30] sm:$0xff]   ;;  %v1877_v24 = vld [vmem:[%s2386_s4 + $0xb8] sm:$0xff]   ;;  %v1883_v28 = vld [vmem:[%s2386_s4] sm:$0xff]  }
   0xa   :  { %1778 = vmatprep.subr.bf16.mxu1 %v1862_v8  ;;  %v1880_v23 = vld [vmem:[%s2387_s0 + $0x4] ss:$12 sps:$4 sm:$0xff]   ;;  %v1882_v25 = vld [vmem:[%s2387_s0 + $0x8] ss:$12 sps:$4 sm:$0xff]   ;;  %v1884_v30 = vld [vmem:[%s2387_s0 + $0x20] ss:$12 sps:$4 sm:$0xff]  }
   0xb   :  { %1627 = vmatpush3.bf16.msra.mxu0 %v1861_v7  ;;  %312 = vmatprep.mubr.bf16.mxu0 %v1880_v23  ;;  %v1885_v29 = vld [vmem:[%s2386_s4 + $0x80] sm:$0xff]   ;;  %v1886_v31 = vld [vmem:[%s2386_s4 + $0x48] sm:$0xff]   ;;  %v1892_v35 = vld [vmem:[%s2386_s4 + $0x50] sm:$0xff]  }
   0xc   :  { %1628 = vmatprep.subr.bf16.mxu0 %v1863_v9  ;;  %1790 = vmatprep.mubr.bf16.mxu1 %v1882_v25  ;;  %v1888_v32 = vld [vmem:[%s2386_s4 + $0x88] sm:$0xff]   ;;  %v1891_v36 = vld [vmem:[%s2387_s0 + $0x18] ss:$12 sps:$4 sm:$0xff]   ;;  %v1894_v37 = vld [vmem:[%s2386_s4 + $0x90] sm:$0xff]  }
   0xd   :  { %1779 = vmatpush3.bf16.msra.mxu1 %v1862_v8  ;;  %v1889_v33 = vld [vmem:[%s2387_s0 + $0x1c] ss:$12 sps:$4 sm:$0xff]   ;;  %v1893_v38 = vld [vmem:[%s2386_s4 + $0x10] sm:$0xff]   ;;  %v1898_v42 = vld [vmem:[%s2386_s4 + $0x60] sm:$0xff]  }
   0xe   :  { %1780 = vmatprep.subr.bf16.mxu1 %v1865_v11  ;;  %v1887_v34 = vld [vmem:[%s2386_s4 + $0x8] sm:$0xff]   ;;  %v1895_v39 = vld [vmem:[%s2386_s4 + $0x58] sm:$0xff]   ;;  %v1900_v43 = vld [vmem:[%s2386_s4 + $0xa0] sm:$0xff]  }
   0xf   :  { %1629 = vmatpush3.bf16.msra.mxu0 %v1864_v10  ;;  %v1897_v40 = vld [vmem:[%s2386_s4 + $0x98] sm:$0xff]   ;;  %v1899_v44 = vld [vmem:[%s2386_s4 + $0x20] sm:$0xff]   ;;  %v1901_v45 = vld [vmem:[%s2386_s4 + $0x68] sm:$0xff]  }
  0x10   :  { %1630 = vmatprep.subr.bf16.mxu0 %v1866_v12  ;;  %v1896_v41 = vld [vmem:[%s2386_s4 + $0x18] sm:$0xff]   ;;  %v1903_v46 = vld [vmem:[%s2386_s4 + $0xa8] sm:$0xff]   ;;  %v1904_v48 = vld [vmem:[%s2386_s4 + $0x70] sm:$0xff]  }
  0x11   :  { %1781 = vmatpush3.bf16.msra.mxu1 %v1865_v11  ;;  %v1902_v47 = vld [vmem:[%s2386_s4 + $0x28] sm:$0xff]   ;;  %v1905_v49 = vld [vmem:[%s2386_s4 + $0x30] sm:$0xff]   ;;  %v1907_v53 = vld [vmem:[%s2386_s4 + $0x78] sm:$0xff]  }
  0x12   :  { %1782 = vmatprep.subr.bf16.mxu1 %v1868_v13  ;;  %v1912_v50 = vld [vmem:[%s2388_s1 + $0x4] ss:$12 sps:$4 sm:$0xff]   ;;  %v1914_v52 = vld [vmem:[%s2388_s1 + $0x8] ss:$12 sps:$4 sm:$0xff]   ;;  %v1909_v54 = vld [vmem:[%s2386_s4 + $0xb8] sm:$0xff]  }
  0x13   :  { %1631 = vmatpush3.bf16.msra.mxu0 %v1867_v14  ;;  %v1906_v51 = vld [vmem:[%s2386_s4 + $0xb0] sm:$0xff]   ;;  %v1908_v55 = vld [vmem:[%s2386_s4 + $0x38] sm:$0xff]   ;;  %v1910_v56 = vld [vmem:[%s2388_s1] ss:$12 sps:$4 sm:$0xff]  }
  0x14   :  { %1632 = vmatprep.subr.bf16.mxu0 %v1869_v15  ;;  %v1913_v57 = vld [vmem:[%s2386_s4 + $0x40] sm:$0xff]   ;;  %v1921_v61 = vld [vmem:[%s2388_s1 + $0x1c] ss:$12 sps:$4 sm:$0xff]   ;;  %v1924_v1 = vld [vmem:[%s2386_s4 + $0x50] sm:$0xff]  }
  0x15   :  { %1783 = vmatpush3.bf16.msra.mxu1 %v1868_v13  ;;  %v1915_v58 = vld [vmem:[%s2386_s4] sm:$0xff]   ;;  %v1918_v62 = vld [vmem:[%s2386_s4 + $0x48] sm:$0xff]   ;;  %v1926_v3 = vld [vmem:[%s2386_s4 + $0x90] sm:$0xff]  }
  0x16   :  { %1784 = vmatprep.subr.bf16.mxu1 %v1871_v16  ;;  %v1916_v59 = vld [vmem:[%s2388_s1 + $0x20] ss:$12 sps:$4 sm:$0xff]   ;;  %v1923_v2 = vld [vmem:[%s2388_s1 + $0x18] ss:$12 sps:$4 sm:$0xff]   ;;  %v1925_v4 = vld [vmem:[%s2386_s4 + $0x10] sm:$0xff]  }
  0x17   :  { %1633 = vmatpush3.bf16.msra.mxu0 %v1870_v17  ;;  %v1917_v60 = vld [vmem:[%s2386_s4 + $0x80] sm:$0xff]   ;;  %v1920_v63 = vld [vmem:[%s2386_s4 + $0x88] sm:$0xff]   ;;  %v1927_v5 = vld [vmem:[%s2386_s4 + $0x58] sm:$0xff]  }
  0x18   :  { %1634 = vmatprep.subr.bf16.mxu0 %v1872_v18  ;;  %v1919_v0 = vld [vmem:[%s2386_s4 + $0x8] sm:$0xff]   ;;  %v1929_v6 = vld [vmem:[%s2386_s4 + $0x98] sm:$0xff]   ;;  %v1930_v8 = vld [vmem:[%s2386_s4 + $0x60] sm:$0xff]  }
  0x19   :  { %1785 = vmatpush3.bf16.msra.mxu1 %v1871_v16  ;;  %v1928_v7 = vld [vmem:[%s2386_s4 + $0x18] sm:$0xff]   ;;  %v1932_v9 = vld [vmem:[%s2386_s4 + $0xa0] sm:$0xff]   ;;  %v1933_v11 = vld [vmem:[%s2386_s4 + $0x68] sm:$0xff]  }
  0x1a   :  { %1786 = vmatprep.subr.bf16.mxu1 %v1874_v19  ;;  %v1931_v10 = vld [vmem:[%s2386_s4 + $0x20] sm:$0xff]   ;;  %v1934_v12 = vld [vmem:[%s2386_s4 + $0x28] sm:$0xff]   ;;  %v1936_v15 = vld [vmem:[%s2386_s4 + $0x70] sm:$0xff]  }
  0x1b   :  { %1635 = vmatpush3.bf16.msra.mxu0 %v1873_v20  ;;  %v1935_v13 = vld [vmem:[%s2386_s4 + $0xa8] sm:$0xff]   ;;  %v1944_v14 = vld [vmem:[%s2389_s2 + $0x4] ss:$12 sps:$4 sm:$0xff]   ;;  %v1941_v20 = vld [vmem:[%s2386_s4 + $0xb8] sm:$0xff]  }
  0x1c   :  { %1636 = vmatprep.subr.bf16.mxu0 %v1875_v21  ;;  %v1946_v16 = vld [vmem:[%s2389_s2 + $0x8] ss:$12 sps:$4 sm:$0xff]   ;;  %v1940_v21 = vld [vmem:[%s2386_s4 + $0x38] sm:$0xff]   ;;  %v1945_v23 = vld [vmem:[%s2386_s4 + $0x40] sm:$0xff]  }
  0x1d   :  { %1787 = vmatpush3.bf16.msra.mxu1 %v1874_v19  ;;  %v1938_v17 = vld [vmem:[%s2386_s4 + $0xb0] sm:$0xff]   ;;  %v1939_v19 = vld [vmem:[%s2386_s4 + $0x78] sm:$0xff]   ;;  %v1948_v25 = vld [vmem:[%s2389_s2 + $0x20] ss:$12 sps:$4 sm:$0xff]  }
  0x1e   :  { %1788 = vmatprep.subr.bf16.mxu1 %v1877_v24  ;;  %v1937_v18 = vld [vmem:[%s2386_s4 + $0x30] sm:$0xff]  }
  0x1f   :  { %1637 = vmatpush3.bf16.msra.mxu0 %v1876_v22  ;;  %v1942_v22 = vld [vmem:[%s2389_s2] ss:$12 sps:$4 sm:$0xff]  }
  0x20   :  { %1660 = vmatprep.subr.bf16.mxu0 %v1881_v27  ;;  %v1953_v27 = vld [vmem:[%s2389_s2 + $0x1c] ss:$12 sps:$4 sm:$0xff]  }
  0x21   :  { %1789 = vmatpush3.bf16.msra.mxu1 %v1877_v24  ;;  %v1947_v24 = vld [vmem:[%s2386_s4] sm:$0xff]  }
  0x22   :  { %313 = vmatmul.mubr.bf16.vlgmr.msra.gmra.mrb[0].mxu0 %v1878_v26  ;;  %1794 = vmatprep.subr.bf16.mxu1 %v1885_v29  ;;  %v1949_v26 = vld [vmem:[%s2386_s4 + $0x80] sm:$0xff]  }
  0x23   :  { %1661 = vmatpush3.bf16.msra.mxu0 %v1883_v28  ;;  %320 = vmatprep.mubr.bf16.mxu0 %v1889_v33  ;;  %v1950_v28 = vld [vmem:[%s2386_s4 + $0x48] sm:$0xff]   ;;  %v1958_v33 = vld [vmem:[%s2386_s4 + $0x90] sm:$0xff]  }
  0x24   :  { %1791 = vmatmul.mubr.bf16.vlgmr.msra.gmra.mrb[0].mxu1 %v1884_v30  ;;  %1662 = vmatprep.subr.bf16.mxu0 %v1886_v31  ;;  %v1951_v30 = vld [vmem:[%s2386_s4 + $0x8] sm:$0xff]   ;;  %v1956_v31 = vld [vmem:[%s2386_s4 + $0x50] sm:$0xff]  }
  0x25   :  { %1795 = vmatpush3.bf16.msra.mxu1 %v1885_v29  ;;  %1810 = vmatprep.mubr.bf16.mxu1 %v1914_v52  ;;  %v1952_v29 = vld [vmem:[%s2386_s4 + $0x88] sm:$0xff]  }
  0x26   :  { %1796 = vmatprep.subr.bf16.mxu1 %v1888_v32  ;;  %v1974_v52 = vld [vmem:[%s2390_s3] ss:$12 sps:$4 sm:$0xff]  }
  0x27   :  { %1663 = vmatpush3.bf16.msra.mxu0 %v1887_v34  ;;  %v1957_v34 = vld [vmem:[%s2386_s4 + $0x10] sm:$0xff]  }
  0x28   :  { %1664 = vmatprep.subr.bf16.mxu0 %v1892_v35  ;;  %v1959_v35 = vld [vmem:[%s2386_s4 + $0x58] sm:$0xff]  }
  0x29   :  { %1797 = vmatpush3.bf16.msra.mxu1 %v1888_v32  ;;  %v1955_v32 = vld [vmem:[%s2389_s2 + $0x18] ss:$12 sps:$4 sm:$0xff]  }
  0x2a   :  { %321 = vmatmul.mubr.bf16.gmra.mrb[4].mxu0 %v1891_v36  ;;  %1798 = vmatprep.subr.bf16.mxu1 %v1894_v37  ;;  %v1961_v36 = vld [vmem:[%s2386_s4 + $0x98] sm:$0xff]  }
  0x2b   :  { %1665 = vmatpush3.bf16.msra.mxu0 %v1893_v38  ;;  %654 = vmatprep.mubr.bf16.mxu0 %v1912_v50  ;;  %v1962_v38 = vld [vmem:[%s2386_s4 + $0x60] sm:$0xff]   ;;  %v1973_v50 = vld [vmem:[%s2386_s4 + $0xb8] sm:$0xff]  }
  0x2c   :  { %1666 = vmatprep.subr.bf16.mxu0 %v1895_v39  ;;  %v1963_v39 = vld [vmem:[%s2386_s4 + $0x20] sm:$0xff]  }
  0x2d   :  { %1799 = vmatpush3.bf16.msra.mxu1 %v1894_v37  ;;  %v1960_v37 = vld [vmem:[%s2386_s4 + $0x18] sm:$0xff]  }
  0x2e   :  { %1800 = vmatprep.subr.bf16.mxu1 %v1897_v40 }
  0x2f   :  { %1667 = vmatpush3.bf16.msra.mxu0 %v1896_v41  ;;  %v1965_v41 = vld [vmem:[%s2386_s4 + $0x68] sm:$0xff]  }
  0x30   :  { %1668 = vmatprep.subr.bf16.mxu0 %v1898_v42  ;;  %v1976_v42 = vld [vmem:[%s2390_s3 + $0x4] ss:$12 sps:$4 sm:$0xff]  }
  0x31   :  { %1801 = vmatpush3.bf16.msra.mxu1 %v1897_v40  ;;  %v1964_v40 = vld [vmem:[%s2386_s4 + $0xa0] sm:$0xff]  }
  0x32   :  { %1802 = vmatprep.subr.bf16.mxu1 %v1900_v43 }
  0x33   :  { %1669 = vmatpush3.bf16.msra.mxu0 %v1899_v44  ;;  %v1967_v44 = vld [vmem:[%s2386_s4 + $0xa8] sm:$0xff]  }
  0x34   :  { %1670 = vmatprep.subr.bf16.mxu0 %v1901_v45  ;;  %v1966_v45 = vld [vmem:[%s2386_s4 + $0x28] sm:$0xff]  }
  0x35   :  { %1803 = vmatpush3.bf16.msra.mxu1 %v1900_v43  ;;  %v1977_v43 = vld [vmem:[%s2390_s3 + $0x8] ss:$12 sps:$4 sm:$0xff]  }
  0x36   :  { %1804 = vmatprep.subr.bf16.mxu1 %v1903_v46 }
  0x37   :  { %1671 = vmatpush3.bf16.msra.mxu0 %v1902_v47  ;;  %v1970_v47 = vld [vmem:[%s2386_s4 + $0xb0] sm:$0xff]  }
  0x38   :  { %1672 = vmatprep.subr.bf16.mxu0 %v1904_v48  ;;  %v1969_v48 = vld [vmem:[%s2386_s4 + $0x30] sm:$0xff]  }
  0x39   :  { %1805 = vmatpush3.bf16.msra.mxu1 %v1903_v46  ;;  %v1968_v46 = vld [vmem:[%s2386_s4 + $0x70] sm:$0xff]  }
  0x3a   :  { %1806 = vmatprep.subr.bf16.mxu1 %v1906_v51 }
  0x3b   :  { %1673 = vmatpush3.bf16.msra.mxu0 %v1905_v49  ;;  %v1971_v49 = vld [vmem:[%s2386_s4 + $0x78] sm:$0xff]  }
  0x3c   :  { %1674 = vmatprep.subr.bf16.mxu0 %v1907_v53  ;;  %v1979_v53 = vld [vmem:[%s2390_s3 + $0x1c] ss:$12 sps:$4 sm:$0xff]  }
  0x3d   :  { %1807 = vmatpush3.bf16.msra.mxu1 %v1906_v51  ;;  %v1972_v51 = vld [vmem:[%s2386_s4 + $0x38] sm:$0xff]  }
  0x3e   :  { %1808 = vmatprep.subr.bf16.mxu1 %v1909_v54 }
  0x3f   :  { %1675 = vmatpush3.bf16.msra.mxu0 %v1908_v55  ;;  %v1981_v55 = vld [vmem:[%s2390_s3 + $0x18] ss:$12 sps:$4 sm:$0xff]  }
  0x40   :  { %1698 = vmatprep.subr.bf16.mxu0 %v1913_v57 }
  0x41   :  { %1809 = vmatpush3.bf16.msra.mxu1 %v1909_v54  ;;  %v1978_v54 = vld [vmem:[%s2390_s3 + $0x20] ss:$12 sps:$4 sm:$0xff]  }
  0x42   :  { %655 = vmatmul.mubr.bf16.vlgmr.msra.gmra.mrb[8].mxu0 %v1910_v56  ;;  %1814 = vmatprep.subr.bf16.mxu1 %v1917_v60 }
  0x43   :  { %1699 = vmatpush3.bf16.msra.mxu0 %v1915_v58  ;;  %662 = vmatprep.mubr.bf16.mxu0 %v1921_v61 }
  0x44   :  { %1811 = vmatmul.mubr.bf16.vlgmr.msra.gmra.mrb[4].mxu1 %v1916_v59  ;;  %1700 = vmatprep.subr.bf16.mxu0 %v1918_v62 }
  0x45   :  { %1815 = vmatpush3.bf16.msra.mxu1 %v1917_v60  ;;  %1830 = vmatprep.mubr.bf16.mxu1 %v1946_v16 }
  0x46   :  { %1816 = vmatprep.subr.bf16.mxu1 %v1920_v63 }
  0x47   :  { %1701 = vmatpush3.bf16.msra.mxu0 %v1919_v0 }
  0x48   :  { %1702 = vmatprep.subr.bf16.mxu0 %v1924_v1 }
  0x49   :  { %1817 = vmatpush3.bf16.msra.mxu1 %v1920_v63 }
  0x4a   :  { %663 = vmatmul.mubr.bf16.gmra.mrb[12].mxu0 %v1923_v2  ;;  %1818 = vmatprep.subr.bf16.mxu1 %v1926_v3 }
  0x4b   :  { %1703 = vmatpush3.bf16.msra.mxu0 %v1925_v4  ;;  %996 = vmatprep.mubr.bf16.mxu0 %v1944_v14 }
  0x4c   :  { %1704 = vmatprep.subr.bf16.mxu0 %v1927_v5 }
  0x4d   :  { %1819 = vmatpush3.bf16.msra.mxu1 %v1926_v3 }
  0x4e   :  { %1820 = vmatprep.subr.bf16.mxu1 %v1929_v6 }
  0x4f   :  { %1705 = vmatpush3.bf16.msra.mxu0 %v1928_v7 }
  0x50   :  { %1706 = vmatprep.subr.bf16.mxu0 %v1930_v8 }
  0x51   :  { %1821 = vmatpush3.bf16.msra.mxu1 %v1929_v6 }
  0x52   :  { %1822 = vmatprep.subr.bf16.mxu1 %v1932_v9 }
  0x53   :  { %1707 = vmatpush3.bf16.msra.mxu0 %v1931_v10 }
  0x54   :  { %1708 = vmatprep.subr.bf16.mxu0 %v1933_v11 }
  0x55   :  { %1823 = vmatpush3.bf16.msra.mxu1 %v1932_v9 }
  0x56   :  { %1824 = vmatprep.subr.bf16.mxu1 %v1935_v13 }
  0x57   :  { %1709 = vmatpush3.bf16.msra.mxu0 %v1934_v12 }
  0x58   :  { %1710 = vmatprep.subr.bf16.mxu0 %v1936_v15 }
  0x59   :  { %1825 = vmatpush3.bf16.msra.mxu1 %v1935_v13 }
  0x5a   :  { %1826 = vmatprep.subr.bf16.mxu1 %v1938_v17 }
  0x5b   :  { %1711 = vmatpush3.bf16.msra.mxu0 %v1937_v18 }
  0x5c   :  { %1712 = vmatprep.subr.bf16.mxu0 %v1939_v19 }
  0x5d   :  { %1827 = vmatpush3.bf16.msra.mxu1 %v1938_v17 }
  0x5e   :  { %1828 = vmatprep.subr.bf16.mxu1 %v1941_v20 }
  0x5f   :  { %1713 = vmatpush3.bf16.msra.mxu0 %v1940_v21 }
  0x60   :  { %1736 = vmatprep.subr.bf16.mxu0 %v1945_v23 }
  0x61   :  { %1829 = vmatpush3.bf16.msra.mxu1 %v1941_v20 }
  0x62   :  { %997 = vmatmul.mubr.bf16.vlgmr.msra.gmra.mrb[16].mxu0 %v1942_v22  ;;  %1834 = vmatprep.subr.bf16.mxu1 %v1949_v26 }
  0x63   :  { %1737 = vmatpush3.bf16.msra.mxu0 %v1947_v24  ;;  %1004 = vmatprep.mubr.bf16.mxu0 %v1953_v27 }
  0x64   :  { %1831 = vmatmul.mubr.bf16.vlgmr.msra.gmra.mrb[8].mxu1 %v1948_v25  ;;  %1738 = vmatprep.subr.bf16.mxu0 %v1950_v28 }
  0x65   :  { %1835 = vmatpush3.bf16.msra.mxu1 %v1949_v26  ;;  %1850 = vmatprep.mubr.bf16.mxu1 %v1977_v43 }
  0x66   :  { %1836 = vmatprep.subr.bf16.mxu1 %v1952_v29 }
  0x67   :  { %1739 = vmatpush3.bf16.msra.mxu0 %v1951_v30 }
  0x68   :  { %1740 = vmatprep.subr.bf16.mxu0 %v1956_v31 }
  0x69   :  { %1837 = vmatpush3.bf16.msra.mxu1 %v1952_v29 }
  0x6a   :  { %1005 = vmatmul.mubr.bf16.gmra.mrb[20].mxu0 %v1955_v32  ;;  %1838 = vmatprep.subr.bf16.mxu1 %v1958_v33 }
  0x6b   :  { %1741 = vmatpush3.bf16.msra.mxu0 %v1957_v34  ;;  %1338 = vmatprep.mubr.bf16.mxu0 %v1976_v42 }
  0x6c   :  { %1742 = vmatprep.subr.bf16.mxu0 %v1959_v35 }
  0x6d   :  { %1839 = vmatpush3.bf16.msra.mxu1 %v1958_v33 }
  0x6e   :  { %1840 = vmatprep.subr.bf16.mxu1 %v1961_v36 }
  0x6f   :  { %1743 = vmatpush3.bf16.msra.mxu0 %v1960_v37 }
  0x70   :  { %1744 = vmatprep.subr.bf16.mxu0 %v1962_v38 }
  0x71   :  { %1841 = vmatpush3.bf16.msra.mxu1 %v1961_v36 }
  0x72   :  { %1842 = vmatprep.subr.bf16.mxu1 %v1964_v40 }
  0x73   :  { %1745 = vmatpush3.bf16.msra.mxu0 %v1963_v39 }
  0x74   :  { %1746 = vmatprep.subr.bf16.mxu0 %v1965_v41 }
  0x75   :  { %1843 = vmatpush3.bf16.msra.mxu1 %v1964_v40 }
  0x76   :  { %1844 = vmatprep.subr.bf16.mxu1 %v1967_v44 }
  0x77   :  { %1747 = vmatpush3.bf16.msra.mxu0 %v1966_v45 }
  0x78   :  { %1748 = vmatprep.subr.bf16.mxu0 %v1968_v46 }
  0x79   :  { %1845 = vmatpush3.bf16.msra.mxu1 %v1967_v44 }
  0x7a   :  { %1846 = vmatprep.subr.bf16.mxu1 %v1970_v47 }
  0x7b   :  { %1749 = vmatpush3.bf16.msra.mxu0 %v1969_v48 }
  0x7c   :  { %1750 = vmatprep.subr.bf16.mxu0 %v1971_v49 }
  0x7d   :  { %1847 = vmatpush3.bf16.msra.mxu1 %v1970_v47 }
  0x7e   :  { %1848 = vmatprep.subr.bf16.mxu1 %v1973_v50 }
  0x7f   :  { %1751 = vmatpush3.bf16.msra.mxu0 %v1972_v51 }
  0x81   :  { %1849 = vmatpush3.bf16.msra.mxu1 %v1973_v50 }
  0x82   :  { %1339 = vmatmul.mubr.bf16.vlgmr.msra.gmra.mrb[24].mxu0 %v1974_v52 }
  0x83   :  { %1346 = vmatprep.mubr.bf16.mxu0 %v1979_v53 }
  0x84   :  { %1851 = vmatmul.mubr.bf16.vlgmr.msra.gmra.mrb[12].mxu1 %v1978_v54 }
  0x8a   :  { %1347 = vmatmul.mubr.bf16.gmra.mrb[28].mxu0 %v1981_v55 }
  0xf5   :  { %v1638_v56 = vpop.f32.mrb[0].mxu0 }
  0xf6   :  { %v1639_v57 = vpop.f32.mrb[1].mxu0 }
  0xf7   :  { %v1640_v58 = vadd.f32 %v1639_v57, %v1638_v56  ;;  %v1641_v59 = vpop.f32.mrb[2].mxu0  ;;  %v1792_v60 = vpop.f32.mrb[0].mxu1 }
  0xf8   :  { %v1642_v61 = vpop.f32.mrb[3].mxu0  ;;  %v363_v62 = vpop.f32.mrb[1].mxu1 }
  0xf9   :  { %v1643_v63 = vadd.f32 %v1642_v61, %v1641_v59  ;;  %v364_v0 = vadd.f32 %v1640_v58, %v363_v62  ;;  %v1793_v1 = vpop.f32.mrb[2].mxu1 }
  0xfa   :  { %v366_v2 = vpop.f32.mrb[3].mxu1 }
  0xfb   :  { %v367_v3 = vadd.f32 %v1643_v63, %v366_v2 }
  0xfd   :  { %v1644_v4 = vpop.f32.mrb[4].mxu0 }
  0xfe   :  { %v1645_v5 = vpop.f32.mrb[5].mxu0 }
  0xff   :  { %v1646_v6 = vadd.f32 %v1645_v5, %v1644_v4  ;;  %v1647_v7 = vpop.f32.mrb[6].mxu0 }
 0x100   :  { %v1648_v8 = vpop.f32.mrb[7].mxu0 }
 0x101   :  { %v372_v9 = vadd.f32 %v1792_v60, %v1646_v6  ;;  %v1649_v10 = vadd.f32 %v1648_v8, %v1647_v7  ;;  %v1602_v6 = vld [vmem:[%s2391_s5] ss:$0 sm:$0xff] }
 0x103   :  { %v375_v11 = vadd.f32 %v1793_v1, %v1649_v10 }
 0x115   :  { %v1676_v12 = vpop.f32.mrb[8].mxu0 }
 0x116   :  { %v1677_v13 = vpop.f32.mrb[9].mxu0 }
 0x117   :  { %v1678_v14 = vadd.f32 %v1677_v13, %v1676_v12  ;;  %v1679_v15 = vpop.f32.mrb[10].mxu0  ;;  %v1812_v16 = vpop.f32.mrb[4].mxu1 }
 0x118   :  { %v1680_v17 = vpop.f32.mrb[11].mxu0  ;;  %v705_v18 = vpop.f32.mrb[5].mxu1 }
 0x119   :  { %v1681_v19 = vadd.f32 %v1680_v17, %v1679_v15  ;;  %v706_v20 = vadd.f32 %v1678_v14, %v705_v18  ;;  %v1813_v21 = vpop.f32.mrb[6].mxu1 }
 0x11a   :  { %v708_v22 = vpop.f32.mrb[7].mxu1 }
 0x11b   :  { %v1423_v23 = vmax.f32 %v364_v0, %v706_v20  ;;  %v709_v24 = vadd.f32 %v1681_v19, %v708_v22 }
 0x11d   :  { %v1424_v25 = vmax.f32 %v367_v3, %v709_v24  ;;  %v1682_v26 = vpop.f32.mrb[12].mxu0 }
 0x11e   :  { %v1683_v27 = vpop.f32.mrb[13].mxu0 }
 0x11f   :  { %v1684_v28 = vadd.f32 %v1683_v27, %v1682_v26  ;;  %v1685_v29 = vpop.f32.mrb[14].mxu0 }
 0x120   :  { %v1686_v30 = vpop.f32.mrb[15].mxu0 }
 0x121   :  { %v714_v31 = vadd.f32 %v1812_v16, %v1684_v28  ;;  %v1687_v32 = vadd.f32 %v1686_v30, %v1685_v29 }
 0x123   :  { %v1425_v33 = vmax.f32 %v372_v9, %v714_v31  ;;  %v717_v34 = vadd.f32 %v1813_v21, %v1687_v32 }
 0x125   :  { %v1426_v35 = vmax.f32 %v375_v11, %v717_v34 }
 0x135   :  { %v1714_v36 = vpop.f32.mrb[16].mxu0 }
 0x136   :  { %v1715_v37 = vpop.f32.mrb[17].mxu0 }
 0x137   :  { %v1716_v38 = vadd.f32 %v1715_v37, %v1714_v36  ;;  %v1717_v39 = vpop.f32.mrb[18].mxu0  ;;  %v1832_v40 = vpop.f32.mrb[8].mxu1 }
 0x138   :  { %v1718_v41 = vpop.f32.mrb[19].mxu0  ;;  %v1047_v42 = vpop.f32.mrb[9].mxu1 }
 0x139   :  { %v1719_v43 = vadd.f32 %v1718_v41, %v1717_v39  ;;  %v1048_v44 = vadd.f32 %v1716_v38, %v1047_v42  ;;  %v1833_v45 = vpop.f32.mrb[10].mxu1 }
 0x13a   :  { %v1050_v46 = vpop.f32.mrb[11].mxu1 }
 0x13b   :  { %v1431_v47 = vmax.f32 %v1423_v23, %v1048_v44  ;;  %v1051_v48 = vadd.f32 %v1719_v43, %v1050_v46 }
 0x13d   :  { %v1432_v49 = vmax.f32 %v1424_v25, %v1051_v48  ;;  %v1720_v50 = vpop.f32.mrb[20].mxu0 }
 0x13e   :  { %v1721_v51 = vpop.f32.mrb[21].mxu0 }
 0x13f   :  { %v1722_v52 = vadd.f32 %v1721_v51, %v1720_v50  ;;  %v1723_v53 = vpop.f32.mrb[22].mxu0 }
 0x140   :  { %v1724_v54 = vpop.f32.mrb[23].mxu0 }
 0x141   :  { %v1056_v55 = vadd.f32 %v1832_v40, %v1722_v52  ;;  %v1725_v56 = vadd.f32 %v1724_v54, %v1723_v53 }
 0x143   :  { %v1433_v57 = vmax.f32 %v1425_v33, %v1056_v55  ;;  %v1059_v58 = vadd.f32 %v1833_v45, %v1725_v56 }
 0x145   :  { %v1434_v59 = vmax.f32 %v1426_v35, %v1059_v58 }
 0x155   :  { %v1752_v60 = vpop.f32.mrb[24].mxu0 }
 0x156   :  { %v1753_v61 = vpop.f32.mrb[25].mxu0 }
 0x157   :  { %v1754_v62 = vadd.f32 %v1753_v61, %v1752_v60  ;;  %v1755_v63 = vpop.f32.mrb[26].mxu0  ;;  %v1852_v0 = vpop.f32.mrb[12].mxu1 }
 0x158   :  { %v1756_v1 = vpop.f32.mrb[27].mxu0  ;;  %v1389_v2 = vpop.f32.mrb[13].mxu1 }
 0x159   :  { %v1757_v3 = vadd.f32 %v1756_v1, %v1755_v63  ;;  %v1390_v4 = vadd.f32 %v1754_v62, %v1389_v2  ;;  %v1853_v5 = vpop.f32.mrb[14].mxu1 }
 0x15a   :  { %v1392_v7 = vpop.f32.mrb[15].mxu1 }
 0x15b   :  { %v1439_v8 = vmax.f32 %v1431_v47, %v1390_v4  ;;  %v1393_v9 = vadd.f32 %v1757_v3, %v1392_v7 }
 0x15d   :  { %v1450_v10 = vadd.f32 %v1602_v6, %v1439_v8  ;;  %v1440_v11 = vmax.f32 %v1432_v49, %v1393_v9  ;;  %v1758_v12 = vpop.f32.mrb[28].mxu0 }
 0x15e   :  { %v1759_v13 = vpop.f32.mrb[29].mxu0 }
 0x15f   :  { %v1451_v14 = vadd.f32 %v1602_v6, %v1440_v11  ;;  %v1760_v15 = vadd.f32 %v1759_v13, %v1758_v12  ;;  %v1761_v16 = vpop.f32.mrb[30].mxu0  ;;  %v1454_v18 = vmax.f32 %v1450_v10, 0.0 }
 0x160   :  { %v1762_v17 = vpop.f32.mrb[31].mxu0 }
 0x161   :  { %v1455_v19 = vmax.f32 %v1451_v14, 0.0  ;;  %v1398_v20 = vadd.f32 %v1852_v0, %v1760_v15  ;;  %v1763_v21 = vadd.f32 %v1762_v17, %v1761_v16 }
 0x163   :  { %v1614_v22 = vpack.c.bf16 %v1455_v19, %v1454_v18  ;;  %v1441_v23 = vmax.f32 %v1433_v57, %v1398_v20  ;;  %v1401_v24 = vadd.f32 %v1853_v5, %v1763_v21 }
 0x165   :  { %1615 = vst [vmem:[%s2392_s6] sm:$0xff] %v1614_v22   ;;  %v1452_v25 = vadd.f32 %v1602_v6, %v1441_v23  ;;  %v1442_v26 = vmax.f32 %v1434_v59, %v1401_v24 }
 0x167   :  { %v1453_v27 = vadd.f32 %v1602_v6, %v1442_v26  ;;  %v1456_v28 = vmax.f32 %v1452_v25, 0.0 }
 0x169   :  { %v1457_v29 = vmax.f32 %v1453_v27, 0.0 }
 0x16b   :  { %v1619_v30 = vpack.c.bf16 %v1457_v29, %v1456_v28 }
 0x16d   :  { %1621 = vst [vmem:[%s2392_s6 + $0x8] sm:$0xff] %v1619_v30  }

// kernel: conv_autoencoder_forward.11
= control target key start
LH: loop header
LB: loop body
LE: loop exit
PB: predicated region body
PF: predicated region fallthrough
CT: control target
= control target key end

     0   :  { %s681_s1 = inlined_call_operand.vmem [shape: bf16[512,128], index: 1, kind: input, shape index: {}]   ;;  %s682_s0 = inlined_call_operand.vmem [shape: bf16[16,512], index: 0, kind: input, shape index: {}]   ;;  %s683_s2 = inlined_call_operand.vmem [shape: f32[1,128], index: 2, kind: input, shape index: {}]   ;;  %s684_s3 = inlined_call_operand.vmem [shape: bf16[16,128], index: 3, kind: output, shape index: {}]  }
   0x1   :  { %v509_v0 = vld [vmem:[%s681_s1 + $0x40] sm:$0xff]   ;;  %v513_v4 = vld [vmem:[%s681_s1 + $0x48] sm:$0xff]   ;;  %v517_v8 = vld [vmem:[%s681_s1 + $0x50] sm:$0xff]  }
   0x2   :  { %v510_v1 = vld [vmem:[%s681_s1 + $0xc0] sm:$0xff]   ;;  %465 = vmatprep.subr.bf16.mxu0 %v509_v0  ;;  %v514_v5 = vld [vmem:[%s681_s1 + $0xc8] sm:$0xff]   ;;  %v518_v9 = vld [vmem:[%s681_s1 + $0xd0] sm:$0xff]  }
   0x3   :  { %v511_v2 = vld [vmem:[%s681_s1] sm:$0xff]   ;;  %487 = vmatprep.subr.bf16.mxu1 %v510_v1  ;;  %v515_v6 = vld [vmem:[%s681_s1 + $0x8] sm:$0xff]   ;;  %v519_v10 = vld [vmem:[%s681_s1 + $0x10] sm:$0xff]  }
   0x4   :  { %v512_v3 = vld [vmem:[%s681_s1 + $0x80] sm:$0xff]   ;;  %466 = vmatpush3.bf16.msra.mxu0 %v511_v2  ;;  %v516_v7 = vld [vmem:[%s681_s1 + $0x88] sm:$0xff]   ;;  %v520_v11 = vld [vmem:[%s681_s1 + $0x90] sm:$0xff]  }
   0x5   :  { %488 = vmatpush3.bf16.msra.mxu1 %v512_v3  ;;  %467 = vmatprep.subr.bf16.mxu0 %v513_v4  ;;  %v521_v12 = vld [vmem:[%s681_s1 + $0x58] sm:$0xff]   ;;  %v525_v16 = vld [vmem:[%s681_s1 + $0x60] sm:$0xff]   ;;  %v529_v20 = vld [vmem:[%s681_s1 + $0x68] sm:$0xff]  }
   0x6   :  { %489 = vmatprep.subr.bf16.mxu1 %v514_v5  ;;  %v522_v13 = vld [vmem:[%s681_s1 + $0xd8] sm:$0xff]   ;;  %v526_v17 = vld [vmem:[%s681_s1 + $0xe0] sm:$0xff]   ;;  %v530_v21 = vld [vmem:[%s681_s1 + $0xe8] sm:$0xff]  }
   0x7   :  { %v523_v14 = vld [vmem:[%s681_s1 + $0x18] sm:$0xff]   ;;  %v527_v18 = vld [vmem:[%s681_s1 + $0x20] sm:$0xff]   ;;  %v531_v22 = vld [vmem:[%s681_s1 + $0x28] sm:$0xff]  }
   0x8   :  { %468 = vmatpush3.bf16.msra.mxu0 %v515_v6  ;;  %v524_v15 = vld [vmem:[%s681_s1 + $0x98] sm:$0xff]   ;;  %v528_v19 = vld [vmem:[%s681_s1 + $0xa0] sm:$0xff]   ;;  %v532_v23 = vld [vmem:[%s681_s1 + $0xa8] sm:$0xff]  }
   0x9   :  { %490 = vmatpush3.bf16.msra.mxu1 %v516_v7  ;;  %469 = vmatprep.subr.bf16.mxu0 %v517_v8  ;;  %v533_v24 = vld [vmem:[%s681_s1 + $0x70] sm:$0xff]   ;;  %v537_v28 = vld [vmem:[%s681_s1 + $0x78] sm:$0xff]   ;;  %v455_v45 = vld [vmem:[%s683_s2] ss:$0 sm:$0xff] }
   0xa   :  { %491 = vmatprep.subr.bf16.mxu1 %v518_v9  ;;  %v534_v25 = vld [vmem:[%s681_s1 + $0xf0] sm:$0xff]   ;;  %v538_v29 = vld [vmem:[%s681_s1 + $0xf8] sm:$0xff]  }
   0xb   :  { %v535_v26 = vld [vmem:[%s681_s1 + $0x30] sm:$0xff]   ;;  %v539_v30 = vld [vmem:[%s681_s1 + $0x38] sm:$0xff]  }
   0xc   :  { %470 = vmatpush3.bf16.msra.mxu0 %v519_v10  ;;  %v536_v27 = vld [vmem:[%s681_s1 + $0xb0] sm:$0xff]   ;;  %v540_v31 = vld [vmem:[%s681_s1 + $0xb8] sm:$0xff]  }
   0xd   :  { %492 = vmatpush3.bf16.msra.mxu1 %v520_v11  ;;  %471 = vmatprep.subr.bf16.mxu0 %v521_v12  ;;  %v541_v32 = vld [vmem:[%s682_s0] ss:$16 sps:$4 sm:$0xff]   ;;  %v543_v33 = vld [vmem:[%s682_s0 + $0x4] ss:$16 sps:$4 sm:$0xff]   ;;  %v544_v34 = vld [vmem:[%s682_s0 + $0x8] ss:$16 sps:$4 sm:$0xff]  }
   0xe   :  { %493 = vmatprep.subr.bf16.mxu1 %v522_v13  ;;  %v546_v35 = vld [vmem:[%s682_s0 + $0xc] ss:$16 sps:$4 sm:$0xff]   ;;  %335 = vmatprep.mubr.bf16.mxu0 %v543_v33 }
   0xf   :  { %376 = vmatprep.mubr.bf16.mxu1 %v546_v35 }
  0x10   :  { %472 = vmatpush3.bf16.msra.mxu0 %v523_v14 }
  0x11   :  { %494 = vmatpush3.bf16.msra.mxu1 %v524_v15  ;;  %473 = vmatprep.subr.bf16.mxu0 %v525_v16 }
  0x12   :  { %495 = vmatprep.subr.bf16.mxu1 %v526_v17 }
  0x14   :  { %474 = vmatpush3.bf16.msra.mxu0 %v527_v18 }
  0x15   :  { %496 = vmatpush3.bf16.msra.mxu1 %v528_v19  ;;  %475 = vmatprep.subr.bf16.mxu0 %v529_v20 }
  0x16   :  { %497 = vmatprep.subr.bf16.mxu1 %v530_v21 }
  0x18   :  { %476 = vmatpush3.bf16.msra.mxu0 %v531_v22 }
  0x19   :  { %498 = vmatpush3.bf16.msra.mxu1 %v532_v23  ;;  %477 = vmatprep.subr.bf16.mxu0 %v533_v24 }
  0x1a   :  { %499 = vmatprep.subr.bf16.mxu1 %v534_v25 }
  0x1c   :  { %478 = vmatpush3.bf16.msra.mxu0 %v535_v26 }
  0x1d   :  { %500 = vmatpush3.bf16.msra.mxu1 %v536_v27  ;;  %479 = vmatprep.subr.bf16.mxu0 %v537_v28 }
  0x1e   :  { %501 = vmatprep.subr.bf16.mxu1 %v538_v29 }
  0x20   :  { %480 = vmatpush3.bf16.msra.mxu0 %v539_v30 }
  0x21   :  { %502 = vmatpush3.bf16.msra.mxu1 %v540_v31 }
  0x23   :  { %336 = vmatmul.mubr.bf16.vlgmr.msra.gmra.mrb[0].mxu0 %v541_v32 }
  0x24   :  { %377 = vmatmul.mubr.bf16.vlgmr.msra.gmra.mrb[0].mxu1 %v544_v34 }
  0xf6   :  { %v481_v36 = vpop.f32.mrb[0].mxu0 }
  0xf7   :  { %v503_v37 = vpop.f32.mrb[0].mxu1  ;;  %v482_v38 = vpop.f32.mrb[1].mxu0 }
  0xf8   :  { %v483_v39 = vadd.f32 %v482_v38, %v481_v36  ;;  %v504_v40 = vpop.f32.mrb[1].mxu1  ;;  %v484_v41 = vpop.f32.mrb[2].mxu0 }
  0xf9   :  { %v505_v42 = vadd.f32 %v504_v40, %v503_v37  ;;  %v506_v43 = vpop.f32.mrb[2].mxu1  ;;  %v485_v44 = vpop.f32.mrb[3].mxu0 }
  0xfa   :  { %v486_v46 = vadd.f32 %v485_v44, %v484_v41  ;;  %v507_v47 = vpop.f32.mrb[3].mxu1 }
  0xfb   :  { %v379_v48 = vadd.f32 %v505_v42, %v483_v39  ;;  %v508_v49 = vadd.f32 %v507_v47, %v506_v43 }
  0xfd   :  { %v401_v50 = vadd.f32 %v455_v45, %v379_v48  ;;  %v382_v51 = vadd.f32 %v508_v49, %v486_v46 }
  0xff   :  { %v402_v52 = vadd.f32 %v455_v45, %v382_v51  ;;  %v403_v53 = vmax.f32 %v401_v50, 0.0 }
 0x101   :  { %v404_v54 = vmax.f32 %v402_v52, 0.0 }
 0x103   :  { %v463_v55 = vpack.c.bf16 %v404_v54, %v403_v53 }
 0x105   :  { %464 = vst [vmem:[%s684_s3] sm:$0xff] %v463_v55  }

// kernel: conv_autoencoder_forward.10
= control target key start
LH: loop header
LB: loop body
LE: loop exit
PB: predicated region body
PF: predicated region fallthrough
CT: control target
= control target key end

     0   :  { %v2674_v34 = vmov 0.0   ;;  %vm2675_vm0 = vmmov 0   ;;  %s3297_s4 = inlined_call_operand.vmem [shape: bf16[640,128], index: 4, kind: input, shape index: {}]   ;;  %s3298_s0 = inlined_call_operand.vmem [shape: bf16[16,640], index: 0, kind: input, shape index: {}]   ;;  %s3299_s1 = inlined_call_operand.vmem [shape: bf16[16,640], index: 1, kind: input, shape index: {}]   ;;  %s3300_s2 = inlined_call_operand.vmem [shape: bf16[16,640], index: 2, kind: input, shape index: {}]   ;;  %s3301_s3 = inlined_call_operand.vmem [shape: bf16[16,640], index: 3, kind: input, shape index: {}]   ;;  %s3302_s5 = inlined_call_operand.vmem [shape: f32[1,128], index: 5, kind: input, shape index: {}]   ;;  %s3303_s6 = inlined_call_operand.vmem [shape: bf16[16,128], index: 6, kind: output, shape index: {}]  }
   0x1   :  { %v2486_v0 = vld [vmem:[%s3297_s4 + $0x40] sm:$0xff]   ;;  %v2490_v4 = vld [vmem:[%s3297_s4 + $0x48] sm:$0xff]   ;;  %v2494_v8 = vld [vmem:[%s3297_s4 + $0x50] sm:$0xff]  }
   0x2   :  { %v2487_v1 = vld [vmem:[%s3297_s4 + $0xc0] sm:$0xff]   ;;  %2192 = vmatprep.subr.bf16.mxu0 %v2486_v0  ;;  %v2491_v5 = vld [vmem:[%s3297_s4 + $0xc8] sm:$0xff]   ;;  %v2495_v9 = vld [vmem:[%s3297_s4 + $0xd0] sm:$0xff]  }
   0x3   :  { %v2488_v2 = vld [vmem:[%s3297_s4] sm:$0xff]   ;;  %2214 = vmatprep.subr.bf16.mxu1 %v2487_v1  ;;  %v2492_v6 = vld [vmem:[%s3297_s4 + $0x8] sm:$0xff]   ;;  %v2496_v10 = vld [vmem:[%s3297_s4 + $0x10] sm:$0xff]  }
   0x4   :  { %v2489_v3 = vld [vmem:[%s3297_s4 + $0x80] sm:$0xff]   ;;  %2193 = vmatpush3.bf16.msra.mxu0 %v2488_v2  ;;  %v2493_v7 = vld [vmem:[%s3297_s4 + $0x88] sm:$0xff]   ;;  %v2497_v11 = vld [vmem:[%s3297_s4 + $0x90] sm:$0xff]  }
   0x5   :  { %2215 = vmatpush3.bf16.msra.mxu1 %v2489_v3  ;;  %2194 = vmatprep.subr.bf16.mxu0 %v2490_v4  ;;  %v2498_v12 = vld [vmem:[%s3297_s4 + $0x58] sm:$0xff]   ;;  %v2502_v16 = vld [vmem:[%s3297_s4 + $0x60] sm:$0xff]   ;;  %v2506_v20 = vld [vmem:[%s3297_s4 + $0x68] sm:$0xff]  }
   0x6   :  { %2216 = vmatprep.subr.bf16.mxu1 %v2491_v5  ;;  %v2499_v13 = vld [vmem:[%s3297_s4 + $0xd8] sm:$0xff]   ;;  %v2503_v17 = vld [vmem:[%s3297_s4 + $0xe0] sm:$0xff]   ;;  %v2507_v21 = vld [vmem:[%s3297_s4 + $0xe8] sm:$0xff]  }
   0x7   :  { %v2500_v14 = vld [vmem:[%s3297_s4 + $0x18] sm:$0xff]   ;;  %v2504_v18 = vld [vmem:[%s3297_s4 + $0x20] sm:$0xff]   ;;  %v2508_v22 = vld [vmem:[%s3297_s4 + $0x28] sm:$0xff]  }
   0x8   :  { %2195 = vmatpush3.bf16.msra.mxu0 %v2492_v6  ;;  %v2501_v15 = vld [vmem:[%s3297_s4 + $0x98] sm:$0xff]   ;;  %v2505_v19 = vld [vmem:[%s3297_s4 + $0xa0] sm:$0xff]   ;;  %v2509_v23 = vld [vmem:[%s3297_s4 + $0xa8] sm:$0xff]  }
   0x9   :  { %2217 = vmatpush3.bf16.msra.mxu1 %v2493_v7  ;;  %2196 = vmatprep.subr.bf16.mxu0 %v2494_v8  ;;  %v2510_v24 = vld [vmem:[%s3297_s4 + $0x70] sm:$0xff]   ;;  %v2514_v28 = vld [vmem:[%s3297_s4 + $0x78] sm:$0xff]   ;;  %v2523_v36 = vld [vmem:[%s3298_s0 + $0xc] ss:$20 sps:$4 sm:$0xff]  }
   0xa   :  { %2218 = vmatprep.subr.bf16.mxu1 %v2495_v9  ;;  %v2511_v25 = vld [vmem:[%s3297_s4 + $0xf0] sm:$0xff]   ;;  %v2515_v29 = vld [vmem:[%s3297_s4 + $0xf8] sm:$0xff]   ;;  %v2524_v37 = vld [vmem:[%s3297_s4 + $0x40] sm:$0xff]   ;;  %463 = vmatprep.mubr.bf16.mxu1 %v2523_v36 }
   0xb   :  { %v2512_v26 = vld [vmem:[%s3297_s4 + $0x30] sm:$0xff]   ;;  %v2516_v30 = vld [vmem:[%s3297_s4 + $0x38] sm:$0xff]   ;;  %v2525_v38 = vld [vmem:[%s3297_s4 + $0x100] sm:$0xff]  }
   0xc   :  { %2197 = vmatpush3.bf16.msra.mxu0 %v2496_v10  ;;  %v2513_v27 = vld [vmem:[%s3297_s4 + $0xb0] sm:$0xff]   ;;  %v2517_v31 = vld [vmem:[%s3297_s4 + $0xb8] sm:$0xff]   ;;  %v2526_v39 = vld [vmem:[%s3297_s4] sm:$0xff]  }
   0xd   :  { %2219 = vmatpush3.bf16.msra.mxu1 %v2497_v11  ;;  %2198 = vmatprep.subr.bf16.mxu0 %v2498_v12  ;;  %v2518_v32 = vld [vmem:[%s3298_s0] ss:$20 sps:$4 sm:$0xff]   ;;  %v2520_v33 = vld [vmem:[%s3298_s0 + $0x4] ss:$20 sps:$4 sm:$0xff]   ;;  %v2521_v35 = vld [vmem:[%s3298_s0 + $0x8] ss:$20 sps:$4 sm:$0xff]  }
   0xe   :  { %2220 = vmatprep.subr.bf16.mxu1 %v2499_v13  ;;  %422 = vmatprep.mubr.bf16.mxu0 %v2520_v33  ;;  %v2527_v40 = vld [vmem:[%s3297_s4 + $0x48] sm:$0xff]   ;;  %v2530_v43 = vld [vmem:[%s3297_s4 + $0x50] sm:$0xff]   ;;  %v2533_v46 = vld [vmem:[%s3297_s4 + $0x58] sm:$0xff]  }
   0xf   :  { %v2528_v41 = vld [vmem:[%s3297_s4 + $0x108] sm:$0xff]   ;;  %v2531_v44 = vld [vmem:[%s3297_s4 + $0x110] sm:$0xff]   ;;  %v2534_v47 = vld [vmem:[%s3297_s4 + $0x118] sm:$0xff]  }
  0x10   :  { %2199 = vmatpush3.bf16.msra.mxu0 %v2500_v14  ;;  %v2529_v42 = vld [vmem:[%s3297_s4 + $0x8] sm:$0xff]   ;;  %v2532_v45 = vld [vmem:[%s3297_s4 + $0x10] sm:$0xff]   ;;  %v2535_v48 = vld [vmem:[%s3297_s4 + $0x18] sm:$0xff]  }
  0x11   :  { %2221 = vmatpush3.bf16.msra.mxu1 %v2501_v15  ;;  %2200 = vmatprep.subr.bf16.mxu0 %v2502_v16  ;;  %v2536_v49 = vld [vmem:[%s3297_s4 + $0x60] sm:$0xff]   ;;  %v2539_v52 = vld [vmem:[%s3297_s4 + $0x68] sm:$0xff]   ;;  %v2542_v55 = vld [vmem:[%s3297_s4 + $0x70] sm:$0xff]  }
  0x12   :  { %2222 = vmatprep.subr.bf16.mxu1 %v2503_v17  ;;  %v2537_v50 = vld [vmem:[%s3297_s4 + $0x120] sm:$0xff]   ;;  %v2540_v53 = vld [vmem:[%s3297_s4 + $0x128] sm:$0xff]   ;;  %v2543_v56 = vld [vmem:[%s3297_s4 + $0x130] sm:$0xff]  }
  0x13   :  { %v2538_v51 = vld [vmem:[%s3297_s4 + $0x20] sm:$0xff]   ;;  %v2541_v54 = vld [vmem:[%s3297_s4 + $0x28] sm:$0xff]   ;;  %v2544_v57 = vld [vmem:[%s3297_s4 + $0x30] sm:$0xff]  }
  0x14   :  { %2201 = vmatpush3.bf16.msra.mxu0 %v2504_v18  ;;  %v2545_v58 = vld [vmem:[%s3297_s4 + $0x78] sm:$0xff]   ;;  %v2548_v62 = vld [vmem:[%s3298_s0 + $0x10] ss:$20 sps:$4 sm:$0xff]   ;;  %v2549_v0 = vld [vmem:[%s3299_s1] ss:$20 sps:$4 sm:$0xff]  }
  0x15   :  { %2223 = vmatpush3.bf16.msra.mxu1 %v2505_v19  ;;  %2202 = vmatprep.subr.bf16.mxu0 %v2506_v20  ;;  %v2551_v59 = vld [vmem:[%s3299_s1 + $0x4] ss:$20 sps:$4 sm:$0xff]   ;;  %v2555_v3 = vld [vmem:[%s3297_s4 + $0xc8] sm:$0xff]   ;;  %v2558_v6 = vld [vmem:[%s3297_s4 + $0xd0] sm:$0xff]  }
  0x16   :  { %2224 = vmatprep.subr.bf16.mxu1 %v2507_v21  ;;  %v2546_v60 = vld [vmem:[%s3297_s4 + $0x138] sm:$0xff]   ;;  %v2552_v63 = vld [vmem:[%s3297_s4 + $0xc0] sm:$0xff]   ;;  %v2556_v4 = vld [vmem:[%s3297_s4 + $0x88] sm:$0xff]  }
  0x17   :  { %v2547_v61 = vld [vmem:[%s3297_s4 + $0x38] sm:$0xff]   ;;  %v2553_v1 = vld [vmem:[%s3297_s4 + $0x80] sm:$0xff]   ;;  %v2557_v5 = vld [vmem:[%s3297_s4 + $0x108] sm:$0xff]  }
  0x18   :  { %2203 = vmatpush3.bf16.msra.mxu0 %v2508_v22  ;;  %v2554_v2 = vld [vmem:[%s3297_s4 + $0x100] sm:$0xff]   ;;  %v2559_v7 = vld [vmem:[%s3297_s4 + $0x90] sm:$0xff]   ;;  %v2561_v9 = vld [vmem:[%s3297_s4 + $0xd8] sm:$0xff]  }
  0x19   :  { %2225 = vmatpush3.bf16.msra.mxu1 %v2509_v23  ;;  %2204 = vmatprep.subr.bf16.mxu0 %v2510_v24  ;;  %v2560_v8 = vld [vmem:[%s3297_s4 + $0x110] sm:$0xff]   ;;  %v2562_v10 = vld [vmem:[%s3297_s4 + $0x98] sm:$0xff]   ;;  %v2564_v12 = vld [vmem:[%s3297_s4 + $0xe0] sm:$0xff]  }
  0x1a   :  { %2226 = vmatprep.subr.bf16.mxu1 %v2511_v25  ;;  %v2563_v11 = vld [vmem:[%s3297_s4 + $0x118] sm:$0xff]   ;;  %v2565_v13 = vld [vmem:[%s3297_s4 + $0xa0] sm:$0xff]   ;;  %v2567_v15 = vld [vmem:[%s3297_s4 + $0xe8] sm:$0xff]  }
  0x1b   :  { %v2566_v14 = vld [vmem:[%s3297_s4 + $0x120] sm:$0xff]   ;;  %v2568_v16 = vld [vmem:[%s3297_s4 + $0xa8] sm:$0xff]   ;;  %v2570_v19 = vld [vmem:[%s3297_s4 + $0xf0] sm:$0xff]  }
  0x1c   :  { %2205 = vmatpush3.bf16.msra.mxu0 %v2512_v26  ;;  %v2569_v17 = vld [vmem:[%s3297_s4 + $0x128] sm:$0xff]   ;;  %v2571_v20 = vld [vmem:[%s3297_s4 + $0xb0] sm:$0xff]   ;;  %v2573_v22 = vld [vmem:[%s3297_s4 + $0xf8] sm:$0xff]  }
  0x1d   :  { %2227 = vmatpush3.bf16.msra.mxu1 %v2513_v27  ;;  %2206 = vmatprep.subr.bf16.mxu0 %v2514_v28  ;;  %v2578_v18 = vld [vmem:[%s3299_s1 + $0xc] ss:$20 sps:$4 sm:$0xff]   ;;  %v2572_v21 = vld [vmem:[%s3297_s4 + $0x130] sm:$0xff]   ;;  %v2574_v23 = vld [vmem:[%s3297_s4 + $0xb8] sm:$0xff]  }
  0x1e   :  { %2228 = vmatprep.subr.bf16.mxu1 %v2515_v29  ;;  %v2575_v24 = vld [vmem:[%s3297_s4 + $0x138] sm:$0xff]   ;;  %v2579_v25 = vld [vmem:[%s3297_s4 + $0x40] sm:$0xff]   ;;  %v2586_v33 = vld [vmem:[%s3297_s4 + $0x8] sm:$0xff]  }
  0x1f   :  { %v2576_v26 = vld [vmem:[%s3299_s1 + $0x8] ss:$20 sps:$4 sm:$0xff]   ;;  %v2580_v27 = vld [vmem:[%s3297_s4 + $0xc0] sm:$0xff]   ;;  %v2588_v36 = vld [vmem:[%s3297_s4 + $0x50] sm:$0xff]  }
  0x20   :  { %2207 = vmatpush3.bf16.msra.mxu0 %v2516_v30  ;;  %v2581_v28 = vld [vmem:[%s3299_s1 + $0x10] ss:$20 sps:$4 sm:$0xff]  }
  0x21   :  { %2229 = vmatpush3.bf16.msra.mxu1 %v2517_v31  ;;  %2404 = vmatprep.subr.bf16.mxu0 %v2674_v34  ;;  %v2582_v29 = vld [vmem:[%s3297_s4] sm:$0xff]   ;;  %v2584_v31 = vld [vmem:[%s3297_s4 + $0x48] sm:$0xff]  }
  0x22   :  { %2245 = vmatprep.subr.bf16.mxu1 %v2524_v37  ;;  %v2583_v30 = vld [vmem:[%s3297_s4 + $0x80] sm:$0xff]   ;;  %v2589_v37 = vld [vmem:[%s3297_s4 + $0xd0] sm:$0xff]  }
  0x23   :  { %423 = vmatmul.mubr.bf16.vlgmr.msra.gmra.mrb[0].mxu0 %v2518_v32  ;;  %v2585_v32 = vld [vmem:[%s3297_s4 + $0xc8] sm:$0xff]  }
  0x24   :  { %464 = vmatmul.mubr.bf16.vlgmr.msra.gmra.mrb[0].mxu1 %v2521_v35  ;;  %2405 = vmatpush3.bf16.msra.mxu0 %v2525_v38  ;;  %v2587_v35 = vld [vmem:[%s3297_s4 + $0x88] sm:$0xff]   ;;  %v2590_v38 = vld [vmem:[%s3297_s4 + $0x10] sm:$0xff]  }
  0x25   :  { %2420 = vmatprep.mubr.msk.bf16.mxu0 %vm2675_vm0, %v2674_v34  ;;  %2246 = vmatpush3.bf16.msra.mxu1 %v2526_v39  ;;  %v2591_v39 = vld [vmem:[%s3297_s4 + $0x90] sm:$0xff]  }
  0x26   :  { %2406 = vmatprep.subr.bf16.mxu0 %v2674_v34  ;;  %2247 = vmatprep.subr.bf16.mxu1 %v2527_v40  ;;  %v2592_v40 = vld [vmem:[%s3297_s4 + $0x58] sm:$0xff]  }
  0x27   :  { %903 = vmatprep.mubr.bf16.mxu1 %v2551_v59  ;;  %v2609_v59 = vld [vmem:[%s3297_s4 + $0xf8] sm:$0xff]  }
  0x28   :  { %2407 = vmatpush3.bf16.msra.mxu0 %v2528_v41  ;;  %v2593_v41 = vld [vmem:[%s3297_s4 + $0xd8] sm:$0xff]  }
  0x29   :  { %2248 = vmatpush3.bf16.msra.mxu1 %v2529_v42  ;;  %2408 = vmatprep.subr.bf16.mxu0 %v2674_v34  ;;  %v2594_v42 = vld [vmem:[%s3297_s4 + $0x18] sm:$0xff]  }
  0x2a   :  { %2249 = vmatprep.subr.bf16.mxu1 %v2530_v43  ;;  %v2595_v43 = vld [vmem:[%s3297_s4 + $0x98] sm:$0xff]  }
  0x2c   :  { %2409 = vmatpush3.bf16.msra.mxu0 %v2531_v44  ;;  %v2596_v44 = vld [vmem:[%s3297_s4 + $0x60] sm:$0xff]  }
  0x2d   :  { %2250 = vmatpush3.bf16.msra.mxu1 %v2532_v45  ;;  %2410 = vmatprep.subr.bf16.mxu0 %v2674_v34  ;;  %v2597_v45 = vld [vmem:[%s3297_s4 + $0xe0] sm:$0xff]  }
  0x2e   :  { %2251 = vmatprep.subr.bf16.mxu1 %v2533_v46  ;;  %v2598_v46 = vld [vmem:[%s3297_s4 + $0x20] sm:$0xff]  }
  0x30   :  { %2411 = vmatpush3.bf16.msra.mxu0 %v2534_v47  ;;  %v2599_v47 = vld [vmem:[%s3297_s4 + $0xa0] sm:$0xff]  }
  0x31   :  { %2252 = vmatpush3.bf16.msra.mxu1 %v2535_v48  ;;  %2412 = vmatprep.subr.bf16.mxu0 %v2674_v34  ;;  %v2600_v48 = vld [vmem:[%s3297_s4 + $0x68] sm:$0xff]  }
  0x32   :  { %2253 = vmatprep.subr.bf16.mxu1 %v2536_v49  ;;  %v2601_v49 = vld [vmem:[%s3297_s4 + $0xe8] sm:$0xff]  }
  0x34   :  { %2413 = vmatpush3.bf16.msra.mxu0 %v2537_v50  ;;  %v2602_v50 = vld [vmem:[%s3297_s4 + $0x28] sm:$0xff]  }
  0x35   :  { %2254 = vmatpush3.bf16.msra.mxu1 %v2538_v51  ;;  %2414 = vmatprep.subr.bf16.mxu0 %v2674_v34  ;;  %v2603_v51 = vld [vmem:[%s3297_s4 + $0xa8] sm:$0xff]  }
  0x36   :  { %2255 = vmatprep.subr.bf16.mxu1 %v2539_v52  ;;  %v2604_v52 = vld [vmem:[%s3297_s4 + $0x70] sm:$0xff]  }
  0x38   :  { %2415 = vmatpush3.bf16.msra.mxu0 %v2540_v53  ;;  %v2605_v53 = vld [vmem:[%s3297_s4 + $0xf0] sm:$0xff]  }
  0x39   :  { %2256 = vmatpush3.bf16.msra.mxu1 %v2541_v54  ;;  %2416 = vmatprep.subr.bf16.mxu0 %v2674_v34  ;;  %v2614_v54 = vld [vmem:[%s3300_s2 + $0x4] ss:$20 sps:$4 sm:$0xff]  }
  0x3a   :  { %2257 = vmatprep.subr.bf16.mxu1 %v2542_v55  ;;  %v2606_v55 = vld [vmem:[%s3297_s4 + $0x30] sm:$0xff]  }
  0x3c   :  { %2417 = vmatpush3.bf16.msra.mxu0 %v2543_v56  ;;  %v2617_v56 = vld [vmem:[%s3300_s2 + $0xc] ss:$20 sps:$4 sm:$0xff]  }
  0x3d   :  { %2258 = vmatpush3.bf16.msra.mxu1 %v2544_v57  ;;  %2418 = vmatprep.subr.bf16.mxu0 %v2674_v34  ;;  %v2607_v57 = vld [vmem:[%s3297_s4 + $0xb0] sm:$0xff]  }
  0x3e   :  { %2259 = vmatprep.subr.bf16.mxu1 %v2545_v58  ;;  %v2608_v58 = vld [vmem:[%s3297_s4 + $0x78] sm:$0xff]  }
  0x40   :  { %2419 = vmatpush3.bf16.msra.mxu0 %v2546_v60  ;;  %v2610_v60 = vld [vmem:[%s3297_s4 + $0x38] sm:$0xff]  }
  0x41   :  { %2260 = vmatpush3.bf16.msra.mxu1 %v2547_v61  ;;  %2267 = vmatprep.subr.bf16.mxu0 %v2552_v63  ;;  %v2611_v61 = vld [vmem:[%s3297_s4 + $0xb8] sm:$0xff]   ;;  %v2619_v63 = vld [vmem:[%s3297_s4 + $0x40] sm:$0xff]  }
  0x42   :  { %2424 = vmatprep.subr.bf16.mxu1 %v2674_v34 }
  0x43   :  { %2421 = vmatmul.mubr.bf16.vlgmr.msra.gmra.mrb[4].mxu0 %v2548_v62  ;;  %v2612_v62 = vld [vmem:[%s3300_s2] ss:$20 sps:$4 sm:$0xff]  }
  0x44   :  { %904 = vmatmul.mubr.bf16.vlgmr.msra.gmra.mrb[4].mxu1 %v2549_v0  ;;  %2268 = vmatpush3.bf16.msra.mxu0 %v2553_v1  ;;  %v2615_v0 = vld [vmem:[%s3300_s2 + $0x8] ss:$20 sps:$4 sm:$0xff]   ;;  %v2618_v1 = vld [vmem:[%s3297_s4 + $0x100] sm:$0xff]  }
  0x45   :  { %2425 = vmatpush3.bf16.msra.mxu1 %v2554_v2  ;;  %2269 = vmatprep.subr.bf16.mxu0 %v2555_v3  ;;  %v2620_v2 = vld [vmem:[%s3297_s4] sm:$0xff]   ;;  %v2622_v3 = vld [vmem:[%s3297_s4 + $0x48] sm:$0xff]  }
  0x46   :  { %2426 = vmatprep.subr.bf16.mxu1 %v2674_v34  ;;  %2440 = vmatprep.mubr.msk.bf16.mxu1 %vm2675_vm0, %v2674_v34 }
  0x47   :  { %944 = vmatprep.mubr.bf16.mxu0 %v2578_v18  ;;  %v2635_v18 = vld [vmem:[%s3297_s4 + $0x28] sm:$0xff]  }
  0x48   :  { %2270 = vmatpush3.bf16.msra.mxu0 %v2556_v4  ;;  %v2621_v4 = vld [vmem:[%s3297_s4 + $0x108] sm:$0xff]  }
  0x49   :  { %2427 = vmatpush3.bf16.msra.mxu1 %v2557_v5  ;;  %2271 = vmatprep.subr.bf16.mxu0 %v2558_v6  ;;  %v2623_v5 = vld [vmem:[%s3297_s4 + $0x8] sm:$0xff]   ;;  %v2625_v6 = vld [vmem:[%s3297_s4 + $0x50] sm:$0xff]  }
  0x4a   :  { %2428 = vmatprep.subr.bf16.mxu1 %v2674_v34 }
  0x4c   :  { %2272 = vmatpush3.bf16.msra.mxu0 %v2559_v7  ;;  %v2624_v7 = vld [vmem:[%s3297_s4 + $0x110] sm:$0xff]  }
  0x4d   :  { %2429 = vmatpush3.bf16.msra.mxu1 %v2560_v8  ;;  %2273 = vmatprep.subr.bf16.mxu0 %v2561_v9  ;;  %v2626_v8 = vld [vmem:[%s3297_s4 + $0x10] sm:$0xff]   ;;  %v2628_v9 = vld [vmem:[%s3297_s4 + $0x58] sm:$0xff]  }
  0x4e   :  { %2430 = vmatprep.subr.bf16.mxu1 %v2674_v34 }
  0x50   :  { %2274 = vmatpush3.bf16.msra.mxu0 %v2562_v10  ;;  %v2627_v10 = vld [vmem:[%s3297_s4 + $0x118] sm:$0xff]  }
  0x51   :  { %2431 = vmatpush3.bf16.msra.mxu1 %v2563_v11  ;;  %2275 = vmatprep.subr.bf16.mxu0 %v2564_v12  ;;  %v2629_v11 = vld [vmem:[%s3297_s4 + $0x18] sm:$0xff]   ;;  %v2631_v12 = vld [vmem:[%s3297_s4 + $0x60] sm:$0xff]  }
  0x52   :  { %2432 = vmatprep.subr.bf16.mxu1 %v2674_v34 }
  0x54   :  { %2276 = vmatpush3.bf16.msra.mxu0 %v2565_v13  ;;  %v2630_v13 = vld [vmem:[%s3297_s4 + $0x120] sm:$0xff]  }
  0x55   :  { %2433 = vmatpush3.bf16.msra.mxu1 %v2566_v14  ;;  %2277 = vmatprep.subr.bf16.mxu0 %v2567_v15  ;;  %v2632_v14 = vld [vmem:[%s3297_s4 + $0x20] sm:$0xff]   ;;  %v2634_v15 = vld [vmem:[%s3297_s4 + $0x68] sm:$0xff]  }
  0x56   :  { %2434 = vmatprep.subr.bf16.mxu1 %v2674_v34 }
  0x58   :  { %2278 = vmatpush3.bf16.msra.mxu0 %v2568_v16  ;;  %v2633_v16 = vld [vmem:[%s3297_s4 + $0x128] sm:$0xff]  }
  0x59   :  { %2435 = vmatpush3.bf16.msra.mxu1 %v2569_v17  ;;  %2279 = vmatprep.subr.bf16.mxu0 %v2570_v19  ;;  %v2647_v17 = vld [vmem:[%s3301_s3 + $0x4] ss:$20 sps:$4 sm:$0xff]   ;;  %v2637_v19 = vld [vmem:[%s3297_s4 + $0x70] sm:$0xff]  }
  0x5a   :  { %2436 = vmatprep.subr.bf16.mxu1 %v2674_v34 }
  0x5c   :  { %2280 = vmatpush3.bf16.msra.mxu0 %v2571_v20  ;;  %v2636_v20 = vld [vmem:[%s3297_s4 + $0x130] sm:$0xff]  }
  0x5d   :  { %2437 = vmatpush3.bf16.msra.mxu1 %v2572_v21  ;;  %2281 = vmatprep.subr.bf16.mxu0 %v2573_v22  ;;  %v2638_v21 = vld [vmem:[%s3297_s4 + $0x30] sm:$0xff]   ;;  %v2640_v22 = vld [vmem:[%s3297_s4 + $0x78] sm:$0xff]  }
  0x5e   :  { %2438 = vmatprep.subr.bf16.mxu1 %v2674_v34 }
  0x60   :  { %2282 = vmatpush3.bf16.msra.mxu0 %v2574_v23  ;;  %v2639_v23 = vld [vmem:[%s3297_s4 + $0x138] sm:$0xff]  }
  0x61   :  { %2439 = vmatpush3.bf16.msra.mxu1 %v2575_v24  ;;  %2298 = vmatprep.subr.bf16.mxu0 %v2579_v25  ;;  %v2641_v24 = vld [vmem:[%s3297_s4 + $0x38] sm:$0xff]   ;;  %v2642_v25 = vld [vmem:[%s3300_s2 + $0x10] ss:$20 sps:$4 sm:$0xff]  }
  0x62   :  { %2320 = vmatprep.subr.bf16.mxu1 %v2580_v27  ;;  %v2644_v27 = vld [vmem:[%s3297_s4 + $0x80] sm:$0xff]  }
  0x63   :  { %945 = vmatmul.mubr.bf16.vlgmr.msra.gmra.mrb[8].mxu0 %v2576_v26  ;;  %v2643_v26 = vld [vmem:[%s3297_s4 + $0xc0] sm:$0xff]  }
  0x64   :  { %2441 = vmatmul.mubr.bf16.vlgmr.msra.gmra.mrb[8].mxu1 %v2581_v28  ;;  %2299 = vmatpush3.bf16.msra.mxu0 %v2582_v29  ;;  %v2645_v28 = vld [vmem:[%s3301_s3] ss:$20 sps:$4 sm:$0xff]  }
  0x65   :  { %2321 = vmatpush3.bf16.msra.mxu1 %v2583_v30  ;;  %2300 = vmatprep.subr.bf16.mxu0 %v2584_v31  ;;  %v2648_v29 = vld [vmem:[%s3297_s4 + $0x100] sm:$0xff]   ;;  %v2649_v30 = vld [vmem:[%s3297_s4 + $0xc8] sm:$0xff]  }
  0x66   :  { %2322 = vmatprep.subr.bf16.mxu1 %v2585_v32  ;;  %1384 = vmatprep.mubr.bf16.mxu0 %v2614_v54  ;;  %v2650_v31 = vld [vmem:[%s3297_s4 + $0x88] sm:$0xff]   ;;  %v2673_v54 = vld [vmem:[%s3301_s3 + $0x10] ss:$20 sps:$4 sm:$0xff]  }
  0x67   :  { %1425 = vmatprep.mubr.bf16.mxu1 %v2617_v56  ;;  %v2651_v32 = vld [vmem:[%s3297_s4 + $0x108] sm:$0xff]  }
  0x68   :  { %2301 = vmatpush3.bf16.msra.mxu0 %v2586_v33  ;;  %v2652_v33 = vld [vmem:[%s3297_s4 + $0xd0] sm:$0xff]  }
  0x69   :  { %2323 = vmatpush3.bf16.msra.mxu1 %v2587_v35  ;;  %2302 = vmatprep.subr.bf16.mxu0 %v2588_v36  ;;  %v2653_v35 = vld [vmem:[%s3297_s4 + $0x90] sm:$0xff]  }
  0x6a   :  { %2324 = vmatprep.subr.bf16.mxu1 %v2589_v37  ;;  %v2654_v36 = vld [vmem:[%s3297_s4 + $0x110] sm:$0xff]   ;;  %v2655_v37 = vld [vmem:[%s3297_s4 + $0xd8] sm:$0xff]  }
  0x6c   :  { %2303 = vmatpush3.bf16.msra.mxu0 %v2590_v38  ;;  %v2671_v38 = vld [vmem:[%s3301_s3 + $0xc] ss:$20 sps:$4 sm:$0xff]  }
  0x6d   :  { %2325 = vmatpush3.bf16.msra.mxu1 %v2591_v39  ;;  %2304 = vmatprep.subr.bf16.mxu0 %v2592_v40  ;;  %v2656_v39 = vld [vmem:[%s3297_s4 + $0x98] sm:$0xff]  }
  0x6e   :  { %2326 = vmatprep.subr.bf16.mxu1 %v2593_v41  ;;  %v2657_v40 = vld [vmem:[%s3297_s4 + $0x118] sm:$0xff]   ;;  %v2658_v41 = vld [vmem:[%s3297_s4 + $0xe0] sm:$0xff]  }
  0x70   :  { %2305 = vmatpush3.bf16.msra.mxu0 %v2594_v42  ;;  %v2659_v42 = vld [vmem:[%s3297_s4 + $0xa0] sm:$0xff]  }
  0x71   :  { %2327 = vmatpush3.bf16.msra.mxu1 %v2595_v43  ;;  %2306 = vmatprep.subr.bf16.mxu0 %v2596_v44  ;;  %v2660_v43 = vld [vmem:[%s3297_s4 + $0x120] sm:$0xff]   ;;  %v2661_v44 = vld [vmem:[%s3297_s4 + $0xe8] sm:$0xff]  }
  0x72   :  { %2328 = vmatprep.subr.bf16.mxu1 %v2597_v45  ;;  %v2662_v45 = vld [vmem:[%s3297_s4 + $0xa8] sm:$0xff]  }
  0x74   :  { %2307 = vmatpush3.bf16.msra.mxu0 %v2598_v46  ;;  %v2663_v46 = vld [vmem:[%s3297_s4 + $0x128] sm:$0xff]  }
  0x75   :  { %2329 = vmatpush3.bf16.msra.mxu1 %v2599_v47  ;;  %2308 = vmatprep.subr.bf16.mxu0 %v2600_v48  ;;  %v2664_v47 = vld [vmem:[%s3297_s4 + $0xf0] sm:$0xff]  }
  0x76   :  { %2330 = vmatprep.subr.bf16.mxu1 %v2601_v49  ;;  %v2665_v48 = vld [vmem:[%s3297_s4 + $0xb0] sm:$0xff]  }
  0x77   :  { %v2666_v49 = vld [vmem:[%s3297_s4 + $0x130] sm:$0xff]  }
  0x78   :  { %2309 = vmatpush3.bf16.msra.mxu0 %v2602_v50  ;;  %v2667_v50 = vld [vmem:[%s3297_s4 + $0xf8] sm:$0xff]  }
  0x79   :  { %2331 = vmatpush3.bf16.msra.mxu1 %v2603_v51  ;;  %2310 = vmatprep.subr.bf16.mxu0 %v2604_v52  ;;  %v2668_v51 = vld [vmem:[%s3297_s4 + $0xb8] sm:$0xff]  }
  0x7a   :  { %2332 = vmatprep.subr.bf16.mxu1 %v2605_v53  ;;  %v2672_v52 = vld [vmem:[%s3297_s4 + $0x138] sm:$0xff]  }
  0x7b   :  { %v2669_v53 = vld [vmem:[%s3301_s3 + $0x8] ss:$20 sps:$4 sm:$0xff]  }
  0x7c   :  { %2311 = vmatpush3.bf16.msra.mxu0 %v2606_v55 }
  0x7d   :  { %2333 = vmatpush3.bf16.msra.mxu1 %v2607_v57  ;;  %2312 = vmatprep.subr.bf16.mxu0 %v2608_v58 }
  0x7e   :  { %2334 = vmatprep.subr.bf16.mxu1 %v2609_v59 }
  0x80   :  { %2313 = vmatpush3.bf16.msra.mxu0 %v2610_v60 }
  0x81   :  { %2335 = vmatpush3.bf16.msra.mxu1 %v2611_v61  ;;  %2444 = vmatprep.subr.bf16.mxu0 %v2674_v34 }
  0x82   :  { %2351 = vmatprep.subr.bf16.mxu1 %v2619_v63 }
  0x83   :  { %1385 = vmatmul.mubr.bf16.vlgmr.msra.gmra.mrb[12].mxu0 %v2612_v62 }
  0x84   :  { %1426 = vmatmul.mubr.bf16.vlgmr.msra.gmra.mrb[12].mxu1 %v2615_v0  ;;  %2445 = vmatpush3.bf16.msra.mxu0 %v2618_v1 }
  0x85   :  { %2352 = vmatpush3.bf16.msra.mxu1 %v2620_v2  ;;  %2446 = vmatprep.subr.bf16.mxu0 %v2674_v34 }
  0x86   :  { %2353 = vmatprep.subr.bf16.mxu1 %v2622_v3  ;;  %2460 = vmatprep.mubr.msk.bf16.mxu0 %vm2675_vm0, %v2674_v34 }
  0x87   :  { %1865 = vmatprep.mubr.bf16.mxu1 %v2647_v17 }
  0x88   :  { %2447 = vmatpush3.bf16.msra.mxu0 %v2621_v4 }
  0x89   :  { %2354 = vmatpush3.bf16.msra.mxu1 %v2623_v5  ;;  %2448 = vmatprep.subr.bf16.mxu0 %v2674_v34 }
  0x8a   :  { %2355 = vmatprep.subr.bf16.mxu1 %v2625_v6 }
  0x8c   :  { %2449 = vmatpush3.bf16.msra.mxu0 %v2624_v7 }
  0x8d   :  { %2356 = vmatpush3.bf16.msra.mxu1 %v2626_v8  ;;  %2450 = vmatprep.subr.bf16.mxu0 %v2674_v34 }
  0x8e   :  { %2357 = vmatprep.subr.bf16.mxu1 %v2628_v9 }
  0x90   :  { %2451 = vmatpush3.bf16.msra.mxu0 %v2627_v10 }
  0x91   :  { %2358 = vmatpush3.bf16.msra.mxu1 %v2629_v11  ;;  %2452 = vmatprep.subr.bf16.mxu0 %v2674_v34 }
  0x92   :  { %2359 = vmatprep.subr.bf16.mxu1 %v2631_v12 }
  0x94   :  { %2453 = vmatpush3.bf16.msra.mxu0 %v2630_v13 }
  0x95   :  { %2360 = vmatpush3.bf16.msra.mxu1 %v2632_v14  ;;  %2454 = vmatprep.subr.bf16.mxu0 %v2674_v34 }
  0x96   :  { %2361 = vmatprep.subr.bf16.mxu1 %v2634_v15 }
  0x98   :  { %2455 = vmatpush3.bf16.msra.mxu0 %v2633_v16 }
  0x99   :  { %2362 = vmatpush3.bf16.msra.mxu1 %v2635_v18  ;;  %2456 = vmatprep.subr.bf16.mxu0 %v2674_v34 }
  0x9a   :  { %2363 = vmatprep.subr.bf16.mxu1 %v2637_v19 }
  0x9c   :  { %2457 = vmatpush3.bf16.msra.mxu0 %v2636_v20 }
  0x9d   :  { %2364 = vmatpush3.bf16.msra.mxu1 %v2638_v21  ;;  %2458 = vmatprep.subr.bf16.mxu0 %v2674_v34 }
  0x9e   :  { %2365 = vmatprep.subr.bf16.mxu1 %v2640_v22 }
  0xa0   :  { %2459 = vmatpush3.bf16.msra.mxu0 %v2639_v23 }
  0xa1   :  { %2366 = vmatpush3.bf16.msra.mxu1 %v2641_v24  ;;  %2373 = vmatprep.subr.bf16.mxu0 %v2643_v26 }
  0xa2   :  { %2464 = vmatprep.subr.bf16.mxu1 %v2674_v34 }
  0xa3   :  { %2461 = vmatmul.mubr.bf16.vlgmr.msra.gmra.mrb[16].mxu0 %v2642_v25 }
  0xa4   :  { %2374 = vmatpush3.bf16.msra.mxu0 %v2644_v27  ;;  %1866 = vmatmul.mubr.bf16.vlgmr.msra.gmra.mrb[16].mxu1 %v2645_v28 }
  0xa5   :  { %2465 = vmatpush3.bf16.msra.mxu1 %v2648_v29  ;;  %2375 = vmatprep.subr.bf16.mxu0 %v2649_v30 }
  0xa6   :  { %2466 = vmatprep.subr.bf16.mxu1 %v2674_v34  ;;  %2480 = vmatprep.mubr.msk.bf16.mxu1 %vm2675_vm0, %v2674_v34 }
  0xa7   :  { %1906 = vmatprep.mubr.bf16.mxu0 %v2671_v38 }
  0xa8   :  { %2376 = vmatpush3.bf16.msra.mxu0 %v2650_v31 }
  0xa9   :  { %2467 = vmatpush3.bf16.msra.mxu1 %v2651_v32  ;;  %2377 = vmatprep.subr.bf16.mxu0 %v2652_v33 }
  0xaa   :  { %2468 = vmatprep.subr.bf16.mxu1 %v2674_v34 }
  0xac   :  { %2378 = vmatpush3.bf16.msra.mxu0 %v2653_v35 }
  0xad   :  { %2469 = vmatpush3.bf16.msra.mxu1 %v2654_v36  ;;  %2379 = vmatprep.subr.bf16.mxu0 %v2655_v37 }
  0xae   :  { %2470 = vmatprep.subr.bf16.mxu1 %v2674_v34 }
  0xb0   :  { %2380 = vmatpush3.bf16.msra.mxu0 %v2656_v39 }
  0xb1   :  { %2471 = vmatpush3.bf16.msra.mxu1 %v2657_v40  ;;  %2381 = vmatprep.subr.bf16.mxu0 %v2658_v41 }
  0xb2   :  { %2472 = vmatprep.subr.bf16.mxu1 %v2674_v34 }
  0xb4   :  { %2382 = vmatpush3.bf16.msra.mxu0 %v2659_v42 }
  0xb5   :  { %2473 = vmatpush3.bf16.msra.mxu1 %v2660_v43  ;;  %2383 = vmatprep.subr.bf16.mxu0 %v2661_v44 }
  0xb6   :  { %2474 = vmatprep.subr.bf16.mxu1 %v2674_v34 }
  0xb8   :  { %2384 = vmatpush3.bf16.msra.mxu0 %v2662_v45 }
  0xb9   :  { %2475 = vmatpush3.bf16.msra.mxu1 %v2663_v46  ;;  %2385 = vmatprep.subr.bf16.mxu0 %v2664_v47 }
  0xba   :  { %2476 = vmatprep.subr.bf16.mxu1 %v2674_v34 }
  0xbc   :  { %2386 = vmatpush3.bf16.msra.mxu0 %v2665_v48 }
  0xbd   :  { %2477 = vmatpush3.bf16.msra.mxu1 %v2666_v49  ;;  %2387 = vmatprep.subr.bf16.mxu0 %v2667_v50 }
  0xbe   :  { %2478 = vmatprep.subr.bf16.mxu1 %v2674_v34 }
  0xc0   :  { %2388 = vmatpush3.bf16.msra.mxu0 %v2668_v51 }
  0xc1   :  { %2479 = vmatpush3.bf16.msra.mxu1 %v2672_v52 }
  0xc3   :  { %1907 = vmatmul.mubr.bf16.vlgmr.msra.gmra.mrb[20].mxu0 %v2669_v53 }
  0xc4   :  { %2481 = vmatmul.mubr.bf16.vlgmr.msra.gmra.mrb[20].mxu1 %v2673_v54 }
  0xf6   :  { %v2208_v55 = vpop.f32.mrb[0].mxu0 }
  0xf7   :  { %v2230_v56 = vpop.f32.mrb[0].mxu1  ;;  %v2209_v57 = vpop.f32.mrb[1].mxu0 }
  0xf8   :  { %v2210_v58 = vadd.f32 %v2209_v57, %v2208_v55  ;;  %v2231_v59 = vpop.f32.mrb[1].mxu1  ;;  %v2211_v60 = vpop.f32.mrb[2].mxu0 }
  0xf9   :  { %v2232_v61 = vadd.f32 %v2231_v59, %v2230_v56  ;;  %v2233_v34 = vpop.f32.mrb[2].mxu1  ;;  %v2212_v62 = vpop.f32.mrb[3].mxu0 }
  0xfa   :  { %v2213_v63 = vadd.f32 %v2212_v62, %v2211_v60  ;;  %v2234_v0 = vpop.f32.mrb[3].mxu1 }
  0xfb   :  { %v2235_v1 = vadd.f32 %v2234_v0, %v2233_v34  ;;  %v466_v2 = vadd.f32 %v2232_v61, %v2210_v58 }
  0xfd   :  { %v469_v3 = vadd.f32 %v2235_v1, %v2213_v63 }
 0x116   :  { %v506_v4 = vpop.f32.mrb[4].mxu0 }
 0x117   :  { %v507_v5 = vadd.f32 %v506_v4, %v466_v2  ;;  %v2422_v6 = vpop.f32.mrb[5].mxu0  ;;  %v2261_v7 = vpop.f32.mrb[4].mxu1 }
 0x118   :  { %v509_v8 = vpop.f32.mrb[6].mxu0  ;;  %v2262_v9 = vpop.f32.mrb[5].mxu1 }
 0x119   :  { %v510_v10 = vadd.f32 %v509_v8, %v469_v3  ;;  %v2423_v11 = vpop.f32.mrb[7].mxu0  ;;  %v2263_v12 = vadd.f32 %v2262_v9, %v2261_v7  ;;  %v2264_v13 = vpop.f32.mrb[6].mxu1  ;;  %v2182_v9 = vld [vmem:[%s3302_s5] ss:$0 sm:$0xff] }
 0x11a   :  { %v2265_v14 = vpop.f32.mrb[7].mxu1 }
 0x11b   :  { %v2266_v15 = vadd.f32 %v2265_v14, %v2264_v13 }
 0x136   :  { %v2283_v16 = vpop.f32.mrb[8].mxu0 }
 0x137   :  { %v2284_v17 = vpop.f32.mrb[9].mxu0  ;;  %v987_v18 = vpop.f32.mrb[8].mxu1 }
 0x138   :  { %v2285_v19 = vadd.f32 %v2284_v17, %v2283_v16  ;;  %v2286_v20 = vpop.f32.mrb[10].mxu0  ;;  %v2442_v21 = vpop.f32.mrb[9].mxu1 }
 0x139   :  { %v2287_v22 = vpop.f32.mrb[11].mxu0  ;;  %v990_v23 = vpop.f32.mrb[10].mxu1 }
 0x13a   :  { %v2288_v24 = vadd.f32 %v2287_v22, %v2286_v20  ;;  %v947_v25 = vadd.f32 %v2285_v19, %v2263_v12  ;;  %v2443_v26 = vpop.f32.mrb[11].mxu1 }
 0x13c   :  { %v988_v27 = vadd.f32 %v987_v18, %v947_v25  ;;  %v950_v28 = vadd.f32 %v2288_v24, %v2266_v15 }
 0x13e   :  { %v1967_v29 = vmax.f32 %v507_v5, %v988_v27  ;;  %v991_v30 = vadd.f32 %v990_v23, %v950_v28 }
 0x140   :  { %v1968_v31 = vmax.f32 %v510_v10, %v991_v30 }
 0x156   :  { %v2314_v32 = vpop.f32.mrb[12].mxu0 }
 0x157   :  { %v2336_v33 = vpop.f32.mrb[12].mxu1  ;;  %v2315_v35 = vpop.f32.mrb[13].mxu0 }
 0x158   :  { %v2316_v36 = vadd.f32 %v2315_v35, %v2314_v32  ;;  %v2337_v37 = vpop.f32.mrb[13].mxu1  ;;  %v2317_v38 = vpop.f32.mrb[14].mxu0 }
 0x159   :  { %v2338_v39 = vadd.f32 %v2337_v37, %v2336_v33  ;;  %v2339_v40 = vpop.f32.mrb[14].mxu1  ;;  %v2318_v41 = vpop.f32.mrb[15].mxu0 }
 0x15a   :  { %v2319_v42 = vadd.f32 %v2318_v41, %v2317_v38  ;;  %v2340_v43 = vpop.f32.mrb[15].mxu1 }
 0x15b   :  { %v2341_v44 = vadd.f32 %v2340_v43, %v2339_v40  ;;  %v1428_v45 = vadd.f32 %v2338_v39, %v2316_v36 }
 0x15d   :  { %v1431_v46 = vadd.f32 %v2341_v44, %v2319_v42 }
 0x176   :  { %v1468_v47 = vpop.f32.mrb[16].mxu0 }
 0x177   :  { %v1469_v48 = vadd.f32 %v1468_v47, %v1428_v45  ;;  %v2462_v49 = vpop.f32.mrb[17].mxu0  ;;  %v2367_v50 = vpop.f32.mrb[16].mxu1 }
 0x178   :  { %v1471_v51 = vpop.f32.mrb[18].mxu0  ;;  %v2368_v52 = vpop.f32.mrb[17].mxu1 }
 0x179   :  { %v1971_v53 = vmax.f32 %v1967_v29, %v1469_v48  ;;  %v1472_v54 = vadd.f32 %v1471_v51, %v1431_v46  ;;  %v2463_v55 = vpop.f32.mrb[19].mxu0  ;;  %v2369_v56 = vadd.f32 %v2368_v52, %v2367_v50  ;;  %v2370_v57 = vpop.f32.mrb[18].mxu1 }
 0x17a   :  { %v2371_v58 = vpop.f32.mrb[19].mxu1 }
 0x17b   :  { %v1972_v59 = vmax.f32 %v1968_v31, %v1472_v54  ;;  %v2372_v60 = vadd.f32 %v2371_v58, %v2370_v57 }
 0x196   :  { %v2389_v61 = vpop.f32.mrb[20].mxu0 }
 0x197   :  { %v2390_v34 = vpop.f32.mrb[21].mxu0  ;;  %v1949_v62 = vpop.f32.mrb[20].mxu1 }
 0x198   :  { %v2391_v63 = vadd.f32 %v2390_v34, %v2389_v61  ;;  %v2392_v0 = vpop.f32.mrb[22].mxu0  ;;  %v2482_v1 = vpop.f32.mrb[21].mxu1 }
 0x199   :  { %v2393_v2 = vpop.f32.mrb[23].mxu0  ;;  %v1952_v3 = vpop.f32.mrb[22].mxu1 }
 0x19a   :  { %v1909_v4 = vadd.f32 %v2391_v63, %v2369_v56  ;;  %v2394_v5 = vadd.f32 %v2393_v2, %v2392_v0  ;;  %v2483_v6 = vpop.f32.mrb[23].mxu1 }
 0x19c   :  { %v1950_v7 = vadd.f32 %v1949_v62, %v1909_v4  ;;  %v1912_v8 = vadd.f32 %v2394_v5, %v2372_v60 }
 0x19e   :  { %v1975_v10 = vmax.f32 %v1971_v53, %v1950_v7  ;;  %v1953_v11 = vadd.f32 %v1952_v3, %v1912_v8 }
 0x1a0   :  { %v1984_v12 = vadd.f32 %v2182_v9, %v1975_v10  ;;  %v1976_v13 = vmax.f32 %v1972_v59, %v1953_v11 }
 0x1a2   :  { %v1985_v14 = vadd.f32 %v2182_v9, %v1976_v13  ;;  %v1986_v15 = vmax.f32 %v1984_v12, 0.0 }
 0x1a4   :  { %v1987_v16 = vmax.f32 %v1985_v14, 0.0 }
 0x1a6   :  { %v2190_v17 = vpack.c.bf16 %v1987_v16, %v1986_v15 }
 0x1a8   :  { %2191 = vst [vmem:[%s3303_s6] sm:$0xff] %v2190_v17  }

// kernel: conv_autoencoder_forward.12
= control target key start
LH: loop header
LB: loop body
LE: loop exit
PB: predicated region body
PF: predicated region fallthrough
CT: control target
= control target key end

     0   :  { %v509_v1 = vmov 0   ;;  %v350_v34 = vlaneseq  ;;  %s644_s1 = inlined_call_operand.vmem [shape: bf16[128,512], index: 1, kind: input, shape index: {}]   ;;  %s645_s0 = inlined_call_operand.vmem [shape: bf16[16,128], index: 0, kind: input, shape index: {}]   ;;  %s646_s2 = inlined_call_operand.vmem [shape: f32[1,512], index: 2, kind: input, shape index: {}]   ;;  %s647_s3 = inlined_call_operand.vmem [shape: bf16[16,512], index: 3, kind: output, shape index: {}]  }
   0x1   :  { %v460_v0 = vld [vmem:[%s644_s1 + $0x4] ss:$16 sps:$4 sm:$0xff]   ;;  %267 = vmatprep.mubr.bf16.mxu0 %v509_v1  ;;  %310 = vmatprep.mubr.bf16.mxu1 %v509_v1  ;;  %v462_v2 = vld [vmem:[%s644_s1 + $0xc] ss:$16 sps:$4 sm:$0xff]   ;;  %v464_v3 = vld [vmem:[%s644_s1] ss:$16 sps:$4 sm:$0xff]  }
   0x2   :  { %235 = vmatprep.subr.bf16.mxu0 %v460_v0  ;;  %v465_v4 = vld [vmem:[%s644_s1 + $0x8] ss:$16 sps:$4 sm:$0xff]   ;;  %278 = vmatprep.subr.bf16.mxu1 %v462_v2  ;;  %v466_v5 = vld [vmem:[%s644_s1 + $0x24] ss:$16 sps:$4 sm:$0xff]   ;;  %v468_v6 = vld [vmem:[%s644_s1 + $0x2c] ss:$16 sps:$4 sm:$0xff]  }
   0x3   :  { %236 = vmatpush1.bf16.msra.mxu0 %v464_v3  ;;  %279 = vmatpush1.bf16.msra.mxu1 %v465_v4  ;;  %v470_v7 = vld [vmem:[%s644_s1 + $0x20] ss:$16 sps:$4 sm:$0xff]   ;;  %v471_v8 = vld [vmem:[%s644_s1 + $0x28] ss:$16 sps:$4 sm:$0xff]   ;;  %v472_v9 = vld [vmem:[%s644_s1 + $0x44] ss:$16 sps:$4 sm:$0xff]  }
   0x4   :  { %237 = vmatprep.subr.bf16.mxu0 %v466_v5  ;;  %280 = vmatprep.subr.bf16.mxu1 %v468_v6  ;;  %v474_v10 = vld [vmem:[%s644_s1 + $0x4c] ss:$16 sps:$4 sm:$0xff]   ;;  %v476_v11 = vld [vmem:[%s644_s1 + $0x40] ss:$16 sps:$4 sm:$0xff]   ;;  %v477_v12 = vld [vmem:[%s644_s1 + $0x48] ss:$16 sps:$4 sm:$0xff]  }
   0x5   :  { %v478_v13 = vld [vmem:[%s644_s1 + $0x64] ss:$16 sps:$4 sm:$0xff]   ;;  %v480_v14 = vld [vmem:[%s644_s1 + $0x6c] ss:$16 sps:$4 sm:$0xff]   ;;  %v482_v15 = vld [vmem:[%s644_s1 + $0x60] ss:$16 sps:$4 sm:$0xff]  }
   0x6   :  { %v483_v16 = vld [vmem:[%s644_s1 + $0x68] ss:$16 sps:$4 sm:$0xff]   ;;  %v484_v17 = vld [vmem:[%s644_s1 + $0x84] ss:$16 sps:$4 sm:$0xff]   ;;  %v486_v18 = vld [vmem:[%s644_s1 + $0x8c] ss:$16 sps:$4 sm:$0xff]  }
   0x7   :  { %238 = vmatpush1.bf16.msra.mxu0 %v470_v7  ;;  %281 = vmatpush1.bf16.msra.mxu1 %v471_v8  ;;  %v488_v19 = vld [vmem:[%s644_s1 + $0x80] ss:$16 sps:$4 sm:$0xff]   ;;  %v489_v20 = vld [vmem:[%s644_s1 + $0x88] ss:$16 sps:$4 sm:$0xff]   ;;  %v490_v21 = vld [vmem:[%s644_s1 + $0xa4] ss:$16 sps:$4 sm:$0xff]  }
   0x8   :  { %239 = vmatprep.subr.bf16.mxu0 %v472_v9  ;;  %282 = vmatprep.subr.bf16.mxu1 %v474_v10  ;;  %v492_v22 = vld [vmem:[%s644_s1 + $0xac] ss:$16 sps:$4 sm:$0xff]   ;;  %v494_v23 = vld [vmem:[%s644_s1 + $0xa0] ss:$16 sps:$4 sm:$0xff]   ;;  %v495_v24 = vld [vmem:[%s644_s1 + $0xa8] ss:$16 sps:$4 sm:$0xff]  }
   0x9   :  { %v496_v25 = vld [vmem:[%s644_s1 + $0xc4] ss:$16 sps:$4 sm:$0xff]   ;;  %v498_v26 = vld [vmem:[%s644_s1 + $0xcc] ss:$16 sps:$4 sm:$0xff]   ;;  %v500_v27 = vld [vmem:[%s644_s1 + $0xc0] ss:$16 sps:$4 sm:$0xff]  }
   0xa   :  { %v501_v28 = vld [vmem:[%s644_s1 + $0xc8] ss:$16 sps:$4 sm:$0xff]   ;;  %v502_v29 = vld [vmem:[%s644_s1 + $0xe4] ss:$16 sps:$4 sm:$0xff]   ;;  %v504_v30 = vld [vmem:[%s644_s1 + $0xec] ss:$16 sps:$4 sm:$0xff]  }
   0xb   :  { %240 = vmatpush1.bf16.msra.mxu0 %v476_v11  ;;  %283 = vmatpush1.bf16.msra.mxu1 %v477_v12  ;;  %v506_v31 = vld [vmem:[%s644_s1 + $0xe0] ss:$16 sps:$4 sm:$0xff]   ;;  %v507_v32 = vld [vmem:[%s644_s1 + $0xe8] ss:$16 sps:$4 sm:$0xff]   ;;  %v351_v35 = vshrl.u32 %v350_v34, 7 }
   0xc   :  { %241 = vmatprep.subr.bf16.mxu0 %v478_v13  ;;  %284 = vmatprep.subr.bf16.mxu1 %v480_v14  ;;  %v508_v33 = vld [vmem:[%s645_s0] sm:$0xff]  }
   0xd   :  { %v352_v36 = vsub.s32 0, %v351_v35  ;;  %v360_v37 = vsub.s32 2, %v351_v35  ;;  %v348_v38 = vld [vmem:[%s646_s2] sm:$0xf]  ;;  %v356_v39 = vsub.s32 1, %v351_v35  ;;  %v364_v40 = vsub.s32 3, %v351_v35 }
   0xf   :  { %242 = vmatpush1.bf16.msra.mxu0 %v482_v15  ;;  %285 = vmatpush1.bf16.msra.mxu1 %v483_v16  ;;  %v353_v41 = vrot.slane %v348_v38, %v352_v36  ;;  %v361_v42 = vrot.slane %v348_v38, %v360_v37  ;;  %v357_v43 = vrot.slane %v348_v38, %v356_v39 }
  0x10   :  { %243 = vmatprep.subr.bf16.mxu0 %v484_v17  ;;  %286 = vmatprep.subr.bf16.mxu1 %v486_v18  ;;  %v365_v44 = vrot.slane %v348_v38, %v364_v40 }
  0x13   :  { %244 = vmatpush1.bf16.msra.mxu0 %v488_v19  ;;  %287 = vmatpush1.bf16.msra.mxu1 %v489_v20 }
  0x14   :  { %245 = vmatprep.subr.bf16.mxu0 %v490_v21  ;;  %288 = vmatprep.subr.bf16.mxu1 %v492_v22 }
  0x17   :  { %246 = vmatpush1.bf16.msra.mxu0 %v494_v23  ;;  %289 = vmatpush1.bf16.msra.mxu1 %v495_v24 }
  0x18   :  { %247 = vmatprep.subr.bf16.mxu0 %v496_v25  ;;  %290 = vmatprep.subr.bf16.mxu1 %v498_v26 }
  0x1b   :  { %248 = vmatpush1.bf16.msra.mxu0 %v500_v27  ;;  %291 = vmatpush1.bf16.msra.mxu1 %v501_v28 }
  0x1c   :  { %249 = vmatprep.subr.bf16.mxu0 %v502_v29  ;;  %292 = vmatprep.subr.bf16.mxu1 %v504_v30 }
  0x1f   :  { %250 = vmatpush1.bf16.msra.mxu0 %v506_v31  ;;  %293 = vmatpush1.bf16.msra.mxu1 %v507_v32 }
  0x22   :  { %268 = vmatmul.mubr.bf16.vlgmr.msra.gmra.mrb[0].mxu0 %v508_v33  ;;  %311 = vmatmul.mubr.bf16.vlgmr.msra.gmra.mrb[0].mxu1 %v508_v33 }
  0xf5   :  { %v269_v45 = vpop.f32.mrb[0].mxu0  ;;  %v312_v46 = vpop.f32.mrb[0].mxu1 }
  0xf6   :  { %v370_v47 = vadd.f32 %v353_v41, %v269_v45  ;;  %v372_v48 = vadd.f32 %v361_v42, %v312_v46  ;;  %v271_v49 = vpop.f32.mrb[1].mxu0  ;;  %v314_v50 = vpop.f32.mrb[1].mxu1 }
  0xf7   :  { %v371_v51 = vadd.f32 %v357_v43, %v271_v49  ;;  %v373_v52 = vadd.f32 %v365_v44, %v314_v50  ;;  %v273_v53 = vpop.f32.mrb[2].mxu0  ;;  %v316_v54 = vpop.f32.mrb[2].mxu1 }
  0xf8   :  { %v378_v55 = vmax.f32 %v370_v47, 0.0  ;;  %v380_v56 = vmax.f32 %v372_v48, 0.0  ;;  %v374_v57 = vadd.f32 %v353_v41, %v273_v53  ;;  %v376_v58 = vadd.f32 %v361_v42, %v316_v54  ;;  %v275_v59 = vpop.f32.mrb[3].mxu0  ;;  %v318_v60 = vpop.f32.mrb[3].mxu1 }
  0xf9   :  { %v379_v61 = vmax.f32 %v371_v51, 0.0  ;;  %v381_v62 = vmax.f32 %v373_v52, 0.0  ;;  %v375_v63 = vadd.f32 %v357_v43, %v275_v59  ;;  %v377_v0 = vadd.f32 %v365_v44, %v318_v60 }
  0xfa   :  { %v382_v1 = vmax.f32 %v374_v57, 0.0  ;;  %v384_v2 = vmax.f32 %v376_v58, 0.0 }
  0xfb   :  { %v455_v3 = vpack.c.bf16 %v379_v61, %v378_v55  ;;  %v456_v4 = vpack.c.bf16 %v381_v62, %v380_v56  ;;  %v383_v5 = vmax.f32 %v375_v63, 0.0  ;;  %v385_v6 = vmax.f32 %v377_v0, 0.0 }
  0xfd   :  { %410 = vst [vmem:[%s647_s3] sm:$0xff] %v455_v3  ;;  %411 = vst [vmem:[%s647_s3 + $0x8] sm:$0xff] %v456_v4  ;;  %v457_v7 = vpack.c.bf16 %v383_v5, %v382_v1  ;;  %v458_v8 = vpack.c.bf16 %v385_v6, %v384_v2 }
  0xff   :  { %412 = vst [vmem:[%s647_s3 + $0x10] sm:$0xff] %v457_v7  ;;  %413 = vst [vmem:[%s647_s3 + $0x18] sm:$0xff] %v458_v8 }

// kernel: conv_autoencoder_forward.13
= control target key start
LH: loop header
LB: loop body
LE: loop exit
PB: predicated region body
PF: predicated region fallthrough
CT: control target
= control target key end

     0   :  { %v274_v1 = vmov 0   ;;  %v191_v18 = vlaneseq  ;;  %s355_s1 = inlined_call_operand.vmem [shape: bf16[128,256], index: 1, kind: input, shape index: {}]   ;;  %s356_s0 = inlined_call_operand.vmem [shape: bf16[16,128], index: 0, kind: input, shape index: {}]   ;;  %s357_s2 = inlined_call_operand.vmem [shape: f32[1,256], index: 2, kind: input, shape index: {}]   ;;  %s358_s3 = inlined_call_operand.vmem [shape: bf16[16,256], index: 3, kind: output, shape index: {}]  }
   0x1   :  { %v249_v0 = vld [vmem:[%s355_s1 + $0x4] ss:$8 sps:$4 sm:$0xff]   ;;  %163 = vmatprep.mubr.bf16.mxu0 %v274_v1  ;;  %v251_v2 = vld [vmem:[%s355_s1] ss:$8 sps:$4 sm:$0xff]   ;;  %v252_v3 = vld [vmem:[%s355_s1 + $0x14] ss:$8 sps:$4 sm:$0xff]  }
   0x2   :  { %131 = vmatprep.subr.bf16.mxu0 %v249_v0  ;;  %v254_v4 = vld [vmem:[%s355_s1 + $0x10] ss:$8 sps:$4 sm:$0xff]   ;;  %v255_v5 = vld [vmem:[%s355_s1 + $0x24] ss:$8 sps:$4 sm:$0xff]   ;;  %v257_v6 = vld [vmem:[%s355_s1 + $0x20] ss:$8 sps:$4 sm:$0xff]  }
   0x3   :  { %132 = vmatpush1.bf16.msra.mxu0 %v251_v2  ;;  %v258_v7 = vld [vmem:[%s355_s1 + $0x34] ss:$8 sps:$4 sm:$0xff]   ;;  %v260_v8 = vld [vmem:[%s355_s1 + $0x30] ss:$8 sps:$4 sm:$0xff]   ;;  %v261_v9 = vld [vmem:[%s355_s1 + $0x44] ss:$8 sps:$4 sm:$0xff]  }
   0x4   :  { %133 = vmatprep.subr.bf16.mxu0 %v252_v3  ;;  %v263_v10 = vld [vmem:[%s355_s1 + $0x40] ss:$8 sps:$4 sm:$0xff]   ;;  %v264_v11 = vld [vmem:[%s355_s1 + $0x54] ss:$8 sps:$4 sm:$0xff]   ;;  %v266_v12 = vld [vmem:[%s355_s1 + $0x50] ss:$8 sps:$4 sm:$0xff]  }
   0x5   :  { %v267_v13 = vld [vmem:[%s355_s1 + $0x64] ss:$8 sps:$4 sm:$0xff]   ;;  %v269_v14 = vld [vmem:[%s355_s1 + $0x60] ss:$8 sps:$4 sm:$0xff]   ;;  %v270_v15 = vld [vmem:[%s355_s1 + $0x74] ss:$8 sps:$4 sm:$0xff]  }
   0x6   :  { %v272_v16 = vld [vmem:[%s355_s1 + $0x70] ss:$8 sps:$4 sm:$0xff]   ;;  %v273_v17 = vld [vmem:[%s356_s0] sm:$0xff]   ;;  %v192_v19 = vshrl.u32 %v191_v18, 7 }
   0x7   :  { %134 = vmatpush1.bf16.msra.mxu0 %v254_v4  ;;  %v189_v21 = vld [vmem:[%s357_s2] sm:$0x3] }
   0x8   :  { %135 = vmatprep.subr.bf16.mxu0 %v255_v5  ;;  %v193_v20 = vsub.s32 0, %v192_v19  ;;  %v197_v22 = vsub.s32 1, %v192_v19 }
   0xa   :  { %v194_v23 = vrot.slane %v189_v21, %v193_v20  ;;  %v198_v24 = vrot.slane %v189_v21, %v197_v22 }
   0xb   :  { %136 = vmatpush1.bf16.msra.mxu0 %v257_v6 }
   0xc   :  { %137 = vmatprep.subr.bf16.mxu0 %v258_v7 }
   0xf   :  { %138 = vmatpush1.bf16.msra.mxu0 %v260_v8 }
  0x10   :  { %139 = vmatprep.subr.bf16.mxu0 %v261_v9 }
  0x13   :  { %140 = vmatpush1.bf16.msra.mxu0 %v263_v10 }
  0x14   :  { %141 = vmatprep.subr.bf16.mxu0 %v264_v11 }
  0x17   :  { %142 = vmatpush1.bf16.msra.mxu0 %v266_v12 }
  0x18   :  { %143 = vmatprep.subr.bf16.mxu0 %v267_v13 }
  0x1b   :  { %144 = vmatpush1.bf16.msra.mxu0 %v269_v14 }
  0x1c   :  { %145 = vmatprep.subr.bf16.mxu0 %v270_v15 }
  0x1f   :  { %146 = vmatpush1.bf16.msra.mxu0 %v272_v16 }
  0x22   :  { %164 = vmatmul.mubr.bf16.vlgmr.msra.gmra.mrb[0].mxu0 %v273_v17 }
  0xf5   :  { %v165_v25 = vpop.f32.mrb[0].mxu0 }
  0xf6   :  { %v201_v26 = vadd.f32 %v194_v23, %v165_v25  ;;  %v167_v27 = vpop.f32.mrb[1].mxu0 }
  0xf7   :  { %v202_v28 = vadd.f32 %v198_v24, %v167_v27  ;;  %v169_v29 = vpop.f32.mrb[2].mxu0 }
  0xf8   :  { %v205_v30 = vmax.f32 %v201_v26, 0.0  ;;  %v203_v31 = vadd.f32 %v194_v23, %v169_v29  ;;  %v171_v32 = vpop.f32.mrb[3].mxu0 }
  0xf9   :  { %v206_v33 = vmax.f32 %v202_v28, 0.0  ;;  %v204_v34 = vadd.f32 %v198_v24, %v171_v32 }
  0xfa   :  { %v207_v35 = vmax.f32 %v203_v31, 0.0 }
  0xfb   :  { %v246_v36 = vpack.c.bf16 %v206_v33, %v205_v30  ;;  %v208_v37 = vmax.f32 %v204_v34, 0.0 }
  0xfd   :  { %221 = vst [vmem:[%s358_s3] sm:$0xff] %v246_v36  ;;  %v247_v38 = vpack.c.bf16 %v208_v37, %v207_v35 }
  0xff   :  { %222 = vst [vmem:[%s358_s3 + $0x8] sm:$0xff] %v247_v38 }

// kernel: conv_autoencoder_forward.14
= control target key start
LH: loop header
LB: loop body
LE: loop exit
PB: predicated region body
PF: predicated region fallthrough
CT: control target
= control target key end

     0   :  { %s339_s1 = inlined_call_operand.vmem [shape: bf16[128,128], index: 1, kind: input, shape index: {}]   ;;  %s340_s0 = inlined_call_operand.vmem [shape: bf16[32,128], index: 0, kind: input, shape index: {}]   ;;  %s341_s2 = inlined_call_operand.vmem [shape: f32[1,128], index: 2, kind: input, shape index: {}]   ;;  %s342_s3 = inlined_call_operand.vmem [shape: bf16[32,128], index: 3, kind: output, shape index: {}]  }
   0x1   :  { %v270_v0 = vld [vmem:[%s339_s1] sm:$0xff]   ;;  %v271_v1 = vld [vmem:[%s339_s1 + $0x8] sm:$0xff]   ;;  %v272_v2 = vld [vmem:[%s339_s1 + $0x10] sm:$0xff]  }
   0x2   :  { %250 = vmatprep.subr.bf16.mxu0 %v270_v0  ;;  %v273_v3 = vld [vmem:[%s339_s1 + $0x18] sm:$0xff]   ;;  %v278_v4 = vld [vmem:[%s340_s0] sm:$0xff]   ;;  %v275_v6 = vld [vmem:[%s339_s1 + $0x28] sm:$0xff]  }
   0x3   :  { %251 = vmatpush3.bf16.msra.mxu0 %v270_v0  ;;  %266 = vmatprep.mubr.bf16.mxu0 %v278_v4  ;;  %v274_v5 = vld [vmem:[%s339_s1 + $0x20] sm:$0xff]   ;;  %v276_v7 = vld [vmem:[%s339_s1 + $0x30] sm:$0xff]   ;;  %v277_v8 = vld [vmem:[%s339_s1 + $0x38] sm:$0xff]  }
   0x4   :  { %252 = vmatprep.subr.bf16.mxu0 %v271_v1  ;;  %v279_v9 = vld [vmem:[%s340_s0 + $0x8] sm:$0xff]   ;;  %v220_v10 = vld [vmem:[%s341_s2] ss:$0 sm:$0xff] }
   0x7   :  { %253 = vmatpush3.bf16.msra.mxu0 %v271_v1 }
   0x8   :  { %254 = vmatprep.subr.bf16.mxu0 %v272_v2 }
   0xb   :  { %255 = vmatpush3.bf16.msra.mxu0 %v272_v2 }
   0xc   :  { %256 = vmatprep.subr.bf16.mxu0 %v273_v3 }
   0xf   :  { %257 = vmatpush3.bf16.msra.mxu0 %v273_v3 }
  0x10   :  { %258 = vmatprep.subr.bf16.mxu0 %v274_v5 }
  0x13   :  { %259 = vmatpush3.bf16.msra.mxu0 %v274_v5 }
  0x14   :  { %260 = vmatprep.subr.bf16.mxu0 %v275_v6 }
  0x17   :  { %261 = vmatpush3.bf16.msra.mxu0 %v275_v6 }
  0x18   :  { %262 = vmatprep.subr.bf16.mxu0 %v276_v7 }
  0x1b   :  { %263 = vmatpush3.bf16.msra.mxu0 %v276_v7 }
  0x1c   :  { %264 = vmatprep.subr.bf16.mxu0 %v277_v8 }
  0x1f   :  { %265 = vmatpush3.bf16.msra.mxu0 %v277_v8 }
  0x22   :  { %267 = vmatmul.mubr.bf16.vlgmr.msra.gmra.mrb[0].mxu0 %v279_v9 }
  0xf5   :  { %v268_v11 = vpop.f32.mrb[0].mxu0 }
  0xf6   :  { %v180_v12 = vadd.f32 %v268_v11, %v220_v10  ;;  %v141_v13 = vpop.f32.mrb[1].mxu0 }
  0xf7   :  { %v178_v14 = vadd.f32 %v220_v10, %v141_v13  ;;  %v269_v15 = vpop.f32.mrb[2].mxu0 }
  0xf8   :  { %v181_v16 = vadd.f32 %v269_v15, %v220_v10  ;;  %v144_v17 = vpop.f32.mrb[3].mxu0  ;;  %v184_v19 = vmax.f32 %v180_v12, 0.0 }
  0xf9   :  { %v179_v18 = vadd.f32 %v220_v10, %v144_v17  ;;  %v182_v21 = vmax.f32 %v178_v14, 0.0 }
  0xfa   :  { %v185_v20 = vmax.f32 %v181_v16, 0.0 }
  0xfb   :  { %v183_v22 = vmax.f32 %v179_v18, 0.0 }
  0xfc   :  { %v237_v23 = vpack.c.bf16 %v185_v20, %v184_v19 }
  0xfd   :  { %v232_v24 = vpack.c.bf16 %v183_v22, %v182_v21 }
  0xfe   :  { %239 = vst [vmem:[%s342_s3 + $0x8] sm:$0xff] %v237_v23  }
  0xff   :  { %233 = vst [vmem:[%s342_s3] sm:$0xff] %v232_v24  }

// kernel: conv_autoencoder_forward.15
= control target key start
LH: loop header
LB: loop body
LE: loop exit
PB: predicated region body
PF: predicated region fallthrough
CT: control target
= control target key end

     0   :  { %s876_s1 = inlined_call_operand.vmem [shape: bf16[128,128], index: 1, kind: input, shape index: {}]   ;;  %s877_s0 = inlined_call_operand.vmem [shape: bf16[128,128], index: 0, kind: input, shape index: {}]   ;;  %s878_s2 = inlined_call_operand.vmem [shape: f32[1,128], index: 2, kind: input, shape index: {}]   ;;  %s879_s3 = inlined_call_operand.vmem [shape: f32[128,128], index: 3, kind: output, shape index: {}]  }
   0x1   :  { %v595_v0 = vld [vmem:[%s876_s1] sm:$0xff]   ;;  %v596_v1 = vld [vmem:[%s876_s1 + $0x8] sm:$0xff]   ;;  %v597_v2 = vld [vmem:[%s876_s1 + $0x10] sm:$0xff]  }
   0x2   :  { %547 = vmatprep.subr.bf16.mxu0 %v595_v0  ;;  %579 = vmatprep.subr.bf16.mxu1 %v595_v0  ;;  %v598_v3 = vld [vmem:[%s876_s1 + $0x18] sm:$0xff]   ;;  %v603_v4 = vld [vmem:[%s877_s0] sm:$0xff]   ;;  %v600_v7 = vld [vmem:[%s876_s1 + $0x28] sm:$0xff]  }
   0x3   :  { %548 = vmatpush3.bf16.msra.mxu0 %v595_v0  ;;  %587 = vmatpush3.bf16.msra.mxu1 %v595_v0  ;;  %v604_v5 = vld [vmem:[%s877_s0 + $0x20] sm:$0xff]   ;;  %v601_v8 = vld [vmem:[%s876_s1 + $0x30] sm:$0xff]   ;;  %v602_v9 = vld [vmem:[%s876_s1 + $0x38] sm:$0xff]  }
   0x4   :  { %549 = vmatprep.subr.bf16.mxu0 %v596_v1  ;;  %580 = vmatprep.subr.bf16.mxu1 %v596_v1  ;;  %v599_v6 = vld [vmem:[%s876_s1 + $0x20] sm:$0xff]   ;;  %v605_v10 = vld [vmem:[%s877_s0 + $0x8] sm:$0xff]   ;;  %v607_v12 = vld [vmem:[%s877_s0 + $0x10] sm:$0xff]  }
   0x5   :  { %563 = vmatprep.mubr.bf16.mxu0 %v603_v4  ;;  %571 = vmatprep.mubr.bf16.mxu1 %v604_v5  ;;  %v606_v11 = vld [vmem:[%s877_s0 + $0x28] sm:$0xff]   ;;  %v608_v13 = vld [vmem:[%s877_s0 + $0x30] sm:$0xff]   ;;  %v609_v14 = vld [vmem:[%s877_s0 + $0x18] sm:$0xff]  }
   0x6   :  { %v610_v15 = vld [vmem:[%s877_s0 + $0x38] sm:$0xff]   ;;  %v746_v16 = vld [vmem:[%s878_s2] ss:$0 sm:$0xff] }
   0x7   :  { %550 = vmatpush3.bf16.msra.mxu0 %v596_v1  ;;  %588 = vmatpush3.bf16.msra.mxu1 %v596_v1 }
   0x8   :  { %551 = vmatprep.subr.bf16.mxu0 %v597_v2  ;;  %581 = vmatprep.subr.bf16.mxu1 %v597_v2 }
   0xb   :  { %552 = vmatpush3.bf16.msra.mxu0 %v597_v2  ;;  %589 = vmatpush3.bf16.msra.mxu1 %v597_v2 }
   0xc   :  { %553 = vmatprep.subr.bf16.mxu0 %v598_v3  ;;  %582 = vmatprep.subr.bf16.mxu1 %v598_v3 }
   0xf   :  { %554 = vmatpush3.bf16.msra.mxu0 %v598_v3  ;;  %590 = vmatpush3.bf16.msra.mxu1 %v598_v3 }
  0x10   :  { %555 = vmatprep.subr.bf16.mxu0 %v599_v6  ;;  %583 = vmatprep.subr.bf16.mxu1 %v599_v6 }
  0x13   :  { %556 = vmatpush3.bf16.msra.mxu0 %v599_v6  ;;  %591 = vmatpush3.bf16.msra.mxu1 %v599_v6 }
  0x14   :  { %557 = vmatprep.subr.bf16.mxu0 %v600_v7  ;;  %584 = vmatprep.subr.bf16.mxu1 %v600_v7 }
  0x17   :  { %558 = vmatpush3.bf16.msra.mxu0 %v600_v7  ;;  %592 = vmatpush3.bf16.msra.mxu1 %v600_v7 }
  0x18   :  { %559 = vmatprep.subr.bf16.mxu0 %v601_v8  ;;  %585 = vmatprep.subr.bf16.mxu1 %v601_v8 }
  0x1b   :  { %560 = vmatpush3.bf16.msra.mxu0 %v601_v8  ;;  %593 = vmatpush3.bf16.msra.mxu1 %v601_v8 }
  0x1c   :  { %561 = vmatprep.subr.bf16.mxu0 %v602_v9  ;;  %586 = vmatprep.subr.bf16.mxu1 %v602_v9 }
  0x1f   :  { %562 = vmatpush3.bf16.msra.mxu0 %v602_v9  ;;  %594 = vmatpush3.bf16.msra.mxu1 %v602_v9 }
  0x22   :  { %564 = vmatmul.mubr.bf16.vlgmr.msra.gmra.mrb[0].mxu0 %v605_v10  ;;  %572 = vmatmul.mubr.bf16.vlgmr.msra.gmra.mrb[0].mxu1 %v606_v11 }
  0x23   :  { %567 = vmatprep.mubr.bf16.mxu0 %v607_v12  ;;  %575 = vmatprep.mubr.bf16.mxu1 %v608_v13 }
  0x2a   :  { %568 = vmatmul.mubr.bf16.gmra.mrb[4].mxu0 %v609_v14  ;;  %576 = vmatmul.mubr.bf16.gmra.mrb[4].mxu1 %v610_v15 }
  0xf5   :  { %v565_v17 = vpop.f32.mrb[0].mxu0  ;;  %v573_v18 = vpop.f32.mrb[0].mxu1 }
  0xf6   :  { %v749_v19 = vadd.f32 %v565_v17, %v746_v16  ;;  %v752_v20 = vadd.f32 %v573_v18, %v746_v16  ;;  %v213_v21 = vpop.f32.mrb[1].mxu0  ;;  %v245_v22 = vpop.f32.mrb[1].mxu1 }
  0xf7   :  { %v755_v23 = vadd.f32 %v746_v16, %v213_v21  ;;  %v758_v24 = vadd.f32 %v746_v16, %v245_v22  ;;  %v566_v25 = vpop.f32.mrb[2].mxu0  ;;  %v574_v26 = vpop.f32.mrb[2].mxu1 }
  0xf8   :  { %v352_v27 = vand.u32 2147483647, %v749_v19  ;;  %v360_v28 = vand.u32 2147483647, %v752_v20  ;;  %v765_v33 = vadd.f32 %v566_v25, %v746_v16  ;;  %v768_v34 = vadd.f32 %v574_v26, %v746_v16  ;;  %v216_v35 = vpop.f32.mrb[3].mxu0  ;;  %v248_v36 = vpop.f32.mrb[3].mxu1 }
  0xf9   :  { %v350_v29 = vand.u32 2147483647, %v755_v23  ;;  %v358_v30 = vand.u32 2147483647, %v758_v24  ;;  %v771_v39 = vadd.f32 %v746_v16, %v216_v35  ;;  %v774_v40 = vadd.f32 %v746_v16, %v248_v36 }
  0xfa   :  { %v368_v31 = vsub.f32 0.0, %v352_v27  ;;  %v376_v32 = vsub.f32 0.0, %v360_v28  ;;  %v353_v43 = vand.u32 2147483647, %v765_v33  ;;  %v361_v47 = vand.u32 2147483647, %v768_v34 }
  0xfb   :  { %v366_v37 = vsub.f32 0.0, %v350_v29  ;;  %v374_v38 = vsub.f32 0.0, %v358_v30  ;;  %v351_v48 = vand.u32 2147483647, %v771_v39  ;;  %v359_v50 = vand.u32 2147483647, %v774_v40 }
  0xfc   :  { %v386_v41 = vmul.f32 1.442695, %v368_v31  ;;  %v402_v42 = vmul.f32 1.442695, %v376_v32  ;;  %v369_v46 = vsub.f32 0.0, %v353_v43  ;;  %v377_v54 = vsub.f32 0.0, %v361_v47 }
  0xfd   :  { %v382_v44 = vmul.f32 1.442695, %v366_v37  ;;  %v398_v45 = vmul.f32 1.442695, %v374_v38  ;;  %v569_v49 = vpop.f32.mrb[4].mxu0  ;;  %v577_v51 = vpop.f32.mrb[4].mxu1 }
  0xfe   :  { %611 = vpow2.f32 %v386_v41  ;;  %v229_v52 = vpop.f32.mrb[5].mxu0  ;;  %v388_v53 = vmul.f32 1.442695, %v369_v46  ;;  %v367_v55 = vsub.f32 0.0, %v351_v48  ;;  %v261_v56 = vpop.f32.mrb[5].mxu1  ;;  %v375_v58 = vsub.f32 0.0, %v359_v50 }
  0xff   :  { %613 = vpow2.f32 %v402_v42  ;;  %v570_v57 = vpop.f32.mrb[6].mxu0  ;;  %v781_v59 = vadd.f32 %v569_v49, %v746_v16  ;;  %v784_v60 = vadd.f32 %v577_v51, %v746_v16  ;;  %v578_v61 = vpop.f32.mrb[6].mxu1  ;;  %v404_v63 = vmul.f32 1.442695, %v377_v54 }
 0x100   :  { %615 = vpow2.f32 %v382_v44  ;;  %v232_v62 = vpop.f32.mrb[7].mxu0  ;;  %v384_v0 = vmul.f32 1.442695, %v367_v55  ;;  %v787_v1 = vadd.f32 %v746_v16, %v229_v52  ;;  %v264_v2 = vpop.f32.mrb[7].mxu1  ;;  %v400_v3 = vmul.f32 1.442695, %v375_v58 }
 0x101   :  { %617 = vpow2.f32 %v398_v45  ;;  %v356_v4 = vand.u32 2147483647, %v781_v59  ;;  %v364_v5 = vand.u32 2147483647, %v784_v60  ;;  %v793_v8 = vadd.f32 %v746_v16, %v261_v56 }
 0x102   :  { %619 = vpow2.f32 %v388_v53  ;;  %v354_v6 = vand.u32 2147483647, %v787_v1  ;;  %v796_v9 = vadd.f32 %v570_v57, %v746_v16  ;;  %v800_v17 = vadd.f32 %v578_v61, %v746_v16 }
 0x103   :  { %621 = vpow2.f32 %v404_v63  ;;  %v372_v7 = vsub.f32 0.0, %v356_v4  ;;  %v380_v10 = vsub.f32 0.0, %v364_v5  ;;  %v362_v12 = vand.u32 2147483647, %v793_v8 }
 0x104   :  { %623 = vpow2.f32 %v384_v0  ;;  %v370_v15 = vsub.f32 0.0, %v354_v6  ;;  %v357_v22 = vand.u32 2147483647, %v796_v9  ;;  %v804_v25 = vadd.f32 %v746_v16, %v232_v62 }
 0x105   :  { %625 = vpow2.f32 %v400_v3  ;;  %v394_v11 = vmul.f32 1.442695, %v372_v7  ;;  %v410_v14 = vmul.f32 1.442695, %v380_v10  ;;  %v378_v30 = vsub.f32 0.0, %v362_v12 }
 0x106   :  { %v390_v35 = vmul.f32 1.442695, %v370_v15  ;;  %v365_v36 = vand.u32 2147483647, %v800_v17  ;;  %v373_v38 = vsub.f32 0.0, %v357_v22  ;;  %v809_v43 = vadd.f32 %v746_v16, %v264_v2 }
 0x107   :  { %627 = vpow2.f32 %v394_v11  ;;  %v355_v41 = vand.u32 2147483647, %v804_v25  ;;  %v406_v46 = vmul.f32 1.442695, %v378_v30  ;;  %vm448_vm0 = vcmp.ge.f32.partialorder %v749_v19, 0.0 }
 0x108   :  { %v612_v13 = vpop.eup %611  ;;  %629 = vpow2.f32 %v410_v14  ;;  %v381_v49 = vsub.f32 0.0, %v365_v36  ;;  %v363_v50 = vand.u32 2147483647, %v809_v43  ;;  %v396_v52 = vmul.f32 1.442695, %v373_v38 }
 0x109   :  { %v614_v18 = vpop.eup %613  ;;  %v416_v21 = vadd.f32 1.0, %v612_v13  ;;  %v371_v53 = vsub.f32 0.0, %v355_v41  ;;  %vm456_vm1 = vcmp.ge.f32.partialorder %v752_v20, 0.0  ;;  %vm446_vm2 = vcmp.ge.f32.partialorder %v755_v23, 0.0 }
 0x10a   :  { %v616_v26 = vpop.eup %615  ;;  %v424_v27 = vadd.f32 1.0, %v614_v18  ;;  %v379_v54 = vsub.f32 0.0, %v363_v50  ;;  %v412_v57 = vmul.f32 1.442695, %v381_v49  ;;  %vm454_vm3 = vcmp.ge.f32.partialorder %v758_v24, 0.0 }
 0x10b   :  { %v618_v28 = vpop.eup %617  ;;  %631 = vrcp.f32 %v416_v21  ;;  %v414_v29 = vadd.f32 1.0, %v616_v26  ;;  %v392_v62 = vmul.f32 1.442695, %v371_v53  ;;  %vm449_vm4 = vcmp.ge.f32.partialorder %v765_v33, 0.0 }
 0x10c   :  { %v620_v31 = vpop.eup %619  ;;  %633 = vrcp.f32 %v424_v27  ;;  %v422_v32 = vadd.f32 1.0, %v618_v28  ;;  %v408_v2 = vmul.f32 1.442695, %v379_v54  ;;  %vm457_vm5 = vcmp.ge.f32.partialorder %v768_v34, 0.0 }
 0x10d   :  { %635 = vrcp.f32 %v414_v29  ;;  %v417_v37 = vadd.f32 1.0, %v620_v31  ;;  %v622_v42 = vpop.eup %621  ;;  %vm447_vm6 = vcmp.ge.f32.partialorder %v771_v39, 0.0  ;;  %vm455_vm7 = vcmp.ge.f32.partialorder %v774_v40, 0.0 }
 0x10e   :  { %637 = vrcp.f32 %v422_v32  ;;  %v624_v44 = vpop.eup %623  ;;  %v425_v45 = vadd.f32 1.0, %v622_v42  ;;  %vm452_vm8 = vcmp.ge.f32.partialorder %v781_v59, 0.0  ;;  %vm460_vm9 = vcmp.ge.f32.partialorder %v784_v60, 0.0 }
 0x10f   :  { %639 = vrcp.f32 %v417_v37  ;;  %v626_v47 = vpop.eup %625  ;;  %v415_v48 = vadd.f32 1.0, %v624_v44  ;;  %vm450_vm10 = vcmp.ge.f32.partialorder %v787_v1, 0.0  ;;  %vm458_vm11 = vcmp.ge.f32.partialorder %v793_v8, 0.0 }
 0x110   :  { %641 = vpow2.f32 %v390_v35  ;;  %v423_v51 = vadd.f32 1.0, %v626_v47  ;;  %vm453_vm12 = vcmp.ge.f32.partialorder %v796_v9, 0.0  ;;  %vm461_vm13 = vcmp.ge.f32.partialorder %v800_v17, 0.0 }
 0x111   :  { %643 = vrcp.f32 %v425_v45  ;;  %v628_v55 = vpop.eup %627  ;;  %vm451_vm14 = vcmp.ge.f32.partialorder %v804_v25, 0.0  ;;  %vm459_vm15 = vcmp.ge.f32.partialorder %v809_v43, 0.0 }
 0x112   :  { %645 = vrcp.f32 %v415_v48  ;;  %v630_v16 = vpop.eup %629  ;;  %v420_v56 = vadd.f32 1.0, %v628_v55 }
 0x113   :  { %647 = vrcp.f32 %v423_v51  ;;  %v428_v61 = vadd.f32 1.0, %v630_v16 }
 0x114   :  { %649 = vpow2.f32 %v406_v46 }
 0x115   :  { %v632_v58 = vpop.eup %631  ;;  %651 = vpow2.f32 %v396_v52 }
 0x116   :  { %v634_v63 = vpop.eup %633  ;;  %v464_v0 = vsub.f32 1.0, %v632_v58  ;;  %653 = vrcp.f32 %v420_v56 }
 0x117   :  { %v636_v3 = vpop.eup %635  ;;  %v472_v4 = vsub.f32 1.0, %v634_v63  ;;  %655 = vrcp.f32 %v428_v61 }
 0x118   :  { %v638_v5 = vpop.eup %637  ;;  %v480_v6 = vsel %vm448_vm0, %v632_v58, %v464_v0  ;;  %v462_v7 = vsub.f32 1.0, %v636_v3  ;;  %657 = vpow2.f32 %v412_v57 }
 0x119   :  { %v640_v10 = vpop.eup %639  ;;  %496 = vst [vmem:[%s879_s3 + $0x10] sm:$0xff] %v480_v6  ;;  %v488_v11 = vsel %vm456_vm1, %v634_v63, %v472_v4  ;;  %v470_v12 = vsub.f32 1.0, %v638_v5  ;;  %659 = vpow2.f32 %v392_v62 }
 0x11a   :  { %v642_v13 = vpop.eup %641  ;;  %504 = vst [vmem:[%s879_s3 + $0x50] sm:$0xff] %v488_v11  ;;  %v478_v19 = vsel %vm446_vm2, %v636_v3, %v462_v7  ;;  %v465_v20 = vsub.f32 1.0, %v640_v10  ;;  %661 = vpow2.f32 %v408_v2 }
 0x11b   :  { %v644_v14 = vpop.eup %643  ;;  %494 = vst [vmem:[%s879_s3] sm:$0xff] %v478_v19  ;;  %v486_v15 = vsel %vm454_vm3, %v638_v5, %v470_v12  ;;  %v418_v23 = vadd.f32 1.0, %v642_v13 }
 0x11c   :  { %v646_v18 = vpop.eup %645  ;;  %502 = vst [vmem:[%s879_s3 + $0x40] sm:$0xff] %v486_v15  ;;  %v481_v21 = vsel %vm449_vm4, %v640_v10, %v465_v20  ;;  %v473_v22 = vsub.f32 1.0, %v644_v14 }
 0x11d   :  { %v648_v26 = vpop.eup %647  ;;  %497 = vst [vmem:[%s879_s3 + $0x18] sm:$0xff] %v481_v21  ;;  %v463_v24 = vsub.f32 1.0, %v646_v18  ;;  %663 = vrcp.f32 %v418_v23 }
 0x11e   :  { %v650_v27 = vpop.eup %649  ;;  %v489_v28 = vsel %vm457_vm5, %v644_v14, %v473_v22  ;;  %v471_v33 = vsub.f32 1.0, %v648_v26 }
 0x11f   :  { %v652_v29 = vpop.eup %651  ;;  %505 = vst [vmem:[%s879_s3 + $0x58] sm:$0xff] %v489_v28  ;;  %v479_v30 = vsel %vm447_vm6, %v646_v18, %v463_v24  ;;  %v426_v31 = vadd.f32 1.0, %v650_v27 }
 0x120   :  { %v654_v32 = vpop.eup %653  ;;  %495 = vst [vmem:[%s879_s3 + $0x8] sm:$0xff] %v479_v30  ;;  %v487_v34 = vsel %vm455_vm7, %v648_v26, %v471_v33  ;;  %v421_v35 = vadd.f32 1.0, %v652_v29 }
 0x121   :  { %v656_v36 = vpop.eup %655  ;;  %503 = vst [vmem:[%s879_s3 + $0x48] sm:$0xff] %v487_v34  ;;  %v468_v39 = vsub.f32 1.0, %v654_v32  ;;  %665 = vrcp.f32 %v426_v31 }
 0x122   :  { %v658_v37 = vpop.eup %657  ;;  %v476_v38 = vsub.f32 1.0, %v656_v36  ;;  %667 = vrcp.f32 %v421_v35 }
 0x123   :  { %v660_v40 = vpop.eup %659  ;;  %v484_v41 = vsel %vm452_vm8, %v654_v32, %v468_v39  ;;  %v429_v42 = vadd.f32 1.0, %v658_v37 }
 0x124   :  { %v662_v44 = vpop.eup %661  ;;  %500 = vst [vmem:[%s879_s3 + $0x30] sm:$0xff] %v484_v41  ;;  %v492_v45 = vsel %vm460_vm9, %v656_v36, %v476_v38  ;;  %v419_v46 = vadd.f32 1.0, %v660_v40 }
 0x125   :  { %508 = vst [vmem:[%s879_s3 + $0x70] sm:$0xff] %v492_v45  ;;  %669 = vrcp.f32 %v429_v42  ;;  %v427_v59 = vadd.f32 1.0, %v662_v44 }
 0x126   :  { %671 = vrcp.f32 %v419_v46 }
 0x127   :  { %v664_v47 = vpop.eup %663  ;;  %673 = vrcp.f32 %v427_v59 }
 0x128   :  { %v466_v48 = vsub.f32 1.0, %v664_v47 }
 0x12a   :  { %v482_v60 = vsel %vm450_vm10, %v664_v47, %v466_v48 }
 0x12b   :  { %v666_v49 = vpop.eup %665  ;;  %498 = vst [vmem:[%s879_s3 + $0x20] sm:$0xff] %v482_v60 }
 0x12c   :  { %v668_v50 = vpop.eup %667  ;;  %v474_v51 = vsub.f32 1.0, %v666_v49 }
 0x12d   :  { %v469_v52 = vsub.f32 1.0, %v668_v50 }
 0x12e   :  { %v490_v53 = vsel %vm458_vm11, %v666_v49, %v474_v51 }
 0x12f   :  { %v670_v54 = vpop.eup %669  ;;  %506 = vst [vmem:[%s879_s3 + $0x60] sm:$0xff] %v490_v53  ;;  %v485_v1 = vsel %vm453_vm12, %v668_v50, %v469_v52 }
 0x130   :  { %v672_v55 = vpop.eup %671  ;;  %501 = vst [vmem:[%s879_s3 + $0x38] sm:$0xff] %v485_v1  ;;  %v477_v16 = vsub.f32 1.0, %v670_v54 }
 0x131   :  { %v674_v56 = vpop.eup %673  ;;  %v467_v8 = vsub.f32 1.0, %v672_v55 }
 0x132   :  { %v493_v57 = vsel %vm461_vm13, %v670_v54, %v477_v16  ;;  %v475_v9 = vsub.f32 1.0, %v674_v56 }
 0x133   :  { %509 = vst [vmem:[%s879_s3 + $0x78] sm:$0xff] %v493_v57  ;;  %v483_v58 = vsel %vm451_vm14, %v672_v55, %v467_v8 }
 0x134   :  { %499 = vst [vmem:[%s879_s3 + $0x28] sm:$0xff] %v483_v58  ;;  %v491_v61 = vsel %vm459_vm15, %v674_v56, %v475_v9 }
 0x135   :  { %507 = vst [vmem:[%s879_s3 + $0x68] sm:$0xff] %v491_v61 }

</bundles_post_ra>
